<compile_context>
chip_gen: v7x
topology: tpu7x:2x2x1
jax: 0.10.0
libtpu: 0.0.40
codegen_flags: <defaults>
</compile_context>

<pallas_src>
import functools

import jax
import jax.numpy as jnp
from jax.experimental import pallas as pl
from jax.experimental.pallas import tpu as pltpu


def _conv_relu_pool_flat(p_ref, c_ref, w_ref, b_ref, h, w):
    """Conv2d(3x3, stride 1, pad 1) + ReLU + MaxPool2d(2) on a flat-row layout.

    p_ref : ((h+2)*(w+2) + 2, cin)  zero-padded input; padded pixel (a, b) at
            flat row a*(w+2) + b (tail rows are zero slack for the last taps).
    c_ref : ((h+1)*(w+2), cout)     scratch holding the pre-pool conv output.
    w_ref : (9*cin, cout)           packed HWIO weights (dy-major, dx, cin).
    b_ref : (1, cout)               bias.
    Returns pooled activations of shape ((h//2)*(w+2), cout); pooled pixel
    (i, j) lives at row i*(w+2) + j (rows with j >= w//2 are don't-care).
    """
    wp = w + 2
    m = h * wp                                   # conv outputs incl. wrap cols
    # im2col: tap (dy, dx) of conv output q is p[q + dy*wp + dx]; all 9 taps
    # are contiguous shifted slices, packed on the lane axis so the whole
    # layer is a single (m, 9*cin) x (9*cin, cout) bf16 MXU matmul.
    taps = [
        p_ref[dy * wp + dx: dy * wp + dx + m, :].astype(jnp.bfloat16)
        for dy in range(3) for dx in range(3)
    ]
    patches = jnp.concatenate(taps, axis=-1)     # (m, 9*cin) bf16
    y = jnp.dot(patches, w_ref[...], preferred_element_type=jnp.float32)
    y = jnp.maximum(y + b_ref[...], 0.0)         # bias + ReLU in f32
    c_ref[0:m, :] = y

    # 2x2 max-pool: candidate (r, c) of pooled pixel (i, j) is conv output at
    # flat row r*wp + c + 2*(i*wp + j)  ->  one stride-2 load per candidate,
    # then an elementwise max (the don't-care columns are never consumed).
    npool = (h // 2) * wp
    cands = [
        c_ref[pl.ds(r * wp + c, npool, stride=2), :]
        for r in range(2) for c in range(2)
    ]
    return functools.reduce(jnp.maximum, cands)  # ((h//2)*wp, cout)


def _store_pooled(pooled, pnext_ref, hp, wn, wp_cur):
    """Scatter valid pooled rows (row stride wp_cur) into the interior of the
    next layer's flat zero-padded scratch (row stride wn + 2)."""
    wpn = wn + 2
    for i in range(hp):
        dst = (1 + i) * wpn + 1
        pnext_ref[dst:dst + wn, :] = pooled[i * wp_cur:i * wp_cur + wn]


def _convnet_kernel(x_ref, w1_ref, b1_ref, w2_ref, b2_ref, w3_ref, b3_ref,
                    o_ref, p1, c1, p2, c2, p3, c3, *, h, w):
    # Zero the scratches every step (the halo must be 0; with a "parallel"
    # grid each core owns its own scratch, so "only on step 0" would be wrong).
    for ref in (p1, c1, p2, c2, p3, c3):
        ref[...] = jnp.zeros_like(ref)

    # Layer-1 input -> flat zero-padded layout.
    x = x_ref[0]                                 # (h, w, 3) f32
    wp1 = w + 2
    for row in range(h):
        dst = (1 + row) * wp1 + 1
        p1[dst:dst + w, :] = x[row]

    # Three fused conv+ReLU+pool blocks; intermediates never leave VMEM.
    pooled1 = _conv_relu_pool_flat(p1, c1, w1_ref, b1_ref, h, w)
    _store_pooled(pooled1, p2, h // 2, w // 2, w + 2)

    pooled2 = _conv_relu_pool_flat(p2, c2, w2_ref, b2_ref, h // 2, w // 2)
    _store_pooled(pooled2, p3, h // 4, w // 4, w // 2 + 2)

    pooled3 = _conv_relu_pool_flat(p3, c3, w3_ref, b3_ref, h // 4, w // 4)

    # Final pooled map (h//8, w//8, 64) in NHWC; pooled3 rows have stride
    # (w//4 + 2).
    wp3 = w // 4 + 2
    for i in range(h // 8):
        o_ref[0, i] = pooled3[i * wp3:i * wp3 + w // 8]


def _convnet_pallas(x_nhwc, w1, b1, w2, b2, w3, b3):
    n, h, w, cin = x_nhwc.shape
    assert cin == 3 and h % 8 == 0 and w % 8 == 0, (n, h, w, cin)
    c1o, c2o, c3o = w1.shape[-1], w2.shape[-1], w3.shape[-1]
    ht2, wd2 = h // 2, w // 2
    ht3, wd3 = h // 4, w // 4
    hto, wdo = h // 8, w // 8

    def wpack(wt):   # HWIO (3, 3, ci, co) -> (9*ci, co), bf16, dy-major/dx/ci
        return wt.reshape(-1, wt.shape[-1]).astype(jnp.bfloat16)

    def bpack(bt):
        return bt.reshape(1, -1).astype(jnp.float32)

    kern = functools.partial(_convnet_kernel, h=h, w=w)

    return pl.pallas_call(
        kern,
        out_shape=jax.ShapeDtypeStruct((n, hto, wdo, c3o), jnp.float32),
        grid=(n,),
        in_specs=[
            pl.BlockSpec((1, h, w, cin), lambda i: (i, 0, 0, 0)),
            pl.BlockSpec((9 * cin, c1o), lambda i: (0, 0)),
            pl.BlockSpec((1, c1o), lambda i: (0, 0)),
            pl.BlockSpec((9 * c1o, c2o), lambda i: (0, 0)),
            pl.BlockSpec((1, c2o), lambda i: (0, 0)),
            pl.BlockSpec((9 * c2o, c3o), lambda i: (0, 0)),
            pl.BlockSpec((1, c3o), lambda i: (0, 0)),
        ],
        out_specs=pl.BlockSpec((1, hto, wdo, c3o), lambda i: (i, 0, 0, 0)),
        scratch_shapes=[
            pltpu.VMEM(((h + 2) * (w + 2) + 2, cin), jnp.float32),       # p1
            pltpu.VMEM(((h + 1) * (w + 2), c1o), jnp.float32),           # c1
            pltpu.VMEM(((ht2 + 2) * (wd2 + 2) + 2, c1o), jnp.float32),   # p2
            pltpu.VMEM(((ht2 + 1) * (wd2 + 2), c2o), jnp.float32),       # c2
            pltpu.VMEM(((ht3 + 2) * (wd3 + 2) + 2, c2o), jnp.float32),   # p3
            pltpu.VMEM(((ht3 + 1) * (wd3 + 2), c3o), jnp.float32),       # c3
        ],
        compiler_params=pltpu.CompilerParams(
            dimension_semantics=("parallel",)),
    )(x_nhwc, wpack(w1), bpack(b1), wpack(w2), bpack(b2), wpack(w3), bpack(b3))


def init_params(key):
    """Deterministic synthetic parameters (shapes from ConvNet.__init__)."""
    convs = []
    for idx, (cin, cout) in enumerate([(3, 16), (16, 32), (32, 64)]):
        kw, kb = jax.random.split(jax.random.fold_in(key, idx))
        fan_in = cin * 9
        wgt = jax.random.normal(kw, (3, 3, cin, cout), jnp.float32) / jnp.sqrt(fan_in)
        bias = 0.01 * jax.random.normal(kb, (cout,), jnp.float32)
        convs.append((wgt, bias))
    return {"convs": convs}


def convnet_forward(x_nchw, params):
    """ConvNet.forward: features(x) then flatten (fc is NOT applied)."""
    x = jnp.transpose(x_nchw, (0, 2, 3, 1))                 # NCHW -> NHWC
    (w1, b1), (w2, b2), (w3, b3) = params["convs"]
    out = _convnet_pallas(x, w1, b1, w2, b2, w3, b3)        # (N, H/8, W/8, 64)
    out = jnp.transpose(out, (0, 3, 1, 2))                  # back to NCHW
    return out.reshape(out.shape[0], -1)                    # torch .view(N, -1)


def reference_forward(x_nchw, params):
    """Pure-JAX reference with matching bf16-operand / f32-accum numerics."""
    x = jnp.transpose(x_nchw, (0, 2, 3, 1))
    for wgt, bias in params["convs"]:
        y = jax.lax.conv_general_dilated(
            x.astype(jnp.bfloat16), wgt.astype(jnp.bfloat16),
            window_strides=(1, 1), padding="SAME",
            dimension_numbers=("NHWC", "HWIO", "NHWC"),
            preferred_element_type=jnp.float32)
        y = jnp.maximum(y + bias, 0.0)
        x = jax.lax.reduce_window(
            y, -jnp.inf, jax.lax.max, (1, 2, 2, 1), (1, 2, 2, 1), "VALID")
    x = jnp.transpose(x, (0, 3, 1, 2))
    return x.reshape(x.shape[0], -1)


if __name__ == "__main__":
    key = jax.random.PRNGKey(0)
    params = init_params(jax.random.fold_in(key, 1))
    # Small shapes: batch=2, 3 input channels (required by conv1), 16x16 spatial.
    x = jax.random.normal(jax.random.fold_in(key, 2), (2, 3, 16, 16), jnp.float32)

    out = jax.block_until_ready(convnet_forward(x, params))
    assert out.shape == (2, 64 * 2 * 2), out.shape

    ref = reference_forward(x, params)
    if not bool(jnp.allclose(out, ref, rtol=5e-3, atol=5e-3)):
        raise AssertionError("Pallas kernel does not match JAX reference")
    print("KERNEL_OK")
</pallas_src>

<mosaic_0001>
module attributes {stable_mosaic.version = 11 : i64} {
  func.func @_convnet_kernel(%arg0: i32, %arg1: memref<1x16x16x3xf32, #tpu.memory_space<vmem>>, %arg2: memref<27x16xbf16, #tpu.memory_space<vmem>>, %arg3: memref<1x16xf32, #tpu.memory_space<vmem>>, %arg4: memref<144x32xbf16, #tpu.memory_space<vmem>>, %arg5: memref<1x32xf32, #tpu.memory_space<vmem>>, %arg6: memref<288x64xbf16, #tpu.memory_space<vmem>>, %arg7: memref<1x64xf32, #tpu.memory_space<vmem>>, %arg8: memref<1x2x2x64xf32, #tpu.memory_space<vmem>>, %arg9: memref<326x3xf32, #tpu.memory_space<vmem>>, %arg10: memref<306x16xf32, #tpu.memory_space<vmem>>, %arg11: memref<102x16xf32, #tpu.memory_space<vmem>>, %arg12: memref<90x32xf32, #tpu.memory_space<vmem>>, %arg13: memref<38x32xf32, #tpu.memory_space<vmem>>, %arg14: memref<30x64xf32, #tpu.memory_space<vmem>>) attributes {dimension_semantics = [#tpu.dimension_semantics<parallel>], iteration_bounds = array<i64: 2>, scalar_prefetch = 0 : i64, scratch_operands = 6 : i64, tpu.core_type = #tpu.core_type<tc>, window_params = [{transform_indices = @transform_0, window_bounds = array<i64: 1, 16, 16, 3>}, {pipeline_mode = #tpu.pipeline_mode<synchronous>, transform_indices = @transform_1, window_bounds = array<i64: 27, 16>}, {pipeline_mode = #tpu.pipeline_mode<synchronous>, transform_indices = @transform_2, window_bounds = array<i64: 1, 16>}, {pipeline_mode = #tpu.pipeline_mode<synchronous>, transform_indices = @transform_3, window_bounds = array<i64: 144, 32>}, {pipeline_mode = #tpu.pipeline_mode<synchronous>, transform_indices = @transform_4, window_bounds = array<i64: 1, 32>}, {pipeline_mode = #tpu.pipeline_mode<synchronous>, transform_indices = @transform_5, window_bounds = array<i64: 288, 64>}, {pipeline_mode = #tpu.pipeline_mode<synchronous>, transform_indices = @transform_6, window_bounds = array<i64: 1, 64>}, {transform_indices = @transform_7, window_bounds = array<i64: 1, 2, 2, 64>}]} {
    %cst = arith.constant 0.000000e+00 : f32
    %0 = vector.broadcast %cst : f32 to vector<326x3xf32>
    %c0 = arith.constant 0 : index
    %c0_0 = arith.constant 0 : index
    %1 = vector.load %arg9[%c0, %c0_0] : memref<326x3xf32, #tpu.memory_space<vmem>>, vector<326x3xf32>
    tpu.vector_store %arg9[%c0, %c0_0], %0 {strides = array<i32>} : memref<326x3xf32, #tpu.memory_space<vmem>>, vector<326x3xf32>,
    %cst_1 = arith.constant 0.000000e+00 : f32
    %2 = vector.broadcast %cst_1 : f32 to vector<306x16xf32>
    %c0_2 = arith.constant 0 : index
    %c0_3 = arith.constant 0 : index
    %3 = vector.load %arg10[%c0_2, %c0_3] : memref<306x16xf32, #tpu.memory_space<vmem>>, vector<306x16xf32>
    tpu.vector_store %arg10[%c0_2, %c0_3], %2 {strides = array<i32>} : memref<306x16xf32, #tpu.memory_space<vmem>>, vector<306x16xf32>,
    %cst_4 = arith.constant 0.000000e+00 : f32
    %4 = vector.broadcast %cst_4 : f32 to vector<102x16xf32>
    %c0_5 = arith.constant 0 : index
    %c0_6 = arith.constant 0 : index
    %5 = vector.load %arg11[%c0_5, %c0_6] : memref<102x16xf32, #tpu.memory_space<vmem>>, vector<102x16xf32>
    tpu.vector_store %arg11[%c0_5, %c0_6], %4 {strides = array<i32>} : memref<102x16xf32, #tpu.memory_space<vmem>>, vector<102x16xf32>,
    %cst_7 = arith.constant 0.000000e+00 : f32
    %6 = vector.broadcast %cst_7 : f32 to vector<90x32xf32>
    %c0_8 = arith.constant 0 : index
    %c0_9 = arith.constant 0 : index
    %7 = vector.load %arg12[%c0_8, %c0_9] : memref<90x32xf32, #tpu.memory_space<vmem>>, vector<90x32xf32>
    tpu.vector_store %arg12[%c0_8, %c0_9], %6 {strides = array<i32>} : memref<90x32xf32, #tpu.memory_space<vmem>>, vector<90x32xf32>,
    %cst_10 = arith.constant 0.000000e+00 : f32
    %8 = vector.broadcast %cst_10 : f32 to vector<38x32xf32>
    %c0_11 = arith.constant 0 : index
    %c0_12 = arith.constant 0 : index
    %9 = vector.load %arg13[%c0_11, %c0_12] : memref<38x32xf32, #tpu.memory_space<vmem>>, vector<38x32xf32>
    tpu.vector_store %arg13[%c0_11, %c0_12], %8 {strides = array<i32>} : memref<38x32xf32, #tpu.memory_space<vmem>>, vector<38x32xf32>,
    %cst_13 = arith.constant 0.000000e+00 : f32
    %10 = vector.broadcast %cst_13 : f32 to vector<30x64xf32>
    %c0_14 = arith.constant 0 : index
    %c0_15 = arith.constant 0 : index
    %11 = vector.load %arg14[%c0_14, %c0_15] : memref<30x64xf32, #tpu.memory_space<vmem>>, vector<30x64xf32>
    tpu.vector_store %arg14[%c0_14, %c0_15], %10 {strides = array<i32>} : memref<30x64xf32, #tpu.memory_space<vmem>>, vector<30x64xf32>,
    %c0_16 = arith.constant 0 : index
    %c0_17 = arith.constant 0 : index
    %c0_18 = arith.constant 0 : index
    %c0_19 = arith.constant 0 : index
    %12 = vector.load %arg1[%c0_16, %c0_17, %c0_18, %c0_19] : memref<1x16x16x3xf32, #tpu.memory_space<vmem>>, vector<1x16x16x3xf32>
    %13 = vector.shape_cast %12 : vector<1x16x16x3xf32> to vector<16x16x3xf32>
    %14 = vector.extract_strided_slice %13 {offsets = [0, 0, 0], sizes = [1, 16, 3], strides = [1, 1, 1]} : vector<16x16x3xf32> to vector<1x16x3xf32>
    %15 = vector.shape_cast %14 : vector<1x16x3xf32> to vector<16x3xf32>
    %c19 = arith.constant 19 : index
    %c0_20 = arith.constant 0 : index
    %16 = vector.load %arg9[%c19, %c0_20] : memref<326x3xf32, #tpu.memory_space<vmem>>, vector<16x3xf32>
    tpu.vector_store %arg9[%c19, %c0_20], %15 {strides = array<i32>} : memref<326x3xf32, #tpu.memory_space<vmem>>, vector<16x3xf32>,
    %17 = vector.extract_strided_slice %13 {offsets = [1, 0, 0], sizes = [1, 16, 3], strides = [1, 1, 1]} : vector<16x16x3xf32> to vector<1x16x3xf32>
    %18 = vector.shape_cast %17 : vector<1x16x3xf32> to vector<16x3xf32>
    %c37 = arith.constant 37 : index
    %c0_21 = arith.constant 0 : index
    %19 = vector.load %arg9[%c37, %c0_21] : memref<326x3xf32, #tpu.memory_space<vmem>>, vector<16x3xf32>
    tpu.vector_store %arg9[%c37, %c0_21], %18 {strides = array<i32>} : memref<326x3xf32, #tpu.memory_space<vmem>>, vector<16x3xf32>,
    %20 = vector.extract_strided_slice %13 {offsets = [2, 0, 0], sizes = [1, 16, 3], strides = [1, 1, 1]} : vector<16x16x3xf32> to vector<1x16x3xf32>
    %21 = vector.shape_cast %20 : vector<1x16x3xf32> to vector<16x3xf32>
    %c55 = arith.constant 55 : index
    %c0_22 = arith.constant 0 : index
    %22 = vector.load %arg9[%c55, %c0_22] : memref<326x3xf32, #tpu.memory_space<vmem>>, vector<16x3xf32>
    tpu.vector_store %arg9[%c55, %c0_22], %21 {strides = array<i32>} : memref<326x3xf32, #tpu.memory_space<vmem>>, vector<16x3xf32>,
    %23 = vector.extract_strided_slice %13 {offsets = [3, 0, 0], sizes = [1, 16, 3], strides = [1, 1, 1]} : vector<16x16x3xf32> to vector<1x16x3xf32>
    %24 = vector.shape_cast %23 : vector<1x16x3xf32> to vector<16x3xf32>
    %c73 = arith.constant 73 : index
    %c0_23 = arith.constant 0 : index
    %25 = vector.load %arg9[%c73, %c0_23] : memref<326x3xf32, #tpu.memory_space<vmem>>, vector<16x3xf32>
    tpu.vector_store %arg9[%c73, %c0_23], %24 {strides = array<i32>} : memref<326x3xf32, #tpu.memory_space<vmem>>, vector<16x3xf32>,
    %26 = vector.extract_strided_slice %13 {offsets = [4, 0, 0], sizes = [1, 16, 3], strides = [1, 1, 1]} : vector<16x16x3xf32> to vector<1x16x3xf32>
    %27 = vector.shape_cast %26 : vector<1x16x3xf32> to vector<16x3xf32>
    %c91 = arith.constant 91 : index
    %c0_24 = arith.constant 0 : index
    %28 = vector.load %arg9[%c91, %c0_24] : memref<326x3xf32, #tpu.memory_space<vmem>>, vector<16x3xf32>
    tpu.vector_store %arg9[%c91, %c0_24], %27 {strides = array<i32>} : memref<326x3xf32, #tpu.memory_space<vmem>>, vector<16x3xf32>,
    %29 = vector.extract_strided_slice %13 {offsets = [5, 0, 0], sizes = [1, 16, 3], strides = [1, 1, 1]} : vector<16x16x3xf32> to vector<1x16x3xf32>
    %30 = vector.shape_cast %29 : vector<1x16x3xf32> to vector<16x3xf32>
    %c109 = arith.constant 109 : index
    %c0_25 = arith.constant 0 : index
    %31 = vector.load %arg9[%c109, %c0_25] : memref<326x3xf32, #tpu.memory_space<vmem>>, vector<16x3xf32>
    tpu.vector_store %arg9[%c109, %c0_25], %30 {strides = array<i32>} : memref<326x3xf32, #tpu.memory_space<vmem>>, vector<16x3xf32>,
    %32 = vector.extract_strided_slice %13 {offsets = [6, 0, 0], sizes = [1, 16, 3], strides = [1, 1, 1]} : vector<16x16x3xf32> to vector<1x16x3xf32>
    %33 = vector.shape_cast %32 : vector<1x16x3xf32> to vector<16x3xf32>
    %c127 = arith.constant 127 : index
    %c0_26 = arith.constant 0 : index
    %34 = vector.load %arg9[%c127, %c0_26] : memref<326x3xf32, #tpu.memory_space<vmem>>, vector<16x3xf32>
    tpu.vector_store %arg9[%c127, %c0_26], %33 {strides = array<i32>} : memref<326x3xf32, #tpu.memory_space<vmem>>, vector<16x3xf32>,
    %35 = vector.extract_strided_slice %13 {offsets = [7, 0, 0], sizes = [1, 16, 3], strides = [1, 1, 1]} : vector<16x16x3xf32> to vector<1x16x3xf32>
    %36 = vector.shape_cast %35 : vector<1x16x3xf32> to vector<16x3xf32>
    %c145 = arith.constant 145 : index
    %c0_27 = arith.constant 0 : index
    %37 = vector.load %arg9[%c145, %c0_27] : memref<326x3xf32, #tpu.memory_space<vmem>>, vector<16x3xf32>
    tpu.vector_store %arg9[%c145, %c0_27], %36 {strides = array<i32>} : memref<326x3xf32, #tpu.memory_space<vmem>>, vector<16x3xf32>,
    %38 = vector.extract_strided_slice %13 {offsets = [8, 0, 0], sizes = [1, 16, 3], strides = [1, 1, 1]} : vector<16x16x3xf32> to vector<1x16x3xf32>
    %39 = vector.shape_cast %38 : vector<1x16x3xf32> to vector<16x3xf32>
    %c163 = arith.constant 163 : index
    %c0_28 = arith.constant 0 : index
    %40 = vector.load %arg9[%c163, %c0_28] : memref<326x3xf32, #tpu.memory_space<vmem>>, vector<16x3xf32>
    tpu.vector_store %arg9[%c163, %c0_28], %39 {strides = array<i32>} : memref<326x3xf32, #tpu.memory_space<vmem>>, vector<16x3xf32>,
    %41 = vector.extract_strided_slice %13 {offsets = [9, 0, 0], sizes = [1, 16, 3], strides = [1, 1, 1]} : vector<16x16x3xf32> to vector<1x16x3xf32>
    %42 = vector.shape_cast %41 : vector<1x16x3xf32> to vector<16x3xf32>
    %c181 = arith.constant 181 : index
    %c0_29 = arith.constant 0 : index
    %43 = vector.load %arg9[%c181, %c0_29] : memref<326x3xf32, #tpu.memory_space<vmem>>, vector<16x3xf32>
    tpu.vector_store %arg9[%c181, %c0_29], %42 {strides = array<i32>} : memref<326x3xf32, #tpu.memory_space<vmem>>, vector<16x3xf32>,
    %44 = vector.extract_strided_slice %13 {offsets = [10, 0, 0], sizes = [1, 16, 3], strides = [1, 1, 1]} : vector<16x16x3xf32> to vector<1x16x3xf32>
    %45 = vector.shape_cast %44 : vector<1x16x3xf32> to vector<16x3xf32>
    %c199 = arith.constant 199 : index
    %c0_30 = arith.constant 0 : index
    %46 = vector.load %arg9[%c199, %c0_30] : memref<326x3xf32, #tpu.memory_space<vmem>>, vector<16x3xf32>
    tpu.vector_store %arg9[%c199, %c0_30], %45 {strides = array<i32>} : memref<326x3xf32, #tpu.memory_space<vmem>>, vector<16x3xf32>,
    %47 = vector.extract_strided_slice %13 {offsets = [11, 0, 0], sizes = [1, 16, 3], strides = [1, 1, 1]} : vector<16x16x3xf32> to vector<1x16x3xf32>
    %48 = vector.shape_cast %47 : vector<1x16x3xf32> to vector<16x3xf32>
    %c217 = arith.constant 217 : index
    %c0_31 = arith.constant 0 : index
    %49 = vector.load %arg9[%c217, %c0_31] : memref<326x3xf32, #tpu.memory_space<vmem>>, vector<16x3xf32>
    tpu.vector_store %arg9[%c217, %c0_31], %48 {strides = array<i32>} : memref<326x3xf32, #tpu.memory_space<vmem>>, vector<16x3xf32>,
    %50 = vector.extract_strided_slice %13 {offsets = [12, 0, 0], sizes = [1, 16, 3], strides = [1, 1, 1]} : vector<16x16x3xf32> to vector<1x16x3xf32>
    %51 = vector.shape_cast %50 : vector<1x16x3xf32> to vector<16x3xf32>
    %c235 = arith.constant 235 : index
    %c0_32 = arith.constant 0 : index
    %52 = vector.load %arg9[%c235, %c0_32] : memref<326x3xf32, #tpu.memory_space<vmem>>, vector<16x3xf32>
    tpu.vector_store %arg9[%c235, %c0_32], %51 {strides = array<i32>} : memref<326x3xf32, #tpu.memory_space<vmem>>, vector<16x3xf32>,
    %53 = vector.extract_strided_slice %13 {offsets = [13, 0, 0], sizes = [1, 16, 3], strides = [1, 1, 1]} : vector<16x16x3xf32> to vector<1x16x3xf32>
    %54 = vector.shape_cast %53 : vector<1x16x3xf32> to vector<16x3xf32>
    %c253 = arith.constant 253 : index
    %c0_33 = arith.constant 0 : index
    %55 = vector.load %arg9[%c253, %c0_33] : memref<326x3xf32, #tpu.memory_space<vmem>>, vector<16x3xf32>
    tpu.vector_store %arg9[%c253, %c0_33], %54 {strides = array<i32>} : memref<326x3xf32, #tpu.memory_space<vmem>>, vector<16x3xf32>,
    %56 = vector.extract_strided_slice %13 {offsets = [14, 0, 0], sizes = [1, 16, 3], strides = [1, 1, 1]} : vector<16x16x3xf32> to vector<1x16x3xf32>
    %57 = vector.shape_cast %56 : vector<1x16x3xf32> to vector<16x3xf32>
    %c271 = arith.constant 271 : index
    %c0_34 = arith.constant 0 : index
    %58 = vector.load %arg9[%c271, %c0_34] : memref<326x3xf32, #tpu.memory_space<vmem>>, vector<16x3xf32>
    tpu.vector_store %arg9[%c271, %c0_34], %57 {strides = array<i32>} : memref<326x3xf32, #tpu.memory_space<vmem>>, vector<16x3xf32>,
    %59 = vector.extract_strided_slice %13 {offsets = [15, 0, 0], sizes = [1, 16, 3], strides = [1, 1, 1]} : vector<16x16x3xf32> to vector<1x16x3xf32>
    %60 = vector.shape_cast %59 : vector<1x16x3xf32> to vector<16x3xf32>
    %c289 = arith.constant 289 : index
    %c0_35 = arith.constant 0 : index
    %61 = vector.load %arg9[%c289, %c0_35] : memref<326x3xf32, #tpu.memory_space<vmem>>, vector<16x3xf32>
    tpu.vector_store %arg9[%c289, %c0_35], %60 {strides = array<i32>} : memref<326x3xf32, #tpu.memory_space<vmem>>, vector<16x3xf32>,
    %c0_36 = arith.constant 0 : index
    %c0_37 = arith.constant 0 : index
    %62 = vector.load %arg9[%c0_36, %c0_37] : memref<326x3xf32, #tpu.memory_space<vmem>>, vector<288x3xf32>
    %63 = arith.truncf %62 : vector<288x3xf32> to vector<288x3xbf16>
    %c1 = arith.constant 1 : index
    %c0_38 = arith.constant 0 : index
    %64 = vector.load %arg9[%c1, %c0_38] : memref<326x3xf32, #tpu.memory_space<vmem>>, vector<288x3xf32>
    %65 = arith.truncf %64 : vector<288x3xf32> to vector<288x3xbf16>
    %c2 = arith.constant 2 : index
    %c0_39 = arith.constant 0 : index
    %66 = vector.load %arg9[%c2, %c0_39] : memref<326x3xf32, #tpu.memory_space<vmem>>, vector<288x3xf32>
    %67 = arith.truncf %66 : vector<288x3xf32> to vector<288x3xbf16>
    %c18 = arith.constant 18 : index
    %c0_40 = arith.constant 0 : index
    %68 = vector.load %arg9[%c18, %c0_40] : memref<326x3xf32, #tpu.memory_space<vmem>>, vector<288x3xf32>
    %69 = arith.truncf %68 : vector<288x3xf32> to vector<288x3xbf16>
    %c19_41 = arith.constant 19 : index
    %c0_42 = arith.constant 0 : index
    %70 = vector.load %arg9[%c19_41, %c0_42] : memref<326x3xf32, #tpu.memory_space<vmem>>, vector<288x3xf32>
    %71 = arith.truncf %70 : vector<288x3xf32> to vector<288x3xbf16>
    %c20 = arith.constant 20 : index
    %c0_43 = arith.constant 0 : index
    %72 = vector.load %arg9[%c20, %c0_43] : memref<326x3xf32, #tpu.memory_space<vmem>>, vector<288x3xf32>
    %73 = arith.truncf %72 : vector<288x3xf32> to vector<288x3xbf16>
    %c36 = arith.constant 36 : index
    %c0_44 = arith.constant 0 : index
    %74 = vector.load %arg9[%c36, %c0_44] : memref<326x3xf32, #tpu.memory_space<vmem>>, vector<288x3xf32>
    %75 = arith.truncf %74 : vector<288x3xf32> to vector<288x3xbf16>
    %c37_45 = arith.constant 37 : index
    %c0_46 = arith.constant 0 : index
    %76 = vector.load %arg9[%c37_45, %c0_46] : memref<326x3xf32, #tpu.memory_space<vmem>>, vector<288x3xf32>
    %77 = arith.truncf %76 : vector<288x3xf32> to vector<288x3xbf16>
    %c38 = arith.constant 38 : index
    %c0_47 = arith.constant 0 : index
    %78 = vector.load %arg9[%c38, %c0_47] : memref<326x3xf32, #tpu.memory_space<vmem>>, vector<288x3xf32>
    %79 = arith.truncf %78 : vector<288x3xf32> to vector<288x3xbf16>
    %80 = tpu.concatenate %63, %65, %67, %69, %71, %73, %75, %77, %79 in 1 : vector<288x3xbf16>, vector<288x3xbf16>, vector<288x3xbf16>, vector<288x3xbf16>, vector<288x3xbf16>, vector<288x3xbf16>, vector<288x3xbf16>, vector<288x3xbf16>, vector<288x3xbf16> -> vector<288x27xbf16>
    %c0_48 = arith.constant 0 : index
    %c0_49 = arith.constant 0 : index
    %81 = vector.load %arg2[%c0_48, %c0_49] : memref<27x16xbf16, #tpu.memory_space<vmem>>, vector<27x16xbf16>
    %cst_50 = arith.constant dense<0.000000e+00> : vector<288x16xf32>
    %82 = tpu.matmul %80, %81, %cst_50 {dimension_numbers = #tpu.dot_dimension_numbers<[1], [0], [0], [1], [0, 0, 1, 1], [], []>} : vector<288x27xbf16>, vector<27x16xbf16>, vector<288x16xf32> -> vector<288x16xf32>
    %c0_51 = arith.constant 0 : index
    %c0_52 = arith.constant 0 : index
    %83 = vector.load %arg3[%c0_51, %c0_52] : memref<1x16xf32, #tpu.memory_space<vmem>>, vector<1x16xf32>
    %84 = vector.broadcast %83 : vector<1x16xf32> to vector<288x16xf32>
    %85 = arith.addf %82, %84 : vector<288x16xf32>
    %cst_53 = arith.constant 0.000000e+00 : f32
    %86 = vector.broadcast %cst_53 : f32 to vector<288x16xf32>
    %87 = arith.maximumf %85, %86 : vector<288x16xf32>
    %c0_54 = arith.constant 0 : index
    %c0_55 = arith.constant 0 : index
    %88 = vector.load %arg10[%c0_54, %c0_55] : memref<306x16xf32, #tpu.memory_space<vmem>>, vector<288x16xf32>
    tpu.vector_store %arg10[%c0_54, %c0_55], %87 {strides = array<i32>} : memref<306x16xf32, #tpu.memory_space<vmem>>, vector<288x16xf32>,
    %c0_56 = arith.constant 0 : index
    %c0_57 = arith.constant 0 : index
    %89 = tpu.strided_load %arg10[%c0_56, %c0_57] {strides = array<i32: 2, 1>} : memref<306x16xf32, #tpu.memory_space<vmem>>, vector<144x16xf32>
    %c1_58 = arith.constant 1 : index
    %c0_59 = arith.constant 0 : index
    %90 = tpu.strided_load %arg10[%c1_58, %c0_59] {strides = array<i32: 2, 1>} : memref<306x16xf32, #tpu.memory_space<vmem>>, vector<144x16xf32>
    %c18_60 = arith.constant 18 : index
    %c0_61 = arith.constant 0 : index
    %91 = tpu.strided_load %arg10[%c18_60, %c0_61] {strides = array<i32: 2, 1>} : memref<306x16xf32, #tpu.memory_space<vmem>>, vector<144x16xf32>
    %c19_62 = arith.constant 19 : index
    %c0_63 = arith.constant 0 : index
    %92 = tpu.strided_load %arg10[%c19_62, %c0_63] {strides = array<i32: 2, 1>} : memref<306x16xf32, #tpu.memory_space<vmem>>, vector<144x16xf32>
    %93 = arith.maximumf %89, %90 : vector<144x16xf32>
    %94 = arith.maximumf %93, %91 : vector<144x16xf32>
    %95 = arith.maximumf %94, %92 : vector<144x16xf32>
    %96 = vector.extract_strided_slice %95 {offsets = [0, 0], sizes = [8, 16], strides = [1, 1]} : vector<144x16xf32> to vector<8x16xf32>
    %c11 = arith.constant 11 : index
    %c0_64 = arith.constant 0 : index
    %97 = vector.load %arg11[%c11, %c0_64] : memref<102x16xf32, #tpu.memory_space<vmem>>, vector<8x16xf32>
    tpu.vector_store %arg11[%c11, %c0_64], %96 {strides = array<i32>} : memref<102x16xf32, #tpu.memory_space<vmem>>, vector<8x16xf32>,
    %98 = vector.extract_strided_slice %95 {offsets = [18, 0], sizes = [8, 16], strides = [1, 1]} : vector<144x16xf32> to vector<8x16xf32>
    %c21 = arith.constant 21 : index
    %c0_65 = arith.constant 0 : index
    %99 = vector.load %arg11[%c21, %c0_65] : memref<102x16xf32, #tpu.memory_space<vmem>>, vector<8x16xf32>
    tpu.vector_store %arg11[%c21, %c0_65], %98 {strides = array<i32>} : memref<102x16xf32, #tpu.memory_space<vmem>>, vector<8x16xf32>,
    %100 = vector.extract_strided_slice %95 {offsets = [36, 0], sizes = [8, 16], strides = [1, 1]} : vector<144x16xf32> to vector<8x16xf32>
    %c31 = arith.constant 31 : index
    %c0_66 = arith.constant 0 : index
    %101 = vector.load %arg11[%c31, %c0_66] : memref<102x16xf32, #tpu.memory_space<vmem>>, vector<8x16xf32>
    tpu.vector_store %arg11[%c31, %c0_66], %100 {strides = array<i32>} : memref<102x16xf32, #tpu.memory_space<vmem>>, vector<8x16xf32>,
    %102 = vector.extract_strided_slice %95 {offsets = [54, 0], sizes = [8, 16], strides = [1, 1]} : vector<144x16xf32> to vector<8x16xf32>
    %c41 = arith.constant 41 : index
    %c0_67 = arith.constant 0 : index
    %103 = vector.load %arg11[%c41, %c0_67] : memref<102x16xf32, #tpu.memory_space<vmem>>, vector<8x16xf32>
    tpu.vector_store %arg11[%c41, %c0_67], %102 {strides = array<i32>} : memref<102x16xf32, #tpu.memory_space<vmem>>, vector<8x16xf32>,
    %104 = vector.extract_strided_slice %95 {offsets = [72, 0], sizes = [8, 16], strides = [1, 1]} : vector<144x16xf32> to vector<8x16xf32>
    %c51 = arith.constant 51 : index
    %c0_68 = arith.constant 0 : index
    %105 = vector.load %arg11[%c51, %c0_68] : memref<102x16xf32, #tpu.memory_space<vmem>>, vector<8x16xf32>
    tpu.vector_store %arg11[%c51, %c0_68], %104 {strides = array<i32>} : memref<102x16xf32, #tpu.memory_space<vmem>>, vector<8x16xf32>,
    %106 = vector.extract_strided_slice %95 {offsets = [90, 0], sizes = [8, 16], strides = [1, 1]} : vector<144x16xf32> to vector<8x16xf32>
    %c61 = arith.constant 61 : index
    %c0_69 = arith.constant 0 : index
    %107 = vector.load %arg11[%c61, %c0_69] : memref<102x16xf32, #tpu.memory_space<vmem>>, vector<8x16xf32>
    tpu.vector_store %arg11[%c61, %c0_69], %106 {strides = array<i32>} : memref<102x16xf32, #tpu.memory_space<vmem>>, vector<8x16xf32>,
    %108 = vector.extract_strided_slice %95 {offsets = [108, 0], sizes = [8, 16], strides = [1, 1]} : vector<144x16xf32> to vector<8x16xf32>
    %c71 = arith.constant 71 : index
    %c0_70 = arith.constant 0 : index
    %109 = vector.load %arg11[%c71, %c0_70] : memref<102x16xf32, #tpu.memory_space<vmem>>, vector<8x16xf32>
    tpu.vector_store %arg11[%c71, %c0_70], %108 {strides = array<i32>} : memref<102x16xf32, #tpu.memory_space<vmem>>, vector<8x16xf32>,
    %110 = vector.extract_strided_slice %95 {offsets = [126, 0], sizes = [8, 16], strides = [1, 1]} : vector<144x16xf32> to vector<8x16xf32>
    %c81 = arith.constant 81 : index
    %c0_71 = arith.constant 0 : index
    %111 = vector.load %arg11[%c81, %c0_71] : memref<102x16xf32, #tpu.memory_space<vmem>>, vector<8x16xf32>
    tpu.vector_store %arg11[%c81, %c0_71], %110 {strides = array<i32>} : memref<102x16xf32, #tpu.memory_space<vmem>>, vector<8x16xf32>,
    %c0_72 = arith.constant 0 : index
    %c0_73 = arith.constant 0 : index
    %112 = vector.load %arg11[%c0_72, %c0_73] : memref<102x16xf32, #tpu.memory_space<vmem>>, vector<80x16xf32>
    %113 = arith.truncf %112 : vector<80x16xf32> to vector<80x16xbf16>
    %c1_74 = arith.constant 1 : index
    %c0_75 = arith.constant 0 : index
    %114 = vector.load %arg11[%c1_74, %c0_75] : memref<102x16xf32, #tpu.memory_space<vmem>>, vector<80x16xf32>
    %115 = arith.truncf %114 : vector<80x16xf32> to vector<80x16xbf16>
    %c2_76 = arith.constant 2 : index
    %c0_77 = arith.constant 0 : index
    %116 = vector.load %arg11[%c2_76, %c0_77] : memref<102x16xf32, #tpu.memory_space<vmem>>, vector<80x16xf32>
    %117 = arith.truncf %116 : vector<80x16xf32> to vector<80x16xbf16>
    %c10 = arith.constant 10 : index
    %c0_78 = arith.constant 0 : index
    %118 = vector.load %arg11[%c10, %c0_78] : memref<102x16xf32, #tpu.memory_space<vmem>>, vector<80x16xf32>
    %119 = arith.truncf %118 : vector<80x16xf32> to vector<80x16xbf16>
    %c11_79 = arith.constant 11 : index
    %c0_80 = arith.constant 0 : index
    %120 = vector.load %arg11[%c11_79, %c0_80] : memref<102x16xf32, #tpu.memory_space<vmem>>, vector<80x16xf32>
    %121 = arith.truncf %120 : vector<80x16xf32> to vector<80x16xbf16>
    %c12 = arith.constant 12 : index
    %c0_81 = arith.constant 0 : index
    %122 = vector.load %arg11[%c12, %c0_81] : memref<102x16xf32, #tpu.memory_space<vmem>>, vector<80x16xf32>
    %123 = arith.truncf %122 : vector<80x16xf32> to vector<80x16xbf16>
    %c20_82 = arith.constant 20 : index
    %c0_83 = arith.constant 0 : index
    %124 = vector.load %arg11[%c20_82, %c0_83] : memref<102x16xf32, #tpu.memory_space<vmem>>, vector<80x16xf32>
    %125 = arith.truncf %124 : vector<80x16xf32> to vector<80x16xbf16>
    %c21_84 = arith.constant 21 : index
    %c0_85 = arith.constant 0 : index
    %126 = vector.load %arg11[%c21_84, %c0_85] : memref<102x16xf32, #tpu.memory_space<vmem>>, vector<80x16xf32>
    %127 = arith.truncf %126 : vector<80x16xf32> to vector<80x16xbf16>
    %c22 = arith.constant 22 : index
    %c0_86 = arith.constant 0 : index
    %128 = vector.load %arg11[%c22, %c0_86] : memref<102x16xf32, #tpu.memory_space<vmem>>, vector<80x16xf32>
    %129 = arith.truncf %128 : vector<80x16xf32> to vector<80x16xbf16>
    %130 = tpu.concatenate %113, %115, %117, %119, %121, %123, %125, %127, %129 in 1 : vector<80x16xbf16>, vector<80x16xbf16>, vector<80x16xbf16>, vector<80x16xbf16>, vector<80x16xbf16>, vector<80x16xbf16>, vector<80x16xbf16>, vector<80x16xbf16>, vector<80x16xbf16> -> vector<80x144xbf16>
    %c0_87 = arith.constant 0 : index
    %c0_88 = arith.constant 0 : index
    %131 = vector.load %arg4[%c0_87, %c0_88] : memref<144x32xbf16, #tpu.memory_space<vmem>>, vector<144x32xbf16>
    %cst_89 = arith.constant dense<0.000000e+00> : vector<80x32xf32>
    %132 = tpu.matmul %130, %131, %cst_89 {dimension_numbers = #tpu.dot_dimension_numbers<[1], [0], [0], [1], [0, 0, 1, 1], [], []>} : vector<80x144xbf16>, vector<144x32xbf16>, vector<80x32xf32> -> vector<80x32xf32>
    %c0_90 = arith.constant 0 : index
    %c0_91 = arith.constant 0 : index
    %133 = vector.load %arg5[%c0_90, %c0_91] : memref<1x32xf32, #tpu.memory_space<vmem>>, vector<1x32xf32>
    %134 = vector.broadcast %133 : vector<1x32xf32> to vector<80x32xf32>
    %135 = arith.addf %132, %134 : vector<80x32xf32>
    %cst_92 = arith.constant 0.000000e+00 : f32
    %136 = vector.broadcast %cst_92 : f32 to vector<80x32xf32>
    %137 = arith.maximumf %135, %136 : vector<80x32xf32>
    %c0_93 = arith.constant 0 : index
    %c0_94 = arith.constant 0 : index
    %138 = vector.load %arg12[%c0_93, %c0_94] : memref<90x32xf32, #tpu.memory_space<vmem>>, vector<80x32xf32>
    tpu.vector_store %arg12[%c0_93, %c0_94], %137 {strides = array<i32>} : memref<90x32xf32, #tpu.memory_space<vmem>>, vector<80x32xf32>,
    %c0_95 = arith.constant 0 : index
    %c0_96 = arith.constant 0 : index
    %139 = tpu.strided_load %arg12[%c0_95, %c0_96] {strides = array<i32: 2, 1>} : memref<90x32xf32, #tpu.memory_space<vmem>>, vector<40x32xf32>
    %c1_97 = arith.constant 1 : index
    %c0_98 = arith.constant 0 : index
    %140 = tpu.strided_load %arg12[%c1_97, %c0_98] {strides = array<i32: 2, 1>} : memref<90x32xf32, #tpu.memory_space<vmem>>, vector<40x32xf32>
    %c10_99 = arith.constant 10 : index
    %c0_100 = arith.constant 0 : index
    %141 = tpu.strided_load %arg12[%c10_99, %c0_100] {strides = array<i32: 2, 1>} : memref<90x32xf32, #tpu.memory_space<vmem>>, vector<40x32xf32>
    %c11_101 = arith.constant 11 : index
    %c0_102 = arith.constant 0 : index
    %142 = tpu.strided_load %arg12[%c11_101, %c0_102] {strides = array<i32: 2, 1>} : memref<90x32xf32, #tpu.memory_space<vmem>>, vector<40x32xf32>
    %143 = arith.maximumf %139, %140 : vector<40x32xf32>
    %144 = arith.maximumf %143, %141 : vector<40x32xf32>
    %145 = arith.maximumf %144, %142 : vector<40x32xf32>
    %146 = vector.extract_strided_slice %145 {offsets = [0, 0], sizes = [4, 32], strides = [1, 1]} : vector<40x32xf32> to vector<4x32xf32>
    %c7 = arith.constant 7 : index
    %c0_103 = arith.constant 0 : index
    %147 = vector.load %arg13[%c7, %c0_103] : memref<38x32xf32, #tpu.memory_space<vmem>>, vector<4x32xf32>
    tpu.vector_store %arg13[%c7, %c0_103], %146 {strides = array<i32>} : memref<38x32xf32, #tpu.memory_space<vmem>>, vector<4x32xf32>,
    %148 = vector.extract_strided_slice %145 {offsets = [10, 0], sizes = [4, 32], strides = [1, 1]} : vector<40x32xf32> to vector<4x32xf32>
    %c13 = arith.constant 13 : index
    %c0_104 = arith.constant 0 : index
    %149 = vector.load %arg13[%c13, %c0_104] : memref<38x32xf32, #tpu.memory_space<vmem>>, vector<4x32xf32>
    tpu.vector_store %arg13[%c13, %c0_104], %148 {strides = array<i32>} : memref<38x32xf32, #tpu.memory_space<vmem>>, vector<4x32xf32>,
    %150 = vector.extract_strided_slice %145 {offsets = [20, 0], sizes = [4, 32], strides = [1, 1]} : vector<40x32xf32> to vector<4x32xf32>
    %c19_105 = arith.constant 19 : index
    %c0_106 = arith.constant 0 : index
    %151 = vector.load %arg13[%c19_105, %c0_106] : memref<38x32xf32, #tpu.memory_space<vmem>>, vector<4x32xf32>
    tpu.vector_store %arg13[%c19_105, %c0_106], %150 {strides = array<i32>} : memref<38x32xf32, #tpu.memory_space<vmem>>, vector<4x32xf32>,
    %152 = vector.extract_strided_slice %145 {offsets = [30, 0], sizes = [4, 32], strides = [1, 1]} : vector<40x32xf32> to vector<4x32xf32>
    %c25 = arith.constant 25 : index
    %c0_107 = arith.constant 0 : index
    %153 = vector.load %arg13[%c25, %c0_107] : memref<38x32xf32, #tpu.memory_space<vmem>>, vector<4x32xf32>
    tpu.vector_store %arg13[%c25, %c0_107], %152 {strides = array<i32>} : memref<38x32xf32, #tpu.memory_space<vmem>>, vector<4x32xf32>,
    %c0_108 = arith.constant 0 : index
    %c0_109 = arith.constant 0 : index
    %154 = vector.load %arg13[%c0_108, %c0_109] : memref<38x32xf32, #tpu.memory_space<vmem>>, vector<24x32xf32>
    %155 = arith.truncf %154 : vector<24x32xf32> to vector<24x32xbf16>
    %c1_110 = arith.constant 1 : index
    %c0_111 = arith.constant 0 : index
    %156 = vector.load %arg13[%c1_110, %c0_111] : memref<38x32xf32, #tpu.memory_space<vmem>>, vector<24x32xf32>
    %157 = arith.truncf %156 : vector<24x32xf32> to vector<24x32xbf16>
    %c2_112 = arith.constant 2 : index
    %c0_113 = arith.constant 0 : index
    %158 = vector.load %arg13[%c2_112, %c0_113] : memref<38x32xf32, #tpu.memory_space<vmem>>, vector<24x32xf32>
    %159 = arith.truncf %158 : vector<24x32xf32> to vector<24x32xbf16>
    %c6 = arith.constant 6 : index
    %c0_114 = arith.constant 0 : index
    %160 = vector.load %arg13[%c6, %c0_114] : memref<38x32xf32, #tpu.memory_space<vmem>>, vector<24x32xf32>
    %161 = arith.truncf %160 : vector<24x32xf32> to vector<24x32xbf16>
    %c7_115 = arith.constant 7 : index
    %c0_116 = arith.constant 0 : index
    %162 = vector.load %arg13[%c7_115, %c0_116] : memref<38x32xf32, #tpu.memory_space<vmem>>, vector<24x32xf32>
    %163 = arith.truncf %162 : vector<24x32xf32> to vector<24x32xbf16>
    %c8 = arith.constant 8 : index
    %c0_117 = arith.constant 0 : index
    %164 = vector.load %arg13[%c8, %c0_117] : memref<38x32xf32, #tpu.memory_space<vmem>>, vector<24x32xf32>
    %165 = arith.truncf %164 : vector<24x32xf32> to vector<24x32xbf16>
    %c12_118 = arith.constant 12 : index
    %c0_119 = arith.constant 0 : index
    %166 = vector.load %arg13[%c12_118, %c0_119] : memref<38x32xf32, #tpu.memory_space<vmem>>, vector<24x32xf32>
    %167 = arith.truncf %166 : vector<24x32xf32> to vector<24x32xbf16>
    %c13_120 = arith.constant 13 : index
    %c0_121 = arith.constant 0 : index
    %168 = vector.load %arg13[%c13_120, %c0_121] : memref<38x32xf32, #tpu.memory_space<vmem>>, vector<24x32xf32>
    %169 = arith.truncf %168 : vector<24x32xf32> to vector<24x32xbf16>
    %c14 = arith.constant 14 : index
    %c0_122 = arith.constant 0 : index
    %170 = vector.load %arg13[%c14, %c0_122] : memref<38x32xf32, #tpu.memory_space<vmem>>, vector<24x32xf32>
    %171 = arith.truncf %170 : vector<24x32xf32> to vector<24x32xbf16>
    %172 = tpu.concatenate %155, %157, %159, %161, %163, %165, %167, %169, %171 in 1 : vector<24x32xbf16>, vector<24x32xbf16>, vector<24x32xbf16>, vector<24x32xbf16>, vector<24x32xbf16>, vector<24x32xbf16>, vector<24x32xbf16>, vector<24x32xbf16>, vector<24x32xbf16> -> vector<24x288xbf16>
    %c0_123 = arith.constant 0 : index
    %c0_124 = arith.constant 0 : index
    %173 = vector.load %arg6[%c0_123, %c0_124] : memref<288x64xbf16, #tpu.memory_space<vmem>>, vector<288x64xbf16>
    %cst_125 = arith.constant dense<0.000000e+00> : vector<24x64xf32>
    %174 = tpu.matmul %172, %173, %cst_125 {dimension_numbers = #tpu.dot_dimension_numbers<[1], [0], [0], [1], [0, 0, 1, 1], [], []>} : vector<24x288xbf16>, vector<288x64xbf16>, vector<24x64xf32> -> vector<24x64xf32>
    %c0_126 = arith.constant 0 : index
    %c0_127 = arith.constant 0 : index
    %175 = vector.load %arg7[%c0_126, %c0_127] : memref<1x64xf32, #tpu.memory_space<vmem>>, vector<1x64xf32>
    %176 = vector.broadcast %175 : vector<1x64xf32> to vector<24x64xf32>
    %177 = arith.addf %174, %176 : vector<24x64xf32>
    %cst_128 = arith.constant 0.000000e+00 : f32
    %178 = vector.broadcast %cst_128 : f32 to vector<24x64xf32>
    %179 = arith.maximumf %177, %178 : vector<24x64xf32>
    %c0_129 = arith.constant 0 : index
    %c0_130 = arith.constant 0 : index
    %180 = vector.load %arg14[%c0_129, %c0_130] : memref<30x64xf32, #tpu.memory_space<vmem>>, vector<24x64xf32>
    tpu.vector_store %arg14[%c0_129, %c0_130], %179 {strides = array<i32>} : memref<30x64xf32, #tpu.memory_space<vmem>>, vector<24x64xf32>,
    %c0_131 = arith.constant 0 : index
    %c0_132 = arith.constant 0 : index
    %181 = tpu.strided_load %arg14[%c0_131, %c0_132] {strides = array<i32: 2, 1>} : memref<30x64xf32, #tpu.memory_space<vmem>>, vector<12x64xf32>
    %c1_133 = arith.constant 1 : index
    %c0_134 = arith.constant 0 : index
    %182 = tpu.strided_load %arg14[%c1_133, %c0_134] {strides = array<i32: 2, 1>} : memref<30x64xf32, #tpu.memory_space<vmem>>, vector<12x64xf32>
    %c6_135 = arith.constant 6 : index
    %c0_136 = arith.constant 0 : index
    %183 = tpu.strided_load %arg14[%c6_135, %c0_136] {strides = array<i32: 2, 1>} : memref<30x64xf32, #tpu.memory_space<vmem>>, vector<12x64xf32>
    %c7_137 = arith.constant 7 : index
    %c0_138 = arith.constant 0 : index
    %184 = tpu.strided_load %arg14[%c7_137, %c0_138] {strides = array<i32: 2, 1>} : memref<30x64xf32, #tpu.memory_space<vmem>>, vector<12x64xf32>
    %185 = arith.maximumf %181, %182 : vector<12x64xf32>
    %186 = arith.maximumf %185, %183 : vector<12x64xf32>
    %187 = arith.maximumf %186, %184 : vector<12x64xf32>
    %188 = vector.extract_strided_slice %187 {offsets = [0, 0], sizes = [2, 64], strides = [1, 1]} : vector<12x64xf32> to vector<2x64xf32>
    %c0_139 = arith.constant 0 : index
    %c0_140 = arith.constant 0 : index
    %c0_141 = arith.constant 0 : index
    %c0_142 = arith.constant 0 : index
    %189 = vector.load %arg8[%c0_139, %c0_140, %c0_141, %c0_142] : memref<1x2x2x64xf32, #tpu.memory_space<vmem>>, vector<1x1x2x64xf32>
    %190 = vector.shape_cast %189 : vector<1x1x2x64xf32> to vector<2x64xf32>
    %191 = vector.shape_cast %188 : vector<2x64xf32> to vector<1x1x2x64xf32>
    tpu.vector_store %arg8[%c0_139, %c0_140, %c0_141, %c0_142], %191 {strides = array<i32>} : memref<1x2x2x64xf32, #tpu.memory_space<vmem>>, vector<1x1x2x64xf32>,
    %192 = vector.extract_strided_slice %187 {offsets = [6, 0], sizes = [2, 64], strides = [1, 1]} : vector<12x64xf32> to vector<2x64xf32>
    %c0_143 = arith.constant 0 : index
    %c1_144 = arith.constant 1 : index
    %c0_145 = arith.constant 0 : index
    %c0_146 = arith.constant 0 : index
    %193 = vector.load %arg8[%c0_143, %c1_144, %c0_145, %c0_146] : memref<1x2x2x64xf32, #tpu.memory_space<vmem>>, vector<1x1x2x64xf32>
    %194 = vector.shape_cast %193 : vector<1x1x2x64xf32> to vector<2x64xf32>
    %195 = vector.shape_cast %192 : vector<2x64xf32> to vector<1x1x2x64xf32>
    tpu.vector_store %arg8[%c0_143, %c1_144, %c0_145, %c0_146], %195 {strides = array<i32>} : memref<1x2x2x64xf32, #tpu.memory_space<vmem>>, vector<1x1x2x64xf32>,
    return
  }
  func.func @transform_0(%arg0: i32) -> (i32, i32, i32, i32) {
    %c0_i32 = arith.constant 0 : i32
    %c0_i32_0 = arith.constant 0 : i32
    %c0_i32_1 = arith.constant 0 : i32
    %c0_i32_2 = arith.constant 0 : i32
    return %arg0, %c0_i32, %c0_i32_0, %c0_i32_1 : i32, i32, i32, i32
  }
  func.func @transform_1(%arg0: i32) -> (i32, i32) {
    %c0_i32 = arith.constant 0 : i32
    %c0_i32_0 = arith.constant 0 : i32
    %c0_i32_1 = arith.constant 0 : i32
    return %c0_i32, %c0_i32_0 : i32, i32
  }
  func.func @transform_2(%arg0: i32) -> (i32, i32) {
    %c0_i32 = arith.constant 0 : i32
    %c0_i32_0 = arith.constant 0 : i32
    %c0_i32_1 = arith.constant 0 : i32
    return %c0_i32, %c0_i32_0 : i32, i32
  }
  func.func @transform_3(%arg0: i32) -> (i32, i32) {
    %c0_i32 = arith.constant 0 : i32
    %c0_i32_0 = arith.constant 0 : i32
    %c0_i32_1 = arith.constant 0 : i32
    return %c0_i32, %c0_i32_0 : i32, i32
  }
  func.func @transform_4(%arg0: i32) -> (i32, i32) {
    %c0_i32 = arith.constant 0 : i32
    %c0_i32_0 = arith.constant 0 : i32
    %c0_i32_1 = arith.constant 0 : i32
    return %c0_i32, %c0_i32_0 : i32, i32
  }
  func.func @transform_5(%arg0: i32) -> (i32, i32) {
    %c0_i32 = arith.constant 0 : i32
    %c0_i32_0 = arith.constant 0 : i32
    %c0_i32_1 = arith.constant 0 : i32
    return %c0_i32, %c0_i32_0 : i32, i32
  }
  func.func @transform_6(%arg0: i32) -> (i32, i32) {
    %c0_i32 = arith.constant 0 : i32
    %c0_i32_0 = arith.constant 0 : i32
    %c0_i32_1 = arith.constant 0 : i32
    return %c0_i32, %c0_i32_0 : i32, i32
  }
  func.func @transform_7(%arg0: i32) -> (i32, i32, i32, i32) {
    %c0_i32 = arith.constant 0 : i32
    %c0_i32_0 = arith.constant 0 : i32
    %c0_i32_1 = arith.constant 0 : i32
    %c0_i32_2 = arith.constant 0 : i32
    return %arg0, %c0_i32, %c0_i32_0, %c0_i32_1 : i32, i32, i32, i32
  }
}

</mosaic_0001>

<bundles_post_ra>
// kernel: tpu_custom_call.1
= control target key start
LH: loop header
LB: loop body
LE: loop exit
PB: predicated region body
PF: predicated region fallthrough
CT: control target
= control target key end

     0   :  { %12 = vsyncpa [#allocation9], 0  ;;  %s4642_s0 = inlined_call_operand.vmem [shape: f32[2,16,16,3], index: 0, kind: input, shape index: {}]   ;;  %s4643_s1 = inlined_call_operand.vmem [shape: bf16[27,16], index: 1, kind: input, shape index: {}]   ;;  %s4644_s2 = inlined_call_operand.vmem [shape: f32[1,16], index: 2, kind: input, shape index: {}]   ;;  %s4645_s3 = inlined_call_operand.vmem [shape: bf16[144,32], index: 3, kind: input, shape index: {}]   ;;  %s4646_s4 = inlined_call_operand.vmem [shape: f32[1,32], index: 4, kind: input, shape index: {}]   ;;  %s4647_s5 = inlined_call_operand.vmem [shape: bf16[288,64], index: 5, kind: input, shape index: {}]   ;;  %s4648_s6 = inlined_call_operand.vmem [shape: f32[1,64], index: 6, kind: input, shape index: {}]   ;;  %s4649_s7 = inlined_call_operand.hbm [shape: f32[2,2,2,64], index: 7, kind: output, shape index: {}]  }
   0x1   :  { %14 = vsyncpa [#allocation9 + $0x1], 0  ;;  %s3445_s24 = smov 0   ;;  %s3447_s25 = smov 0  }
   0x2   :  { %s3449_s26 = smov 0   ;;  %s3451_s27 = smov 0  }
   0x3 LB: > { %s3466_s28 = sadd.s32 4294967295, %s3383_s27   ;;  %s3062_s29 = sadd.s32 4294967294, %s3383_s27   ;;  %s3383_s27 = sphi %s3451_s27, %s4655_s27   ;;  %s3379_s26 = sphi %s3449_s26, %s4654_s26   ;;  %s3375_s25 = sphi %s3447_s25, %s4653_s25   ;;  %s3371_s24 = sphi %s3445_s24, %s4652_s24  }
   0x4   : > { %s3470_s30 = sadd.s32 1, %s3383_s27   ;;  %s179_s8 = sadd.s32 1, %s3379_s26 }
   0x5   : > { %s176_s9 = ssub.s32 %s3383_s27, %s3470_s30  ;;  %p189_p0 = scmp.ne.s32.totalorder %s3379_s26, %s3375_s25 }
   0x6   : > { %p177_p1 = scmp.eq.s32.totalorder %s176_s9, 0  ;;  %p190_p2 = scmp.eq.s32.totalorder %s3466_s28, 1 }
   0x7   : > { %p195_p3 = scmp.ne.s32.totalorder %s3375_s25, %s3371_s24  ;;  %p196_p4 = scmp.eq.s32.totalorder %s3062_s29, 1 }
   0x8   : > { %s3481_s10 = scalar_select %p177_p1, %s3379_s26, %s179_s8  }
   0x9   : > { %p3483_p5 = por %p190_p2, %p189_p0  ;;  %p3487_p6 = por %p196_p4, %p195_p3 }
   0xa   : > { %p3065_p7 = scmp.ge.s32.totalorder %s3383_s27, 1  ;;  %p240_p8 = scmp.lt.s32.totalorder %s3383_s27, 3 }
   0xc   : > { %p241_p9 = pnand %p3065_p7, %p240_p8 }
   0xd   : > { %vm278_vm0 = vcmask (!%p241_p9), 23552   ;;  %v3385_v0 = vmov (!%p241_p9), 0.0   ;;  %p272_p10 = scmp.lt.s32.totalorder (!%p241_p9), %s3466_s28, 1  ;;  %s3386_s18 = smov (!%p241_p9), 6   ;;  %vm1620_vm1 = vcmask (!%p241_p9), 1044480   ;;  %vm1621_vm2 = vcmask (!%p241_p9), 1045504  }
   0xe   : > { %244 = sbr.rel (%p241_p9) target bundleno = 1439 (0x59f), region = 48  ;;  %279 = vst.msk [vmem:[#allocation2] sm:$0xff] (!%p241_p9), %vm278_vm0, %v3385_v0  ;;  %280 = vst.msk [vmem:[#allocation2 + $0x8] sm:$0xff] (!%p241_p9), %vm278_vm0, %v3385_v0  ;;  %s3387_s19 = smov (!%p241_p9), 3   ;;  %vm1302_vm3 = vcmask (!%p241_p9), 48128   ;;  %vm1339_vm4 = vcmask (!%p241_p9), 72704  }
   0xf   : > { %281 = vst.msk [vmem:[#allocation2 + $0x10] sm:$0xff] (!%p241_p9), %vm278_vm0, %v3385_v0  ;;  %282 = vst.msk [vmem:[#allocation2 + $0x18] sm:$0xff] (!%p241_p9), %vm278_vm0, %v3385_v0  ;;  %s3388_s20 = smov (!%p241_p9), 9   ;;  %s3389_s21 = smov (!%p241_p9), 12   ;;  %vm1376_vm5 = vcmask (!%p241_p9), 97280   ;;  %vm1413_vm6 = vcmask (!%p241_p9), 121856  }
  0x10   : > { %283 = vst.msk [vmem:[#allocation2 + $0x20] sm:$0xff] (!%p241_p9), %vm278_vm0, %v3385_v0  ;;  %284 = vst.msk [vmem:[#allocation2 + $0x28] sm:$0xff] (!%p241_p9), %vm278_vm0, %v3385_v0  ;;  %s3390_s22 = smov (!%p241_p9), 15   ;;  %s3391_s23 = smov (!%p241_p9), 18   ;;  %vm319_vm7 = vcmask (!%p241_p9), 21504   ;;  %vm1450_vm8 = vcmask (!%p241_p9), 146432  }
  0x11   : > { %285 = vst.msk [vmem:[#allocation2 + $0x30] sm:$0xff] (!%p241_p9), %vm278_vm0, %v3385_v0  ;;  %286 = vst.msk [vmem:[#allocation2 + $0x38] sm:$0xff] (!%p241_p9), %vm278_vm0, %v3385_v0  ;;  %s3392_s29 = smov (!%p241_p9), 21   ;;  %s3393_s8 = smov (!%p241_p9), 24   ;;  %vm1487_vm9 = vcmask (!%p241_p9), 171008   ;;  %vm1524_vm10 = vcmask (!%p241_p9), 195584  }
  0x12   : > { %287 = vst.msk [vmem:[#allocation2 + $0x40] sm:$0xff] (!%p241_p9), %vm278_vm0, %v3385_v0  ;;  %288 = vst.msk [vmem:[#allocation2 + $0x48] sm:$0xff] (!%p241_p9), %vm278_vm0, %v3385_v0  ;;  %vm1583_vm11 = vcmask (!%p241_p9), 220160   ;;  %vm321_vm12 = vcmask (!%p241_p9), 130048   ;;  %vm360_vm13 = vcmask (!%p241_p9), 123904   ;;  %vm374_vm14 = vcmask (!%p241_p9), 128000  }
  0x13   : > { %289 = vst.msk [vmem:[#allocation2 + $0x50] sm:$0xff] (!%p241_p9), %vm278_vm0, %v3385_v0  ;;  %290 = vst.msk [vmem:[#allocation2 + $0x58] sm:$0xff] (!%p241_p9), %vm278_vm0, %v3385_v0  ;;  %vm376_vm15 = vcmask (!%p241_p9), 261120   ;;  %s3399_s15 = smov (!%p241_p9), 48   ;;  %s3400_s16 = smov (!%p241_p9), 80  }
  0x14   : > { %291 = vst.msk [vmem:[#allocation2 + $0x60] sm:$0xff] (!%p241_p9), %vm278_vm0, %v3385_v0  ;;  %292 = vst.msk [vmem:[#allocation2 + $0x68] sm:$0xff] (!%p241_p9), %vm278_vm0, %v3385_v0  ;;  %s3133_s9 = sshll.u32 (!%p241_p9), %s3466_s28, 6 }
  0x15   : > { %293 = vst.msk [vmem:[#allocation2 + $0x70] sm:$0xff] %vm278_vm0, %v3385_v0  ;;  %294 = vst.msk [vmem:[#allocation2 + $0x78] sm:$0xff] %vm278_vm0, %v3385_v0  ;;  %s273_s13 = scalar_select %p272_p10, %s3466_s28, 1  ;;  %v574_v4 = vld [vmem:[#allocation2 + $0x2] sm:$0xff] }
  0x16   : > { %295 = vst.msk [vmem:[#allocation2 + $0x80] sm:$0xff] %vm278_vm0, %v3385_v0  ;;  %296 = vst.msk [vmem:[#allocation2 + $0x88] sm:$0xff] %vm278_vm0, %v3385_v0  ;;  %v575_v5 = vld [vmem:[#allocation2 + $0xa] sm:$0xff]  ;;  %v520_v6 = vld [vmem:[#allocation2 + $0x1] sm:$0xff] }
  0x17   : > { %297 = vst.msk [vmem:[#allocation2 + $0x90] sm:$0xff] %vm278_vm0, %v3385_v0  ;;  %298 = vst.msk [vmem:[#allocation2 + $0x98] sm:$0xff] %vm278_vm0, %v3385_v0  ;;  %s3132_s14 = sshll.u32 %s273_s13, 8  ;;  %v610_v7 = vpack.c.bf16 %v575_v5, %v574_v4  ;;  %v521_v8 = vld [vmem:[#allocation2 + $0x9] sm:$0xff] }
  0x18   : > { %299 = vst.msk [vmem:[#allocation2 + $0xa0] sm:$0xff] %vm278_vm0, %v3385_v0  ;;  %300 = vst.msk [vmem:[#allocation2 + $0xa8] sm:$0xff] %vm278_vm0, %v3385_v0  ;;  %s3578_s17 = scalar_lea.vmem %s4642_s0, %s3132_s14  ;;  %v556_v11 = vpack.c.bf16 %v521_v8, %v520_v6  ;;  %s3398_s14 = smov 64  }
  0x19   : > { %301 = vst.msk [vmem:[#allocation2 + $0xb0] sm:$0xff] %vm278_vm0, %v3385_v0  ;;  %302 = vst.msk [vmem:[#allocation2 + $0xb8] sm:$0xff] %vm278_vm0, %v3385_v0  ;;  %v402_v1 = vld [vmem:[%s3578_s17] sm:$0xff]  ;;  %v403_v2 = vld [vmem:[%s3578_s17 + $0x8] sm:$0xff]  ;;  %922 = vrot.lane.b32.xlu1 %v610_v7, %s3386_s18 }
  0x1a   : > { %303 = vst.msk [vmem:[#allocation2 + $0xc0] sm:$0xff] %vm278_vm0, %v3385_v0  ;;  %304 = vst.msk [vmem:[#allocation2 + $0xc8] sm:$0xff] %vm278_vm0, %v3385_v0  ;;  %v404_v3 = vld [vmem:[%s3578_s17 + $0x10] sm:$0xff]  ;;  %v405_v9 = vld [vmem:[%s3578_s17 + $0x18] sm:$0xff]  ;;  %868 = vrot.lane.b32.xlu0 %v556_v11, %s3387_s19 }
  0x1b   : > { %305 = vst.msk [vmem:[#allocation2 + $0xd0] sm:$0xff] %vm278_vm0, %v3385_v0  ;;  %306 = vst.msk [vmem:[#allocation2 + $0xd8] sm:$0xff] %vm278_vm0, %v3385_v0  ;;  %v406_v10 = vld [vmem:[%s3578_s17 + $0x20] sm:$0xff]  ;;  %v407_v12 = vld [vmem:[%s3578_s17 + $0x28] sm:$0xff] }
  0x1c   : > { %307 = vst.msk [vmem:[#allocation2 + $0xe0] sm:$0xff] %vm278_vm0, %v3385_v0  ;;  %308 = vst.msk [vmem:[#allocation2 + $0xe8] sm:$0xff] %vm278_vm0, %v3385_v0  ;;  %v408_v13 = vld [vmem:[%s3578_s17 + $0x30] sm:$0xff]  ;;  %v409_v14 = vld [vmem:[%s3578_s17 + $0x38] sm:$0xff] }
  0x1d   : > { %309 = vst.msk [vmem:[#allocation2 + $0xf0] sm:$0xff] %vm278_vm0, %v3385_v0  ;;  %310 = vst.msk [vmem:[#allocation2 + $0xf8] sm:$0xff] %vm278_vm0, %v3385_v0  ;;  %v410_v15 = vld [vmem:[%s3578_s17 + $0x40] sm:$0xff]  ;;  %v411_v16 = vld [vmem:[%s3578_s17 + $0x48] sm:$0xff] }
  0x1e   : > { %311 = vst.msk [vmem:[#allocation2 + $0x100] sm:$0xff] %vm278_vm0, %v3385_v0  ;;  %312 = vst.msk [vmem:[#allocation2 + $0x108] sm:$0xff] %vm278_vm0, %v3385_v0  ;;  %v412_v17 = vld [vmem:[%s3578_s17 + $0x50] sm:$0xff]  ;;  %v413_v18 = vld [vmem:[%s3578_s17 + $0x58] sm:$0xff] }
  0x1f   : > { %313 = vst.msk [vmem:[#allocation2 + $0x110] sm:$0xff] %vm278_vm0, %v3385_v0  ;;  %314 = vst.msk [vmem:[#allocation2 + $0x118] sm:$0xff] %vm278_vm0, %v3385_v0  ;;  %v414_v19 = vld [vmem:[%s3578_s17 + $0x60] sm:$0xff]  ;;  %v415_v20 = vld [vmem:[%s3578_s17 + $0x68] sm:$0xff] }
  0x20   : > { %315 = vst.msk [vmem:[#allocation2 + $0x120] sm:$0xff] %vm278_vm0, %v3385_v0  ;;  %316 = vst.msk [vmem:[#allocation2 + $0x128] sm:$0xff] %vm278_vm0, %v3385_v0  ;;  %v416_v21 = vld [vmem:[%s3578_s17 + $0x70] sm:$0xff]  ;;  %v417_v22 = vld [vmem:[%s3578_s17 + $0x78] sm:$0xff] }
  0x21   : > { %317 = vst.msk [vmem:[#allocation2 + $0x130] sm:$0xff] %vm278_vm0, %v3385_v0  ;;  %318 = vst.msk [vmem:[#allocation2 + $0x138] sm:$0xff] %vm278_vm0, %v3385_v0  ;;  %v418_v23 = vld [vmem:[%s3578_s17 + $0x80] sm:$0xff]  ;;  %v419_v24 = vld [vmem:[%s3578_s17 + $0x88] sm:$0xff] }
  0x22   : > { %434 = vst.msk [vmem:[#allocation2 + $0x13] sm:$0xff] %vm278_vm0, %v402_v1  ;;  %435 = vst.msk [vmem:[#allocation2 + $0x1b] sm:$0xff] %vm278_vm0, %v403_v2 }
  0x23   : > { %436 = vst.msk [vmem:[#allocation2 + $0x25] sm:$0xff] %vm278_vm0, %v404_v3  ;;  %437 = vst.msk [vmem:[#allocation2 + $0x2d] sm:$0xff] %vm278_vm0, %v405_v9  ;;  %v3394_v9 = vmov 65535  }
  0x24   : > { %438 = vst.msk [vmem:[#allocation2 + $0x37] sm:$0xff] %vm278_vm0, %v406_v10  ;;  %439 = vst.msk [vmem:[#allocation2 + $0x3f] sm:$0xff] %vm278_vm0, %v407_v12  ;;  %v1622_v10 = vsel %vm1620_vm1, 4294967295, %v3394_v9  ;;  %v3292_v12 = vld [vmem:[%s4643_s1] sm:$0xff]   ;;  %vm396_vm1 = vcmask 523264  }
  0x25   : > { %440 = vst.msk [vmem:[#allocation2 + $0x49] sm:$0xff] %vm278_vm0, %v408_v13  ;;  %441 = vst.msk [vmem:[#allocation2 + $0x51] sm:$0xff] %vm278_vm0, %v409_v14  ;;  %3186 = vmatprep.subr.bf16.mxu0 %v3292_v12 }
  0x26   : > { %442 = vst.msk [vmem:[#allocation2 + $0x5b] sm:$0xff] %vm278_vm0, %v410_v15  ;;  %443 = vst.msk [vmem:[#allocation2 + $0x63] sm:$0xff] %vm278_vm0, %v411_v16  ;;  %v1623_v15 = vsel %vm1621_vm2, %v1622_v10, 0  ;;  %3187 = vmatpush3.bf16.msra.mxu0 %v3292_v12  ;;  %vm2033_vm2 = vcmask 130052  }
  0x27   : > { %444 = vst.msk [vmem:[#allocation2 + $0x6d] sm:$0xff] %vm278_vm0, %v412_v17  ;;  %445 = vst.msk [vmem:[#allocation2 + $0x75] sm:$0xff] %vm278_vm0, %v413_v18  ;;  %v3293_v18 = vld [vmem:[%s4643_s1 + $0x8] sm:$0x3f]  }
  0x28   : > { %446 = vst.msk [vmem:[#allocation2 + $0x7f] sm:$0xff] %vm278_vm0, %v414_v19  ;;  %447 = vst.msk [vmem:[#allocation2 + $0x87] sm:$0xff] %vm278_vm0, %v415_v20  ;;  %v1625_v20 = vand.u32 %v3293_v18, %v1623_v15 }
  0x29   : > { %448 = vst.msk [vmem:[#allocation2 + $0x91] sm:$0xff] %vm278_vm0, %v416_v21  ;;  %v576_v25 = vld [vmem:[#allocation2 + $0x12] sm:$0xff]  ;;  %v577_v26 = vld [vmem:[#allocation2 + $0x1a] sm:$0xff]  ;;  %449 = vst.msk [vmem:[#allocation2 + $0x99] sm:$0xff] %vm278_vm0, %v417_v22 }
  0x2a   : > { %v522_v27 = vld [vmem:[#allocation2 + $0x11] sm:$0xff]  ;;  %450 = vst.msk [vmem:[#allocation2 + $0xa3] sm:$0xff] %vm278_vm0, %v418_v23  ;;  %451 = vst.msk [vmem:[#allocation2 + $0xab] sm:$0xff] %vm278_vm0, %v419_v24  ;;  %v611_v28 = vpack.c.bf16 %v577_v26, %v576_v25  ;;  %v523_v29 = vld [vmem:[#allocation2 + $0x19] sm:$0xff]  ;;  %3188 = vmatprep.subr.bf16.mxu0 %v1625_v20 }
  0x2b   : > { %v578_v30 = vld [vmem:[#allocation2 + $0x22] sm:$0xff]  ;;  %v557_v31 = vpack.c.bf16 %v523_v29, %v522_v27  ;;  %v579_v32 = vld [vmem:[#allocation2 + $0x2a] sm:$0xff]  ;;  %v631_v36 = vld [vmem:[#allocation2 + $0x13] sm:$0xff]  ;;  %3189 = vmatpush3.bf16.msra.mxu0 %v1625_v20  ;;  %320 = vst.msk [vmem:[#allocation2 + $0x140] sm:$0x3f] %vm319_vm7, %v3385_v0  ;;  %vm2326_vm7 = vcmask 785408  }
  0x2c   : > { %924 = vrot.lane.b32.xlu1 %v611_v28, %s3386_s18  ;;  %v3619_v33 = vpack.c.bf16 %v579_v32, %v578_v30  ;;  %v633_v34 = vld [vmem:[#allocation2 + $0x23] sm:$0xff]  ;;  %v634_v35 = vld [vmem:[#allocation2 + $0x2b] sm:$0xff]  ;;  %v632_v37 = vld [vmem:[#allocation2 + $0x1b] sm:$0xff]  ;;  %324 = vst.msk [vmem:[#allocation3 + $0x10] sm:$0xff] %vm321_vm12, %v3385_v0 }
  0x2d   : > { %870 = vrot.lane.b32.xlu0 %v557_v31, %s3387_s19  ;;  %v668_v38 = vpack.c.bf16 %v634_v35, %v633_v34  ;;  %v667_v39 = vpack.c.bf16 %v632_v37, %v631_v36  ;;  %v687_v40 = vld [vmem:[#allocation2 + $0x24] sm:$0xff]  ;;  %v688_v41 = vld [vmem:[#allocation2 + $0x2c] sm:$0xff]  ;;  %v685_v42 = vld [vmem:[#allocation2 + $0x14] sm:$0xff]  ;;  %322 = vst.msk [vmem:[#allocation3] sm:$0xff] %vm321_vm12, %v3385_v0 }
  0x2e   : > { %v686_v43 = vld [vmem:[#allocation2 + $0x1c] sm:$0xff]  ;;  %v722_v44 = vpack.c.bf16 %v688_v41, %v687_v40  ;;  %v689_v46 = vld [vmem:[#allocation2 + $0x34] sm:$0xff]  ;;  %v742_v51 = vld [vmem:[#allocation2 + $0x25] sm:$0xff]  ;;  %323 = vst.msk [vmem:[#allocation3 + $0x8] sm:$0xff] %vm321_vm12, %v3385_v0 }
  0x2f   : > { %v721_v45 = vpack.c.bf16 %v686_v43, %v685_v42  ;;  %v690_v47 = vld [vmem:[#allocation2 + $0x3c] sm:$0xff]  ;;  %v743_v52 = vld [vmem:[#allocation2 + $0x2d] sm:$0xff]  ;;  %v691_v24 = vld [vmem:[#allocation2 + $0x44] sm:$0xff]  ;;  %325 = vst.msk [vmem:[#allocation3 + $0x18] sm:$0xff] %vm321_vm12, %v3385_v0 }
  0x30   : > { %961 = vrot.lane.b32.xlu1 %v3619_v33, %s3388_s20  ;;  %v3628_v48 = vpack.c.bf16 %v690_v47, %v689_v46  ;;  %v744_v49 = vld [vmem:[#allocation2 + $0x35] sm:$0xff]  ;;  %v745_v50 = vld [vmem:[#allocation2 + $0x3d] sm:$0xff]  ;;  %v778_v54 = vpack.c.bf16 %v743_v52, %v742_v51  ;;  %v525_v56 = vld [vmem:[#allocation2 + $0x29] sm:$0xff]  ;;  %326 = vst.msk [vmem:[#allocation3 + $0x20] sm:$0xff] %vm321_vm12, %v3385_v0 }
  0x31   : > { %959 = vrot.lane.b32.xlu0 %v611_v28, %s3388_s20  ;;  %v779_v53 = vpack.c.bf16 %v745_v50, %v744_v49  ;;  %v524_v55 = vld [vmem:[#allocation2 + $0x21] sm:$0xff]  ;;  %v797_v58 = vld [vmem:[#allocation2 + $0x2e] sm:$0xff]  ;;  %v527_v62 = vld [vmem:[#allocation2 + $0x39] sm:$0xff]  ;;  %327 = vst.msk [vmem:[#allocation3 + $0x28] sm:$0xff] %vm321_vm12, %v3385_v0 }
  0x32   : > { %v796_v57 = vld [vmem:[#allocation2 + $0x26] sm:$0xff]  ;;  %v558_v59 = vpack.c.bf16 %v525_v56, %v524_v55  ;;  %v526_v61 = vld [vmem:[#allocation2 + $0x31] sm:$0xff]  ;;  %v799_v1 = vld [vmem:[#allocation2 + $0x3e] sm:$0xff]  ;;  %328 = vst.msk [vmem:[#allocation3 + $0x30] sm:$0xff] %vm321_vm12, %v3385_v0 }
  0x33   : > { %v832_v60 = vpack.c.bf16 %v797_v58, %v796_v57  ;;  %v798_v63 = vld [vmem:[#allocation2 + $0x36] sm:$0xff]  ;;  %v559_v2 = vpack.c.bf16 %v527_v62, %v526_v61  ;;  %v582_v7 = vld [vmem:[#allocation2 + $0x42] sm:$0xff]  ;;  %v583_v8 = vld [vmem:[#allocation2 + $0x4a] sm:$0xff]  ;;  %329 = vst.msk [vmem:[#allocation3 + $0x38] sm:$0xff] %vm321_vm12, %v3385_v0 }
  0x34   : > { %1015 = vrot.lane.b32.xlu1 %v668_v38, %s3389_s21  ;;  %v833_v3 = vpack.c.bf16 %v799_v1, %v798_v63  ;;  %v580_v4 = vld [vmem:[#allocation2 + $0x32] sm:$0xff]  ;;  %v581_v5 = vld [vmem:[#allocation2 + $0x3a] sm:$0xff]  ;;  %v3641_v11 = vpack.c.bf16 %v583_v8, %v582_v7  ;;  %v637_v13 = vld [vmem:[#allocation2 + $0x43] sm:$0xff]  ;;  %330 = vst.msk [vmem:[#allocation3 + $0x40] sm:$0xff] %vm321_vm12, %v3385_v0 }
  0x35   : > { %1013 = vrot.lane.b32.xlu0 %v667_v39, %s3389_s21  ;;  %v613_v6 = vpack.c.bf16 %v581_v5, %v580_v4  ;;  %v638_v14 = vld [vmem:[#allocation2 + $0x4b] sm:$0xff]  ;;  %v635_v16 = vld [vmem:[#allocation2 + $0x33] sm:$0xff]  ;;  %v636_v17 = vld [vmem:[#allocation2 + $0x3b] sm:$0xff]  ;;  %331 = vst.msk [vmem:[#allocation3 + $0x48] sm:$0xff] %vm321_vm12, %v3385_v0 }
  0x36   : > { %v670_v19 = vpack.c.bf16 %v638_v14, %v637_v13  ;;  %v420_v21 = vld [vmem:[%s3578_s17 + $0x90] sm:$0xff]  ;;  %v421_v22 = vld [vmem:[%s3578_s17 + $0x98] sm:$0xff]  ;;  %v669_v23 = vpack.c.bf16 %v636_v17, %v635_v16  ;;  %v422_v26 = vld [vmem:[%s3578_s17 + $0xa0] sm:$0xff]  ;;  %332 = vst.msk [vmem:[#allocation3 + $0x50] sm:$0xff] %vm321_vm12, %v3385_v0 }
  0x37   : > { %v692_v25 = vld [vmem:[#allocation2 + $0x4c] sm:$0xff]  ;;  %452 = vst.msk [vmem:[#allocation2 + $0xb5] sm:$0xff] %vm278_vm0, %v420_v21  ;;  %453 = vst.msk [vmem:[#allocation2 + $0xbd] sm:$0xff] %vm278_vm0, %v421_v22  ;;  %v425_v29 = vld [vmem:[%s3578_s17 + $0xb8] sm:$0xff] }
  0x38   : > { %1069 = vrot.lane.b32.xlu1 %v722_v44, %s3390_s22  ;;  %v423_v27 = vld [vmem:[%s3578_s17 + $0xa8] sm:$0xff]  ;;  %454 = vst.msk [vmem:[#allocation2 + $0xc7] sm:$0xff] %vm278_vm0, %v422_v26  ;;  %v424_v28 = vld [vmem:[%s3578_s17 + $0xb0] sm:$0xff]  ;;  %v724_v30 = vpack.c.bf16 %v692_v25, %v691_v24  ;;  %457 = vst.msk [vmem:[#allocation2 + $0xe1] sm:$0xff] %vm278_vm0, %v425_v29 }
  0x39   : > { %1067 = vrot.lane.b32.xlu0 %v721_v45, %s3390_s22  ;;  %455 = vst.msk [vmem:[#allocation2 + $0xcf] sm:$0xff] %vm278_vm0, %v423_v27  ;;  %456 = vst.msk [vmem:[#allocation2 + $0xd9] sm:$0xff] %vm278_vm0, %v424_v28  ;;  %v693_v31 = vld [vmem:[#allocation2 + $0x54] sm:$0xff]  ;;  %v694_v32 = vld [vmem:[#allocation2 + $0x5c] sm:$0xff] }
  0x3a   : > { %v748_v34 = vld [vmem:[#allocation2 + $0x55] sm:$0xff]  ;;  %v749_v35 = vld [vmem:[#allocation2 + $0x5d] sm:$0xff]  ;;  %v746_v36 = vld [vmem:[#allocation2 + $0x45] sm:$0xff]  ;;  %333 = vst.msk [vmem:[#allocation3 + $0x58] sm:$0xff] %vm321_vm12, %v3385_v0 }
  0x3b   : > { %v747_v37 = vld [vmem:[#allocation2 + $0x4d] sm:$0xff]  ;;  %v781_v38 = vpack.c.bf16 %v749_v35, %v748_v34  ;;  %v528_v40 = vld [vmem:[#allocation2 + $0x41] sm:$0xff]  ;;  %v531_v46 = vld [vmem:[#allocation2 + $0x59] sm:$0xff]  ;;  %334 = vst.msk [vmem:[#allocation3 + $0x60] sm:$0xff] %vm321_vm12, %v3385_v0 }
  0x3c   : > { %1106 = vrot.lane.b32.xlu1 %v3628_v48, %s3391_s23  ;;  %v780_v39 = vpack.c.bf16 %v747_v37, %v746_v36  ;;  %v529_v41 = vld [vmem:[#allocation2 + $0x49] sm:$0xff]  ;;  %v530_v45 = vld [vmem:[#allocation2 + $0x51] sm:$0xff]  ;;  %v803_v49 = vld [vmem:[#allocation2 + $0x5e] sm:$0xff]  ;;  %335 = vst.msk [vmem:[#allocation3 + $0x68] sm:$0xff] %vm321_vm12, %v3385_v0 }
  0x3d   : > { %1104 = vrot.lane.b32.xlu0 %v722_v44, %s3391_s23  ;;  %v800_v42 = vld [vmem:[#allocation2 + $0x46] sm:$0xff]  ;;  %v801_v43 = vld [vmem:[#allocation2 + $0x4e] sm:$0xff]  ;;  %v560_v44 = vpack.c.bf16 %v529_v41, %v528_v40  ;;  %v585_v51 = vld [vmem:[#allocation2 + $0x5a] sm:$0xff]  ;;  %v561_v52 = vpack.c.bf16 %v531_v46, %v530_v45  ;;  %336 = vst.msk [vmem:[#allocation3 + $0x70] sm:$0xff] %vm321_vm12, %v3385_v0 }
  0x3e   : > { %v834_v47 = vpack.c.bf16 %v801_v43, %v800_v42  ;;  %v584_v50 = vld [vmem:[#allocation2 + $0x52] sm:$0xff]  ;;  %v587_v55 = vld [vmem:[#allocation2 + $0x6a] sm:$0xff]  ;;  %v426_v56 = vld [vmem:[%s3578_s17 + $0xc0] sm:$0xff]  ;;  %337 = vst.msk [vmem:[#allocation3 + $0x78] sm:$0xff] %vm321_vm12, %v3385_v0 }
  0x3f   : > { %v615_v57 = vpack.c.bf16 %v585_v51, %v584_v50  ;;  %458 = vst.msk [vmem:[#allocation2 + $0xeb] sm:$0xff] %vm278_vm0, %v426_v56  ;;  %v641_v58 = vld [vmem:[#allocation2 + $0x63] sm:$0xff]  ;;  %v639_v61 = vld [vmem:[#allocation2 + $0x53] sm:$0xff]  ;;  %v640_v62 = vld [vmem:[#allocation2 + $0x5b] sm:$0xff] }
  0x40   : > { %1160 = vrot.lane.b32.xlu1 %v779_v53, %s3392_s29  ;;  %v427_v63 = vld [vmem:[%s3578_s17 + $0xc8] sm:$0xff]  ;;  %v428_v5 = vld [vmem:[%s3578_s17 + $0xd0] sm:$0xff]  ;;  %v698_v8 = vld [vmem:[#allocation2 + $0x7c] sm:$0xff]  ;;  %338 = vst.msk [vmem:[#allocation3 + $0x80] sm:$0xff] %vm321_vm12, %v3385_v0 }
  0x41   : > { %1158 = vrot.lane.b32.xlu0 %v778_v54, %s3392_s29  ;;  %v586_v54 = vld [vmem:[#allocation2 + $0x62] sm:$0xff]  ;;  %459 = vst.msk [vmem:[#allocation2 + $0xf3] sm:$0xff] %vm278_vm0, %v427_v63  ;;  %v696_v4 = vld [vmem:[#allocation2 + $0x6c] sm:$0xff]  ;;  %460 = vst.msk [vmem:[#allocation2 + $0xfd] sm:$0xff] %vm278_vm0, %v428_v5 }
  0x42   : > { %v697_v7 = vld [vmem:[#allocation2 + $0x74] sm:$0xff]  ;;  %v750_v12 = vld [vmem:[#allocation2 + $0x65] sm:$0xff]  ;;  %339 = vst.msk [vmem:[#allocation3 + $0x88] sm:$0xff] %vm321_vm12, %v3385_v0  ;;  %340 = vst.msk [vmem:[#allocation3 + $0x90] sm:$0xff] %vm321_vm12, %v3385_v0 }
  0x43   : > { %v727_v9 = vpack.c.bf16 %v698_v8, %v697_v7  ;;  %v752_v10 = vld [vmem:[#allocation2 + $0x75] sm:$0xff]  ;;  %v751_v13 = vld [vmem:[#allocation2 + $0x6d] sm:$0xff]  ;;  %v532_v16 = vld [vmem:[#allocation2 + $0x61] sm:$0xff]  ;;  %341 = vst.msk [vmem:[#allocation3 + $0x98] sm:$0xff] %vm321_vm12, %v3385_v0 }
  0x44   : > { %872 = vrot.lane.b32.xlu1 %v558_v59, %s3387_s19  ;;  %v642_v59 = vld [vmem:[#allocation2 + $0x6b] sm:$0xff]  ;;  %v782_v15 = vpack.c.bf16 %v751_v13, %v750_v12  ;;  %v429_v20 = vld [vmem:[%s3578_s17 + $0xd8] sm:$0xff]  ;;  %v645_v36 = vld [vmem:[#allocation2 + $0x83] sm:$0xff]  ;;  %342 = vst.msk [vmem:[#allocation3 + $0xa0] sm:$0xff] %vm321_vm12, %v3385_v0 }
  0x45   : > { %1212 = vrot.lane.b32.xlu0 %v832_v60, %s3393_s8  ;;  %v616_v60 = vpack.c.bf16 %v587_v55, %v586_v54  ;;  %v672_v1 = vpack.c.bf16 %v642_v59, %v641_v58  ;;  %v533_v17 = vld [vmem:[#allocation2 + $0x69] sm:$0xff]  ;;  %461 = vst.msk [vmem:[#allocation2 + $0x105] sm:$0xff] %vm278_vm0, %v429_v20  ;;  %v535_v24 = vld [vmem:[#allocation2 + $0x79] sm:$0xff]  ;;  %v536_v58 = vld [vmem:[#allocation2 + $0x81] sm:$0xff] }
  0x46   : > { %v804_v18 = vld [vmem:[#allocation2 + $0x66] sm:$0xff]  ;;  %v562_v21 = vpack.c.bf16 %v533_v17, %v532_v16  ;;  %v806_v25 = vld [vmem:[#allocation2 + $0x76] sm:$0xff]  ;;  %v807_v26 = vld [vmem:[#allocation2 + $0x7e] sm:$0xff]  ;;  %343 = vst.msk [vmem:[#allocation3 + $0xa8] sm:$0xff] %vm321_vm12, %v3385_v0 }
  0x47   : > { %v837_v28 = vpack.c.bf16 %v807_v26, %v806_v25  ;;  %v588_v29 = vld [vmem:[#allocation2 + $0x72] sm:$0xff]  ;;  %v591_v34 = vld [vmem:[#allocation2 + $0x8a] sm:$0xff]  ;;  %v811_v7 = vld [vmem:[#allocation2 + $0x9e] sm:$0xff]  ;;  %344 = vst.msk [vmem:[#allocation3 + $0xb0] sm:$0xff] %vm321_vm12, %v3385_v0 }
  0x48   : > { %874 = vrot.lane.b32.xlu1 %v559_v2, %s3387_s19  ;;  %v671_v2 = vpack.c.bf16 %v640_v62, %v639_v61  ;;  %v646_v37 = vld [vmem:[#allocation2 + $0x8b] sm:$0xff]  ;;  %v593_v12 = vld [vmem:[#allocation2 + $0x9a] sm:$0xff]  ;;  %345 = vst.msk [vmem:[#allocation3 + $0xb8] sm:$0xff] %vm321_vm12, %v3385_v0  ;;  %346 = vst.msk [vmem:[#allocation3 + $0xc0] sm:$0xff] %vm321_vm12, %v3385_v0 }
  0x49   : > { %1214 = vrot.lane.b32.xlu0 %v833_v3, %s3393_s8  ;;  %v695_v3 = vld [vmem:[#allocation2 + $0x64] sm:$0xff]  ;;  %v674_v40 = vpack.c.bf16 %v646_v37, %v645_v36  ;;  %v700_v43 = vld [vmem:[#allocation2 + $0x8c] sm:$0xff]  ;;  %v469_v25 = vld [vmem:[#allocation2 + $0x18] sm:$0xff]  ;;  %347 = vst.msk [vmem:[#allocation3 + $0xc8] sm:$0xff] %vm321_vm12, %v3385_v0 }
  0x4a   : > { %v699_v42 = vld [vmem:[#allocation2 + $0x84] sm:$0xff]  ;;  %v432_v45 = vld [vmem:[%s3578_s17 + $0xf0] sm:$0xff]  ;;  %348 = vst.msk [vmem:[#allocation3 + $0xd0] sm:$0xff] %vm321_vm12, %v3385_v0  ;;  %349 = vst.msk [vmem:[#allocation3 + $0xd8] sm:$0xff] %vm321_vm12, %v3385_v0 }
  0x4b   : > { %v728_v46 = vpack.c.bf16 %v700_v43, %v699_v42  ;;  %464 = vst.msk [vmem:[#allocation2 + $0x121] sm:$0xff] %vm278_vm0, %v432_v45  ;;  %v754_v54 = vld [vmem:[#allocation2 + $0x85] sm:$0xff]  ;;  %v755_v55 = vld [vmem:[#allocation2 + $0x8d] sm:$0xff] }
  0x4c   : > { %928 = vrot.lane.b32.xlu1 %v613_v6, %s3386_s18  ;;  %v537_v59 = vld [vmem:[#allocation2 + $0x89] sm:$0xff]  ;;  %v466_v17 = vld [vmem:[#allocation2] sm:$0xff]  ;;  %350 = vst.msk [vmem:[#allocation3 + $0xe0] sm:$0xff] %vm321_vm12, %v3385_v0  ;;  %351 = vst.msk [vmem:[#allocation3 + $0xe8] sm:$0xff] %vm321_vm12, %v3385_v0 }
  0x4d   : > { %926 = vrot.lane.b32.xlu0 %v3619_v33, %s3386_s18  ;;  %v725_v33 = vpack.c.bf16 %v694_v32, %v693_v31  ;;  %v430_v31 = vld [vmem:[%s3578_s17 + $0xe0] sm:$0xff]  ;;  %v809_v62 = vld [vmem:[#allocation2 + $0x8e] sm:$0xff]  ;;  %352 = vst.msk [vmem:[#allocation3 + $0xf0] sm:$0xff] %vm321_vm12, %v3385_v0  ;;  %353 = vst.msk [vmem:[#allocation3 + $0xf8] sm:$0xff] %vm321_vm12, %v3385_v0 }
  0x4e   : > { %462 = vst.msk [vmem:[#allocation2 + $0x10f] sm:$0xff] %vm278_vm0, %v430_v31  ;;  %v808_v61 = vld [vmem:[#allocation2 + $0x86] sm:$0xff]  ;;  %v648_v31 = vld [vmem:[#allocation2 + $0x9b] sm:$0xff] }
  0x4f   : > { %v467_v16 = vld [vmem:[#allocation2 + $0x8] sm:$0xff]  ;;  %354 = vst.msk [vmem:[#allocation3 + $0x100] sm:$0xff] %vm321_vm12, %v3385_v0  ;;  %355 = vst.msk [vmem:[#allocation3 + $0x108] sm:$0xff] %vm321_vm12, %v3385_v0 }
  0x50   : > { %965 = vrot.lane.b32.xlu1 %v3641_v11, %s3388_s20  ;;  %v595_v20 = vld [vmem:[#allocation2 + $0xaa] sm:$0xff]  ;;  %356 = vst.msk [vmem:[#allocation3 + $0x110] sm:$0xff] %vm321_vm12, %v3385_v0  ;;  %357 = vst.msk [vmem:[#allocation3 + $0x118] sm:$0xff] %vm321_vm12, %v3385_v0 }
  0x51   : > { %963 = vrot.lane.b32.xlu0 %v613_v6, %s3388_s20  ;;  %v726_v6 = vpack.c.bf16 %v696_v4, %v695_v3  ;;  %v538_v3 = vld [vmem:[#allocation2 + $0x91] sm:$0xff]  ;;  %v539_v4 = vld [vmem:[#allocation2 + $0x99] sm:$0xff]  ;;  %358 = vst.msk [vmem:[#allocation3 + $0x120] sm:$0xff] %vm321_vm12, %v3385_v0  ;;  %362 = vst.msk [vmem:[#allocation4] sm:$0xff] %vm321_vm12, %v3385_v0 }
  0x52   : > { %363 = vst.msk [vmem:[#allocation4 + $0x8] sm:$0xff] %vm321_vm12, %v3385_v0  ;;  %364 = vst.msk [vmem:[#allocation4 + $0x10] sm:$0xff] %vm321_vm12, %v3385_v0 }
  0x53   : > { %365 = vst.msk [vmem:[#allocation4 + $0x18] sm:$0xff] %vm321_vm12, %v3385_v0  ;;  %366 = vst.msk [vmem:[#allocation4 + $0x20] sm:$0xff] %vm321_vm12, %v3385_v0 }
  0x54   : > { %1019 = vrot.lane.b32.xlu1 %v670_v19, %s3389_s21  ;;  %v805_v19 = vld [vmem:[#allocation2 + $0x6e] sm:$0xff]  ;;  %367 = vst.msk [vmem:[#allocation4 + $0x28] sm:$0xff] %vm321_vm12, %v3385_v0  ;;  %368 = vst.msk [vmem:[#allocation4 + $0x30] sm:$0xff] %vm321_vm12, %v3385_v0 }
  0x55   : > { %1017 = vrot.lane.b32.xlu0 %v669_v23, %s3389_s21  ;;  %v836_v22 = vpack.c.bf16 %v805_v19, %v804_v18  ;;  %v534_v23 = vld [vmem:[#allocation2 + $0x71] sm:$0xff]  ;;  %v594_v19 = vld [vmem:[#allocation2 + $0xa2] sm:$0xff]  ;;  %369 = vst.msk [vmem:[#allocation4 + $0x38] sm:$0xff] %vm321_vm12, %v3385_v0  ;;  %370 = vst.msk [vmem:[#allocation4 + $0x40] sm:$0xff] %vm321_vm12, %v3385_v0 }
  0x56   : > { %v563_v27 = vpack.c.bf16 %v535_v24, %v534_v23  ;;  %v468_v24 = vld [vmem:[#allocation2 + $0x10] sm:$0xff]  ;;  %v3741_v26 = vpack.c.bf16 %v595_v20, %v594_v19  ;;  %v815_v19 = vld [vmem:[#allocation2 + $0xbe] sm:$0xff]  ;;  %371 = vst.msk [vmem:[#allocation4 + $0x48] sm:$0xff] %vm321_vm12, %v3385_v0  ;;  %372 = vst.msk [vmem:[#allocation4 + $0x50] sm:$0xff] %vm321_vm12, %v3385_v0 }
  0x57   : > { %373 = vst.msk [vmem:[#allocation4 + $0x58] sm:$0xff] %vm321_vm12, %v3385_v0 }
  0x58   : > { %1073 = vrot.lane.b32.xlu1 %v724_v30, %s3390_s22  ;;  %375 = vst.msk [vmem:[#allocation4 + $0x60] sm:$0x3f] %vm374_vm14, %v3385_v0 }
  0x59   : > { %1071 = vrot.lane.b32.xlu0 %v3628_v48, %s3390_s22  ;;  %v802_v48 = vld [vmem:[#allocation2 + $0x56] sm:$0xff]  ;;  %377 = vst.msk [vmem:[#allocation5] sm:$0xff] %vm376_vm15, %v3385_v0  ;;  %378 = vst.msk [vmem:[#allocation5 + $0x8] sm:$0xff] %vm376_vm15, %v3385_v0 }
  0x5a   : > { %v835_v53 = vpack.c.bf16 %v803_v49, %v802_v48  ;;  %v702_v48 = vld [vmem:[#allocation2 + $0x9c] sm:$0xff]  ;;  %379 = vst.msk [vmem:[#allocation5 + $0x10] sm:$0xff] %vm376_vm15, %v3385_v0  ;;  %380 = vst.msk [vmem:[#allocation5 + $0x18] sm:$0xff] %vm376_vm15, %v3385_v0 }
  0x5b   : > { %381 = vst.msk [vmem:[#allocation5 + $0x20] sm:$0xff] %vm376_vm15, %v3385_v0  ;;  %382 = vst.msk [vmem:[#allocation5 + $0x28] sm:$0xff] %vm376_vm15, %v3385_v0 }
  0x5c   : > { %1110 = vrot.lane.b32.xlu1 %v725_v33, %s3391_s23  ;;  %383 = vst.msk [vmem:[#allocation5 + $0x30] sm:$0xff] %vm376_vm15, %v3385_v0  ;;  %384 = vst.msk [vmem:[#allocation5 + $0x38] sm:$0xff] %vm376_vm15, %v3385_v0 }
  0x5d   : > { %1108 = vrot.lane.b32.xlu0 %v724_v30, %s3391_s23  ;;  %v589_v30 = vld [vmem:[#allocation2 + $0x7a] sm:$0xff]  ;;  %385 = vst.msk [vmem:[#allocation5 + $0x40] sm:$0xff] %vm376_vm15, %v3385_v0  ;;  %386 = vst.msk [vmem:[#allocation5 + $0x48] sm:$0xff] %vm376_vm15, %v3385_v0 }
  0x5e   : > { %v617_v32 = vpack.c.bf16 %v589_v30, %v588_v29  ;;  %v647_v30 = vld [vmem:[#allocation2 + $0x93] sm:$0xff]  ;;  %387 = vst.msk [vmem:[#allocation5 + $0x50] sm:$0xff] %vm376_vm15, %v3385_v0  ;;  %390 = vst.msk [vmem:[#allocation6] sm:$0xff] %vm376_vm15, %v3385_v0 }
  0x5f   : > { %v675_v37 = vpack.c.bf16 %v648_v31, %v647_v30  ;;  %v599_v30 = vld [vmem:[#allocation2 + $0xca] sm:$0xff]  ;;  %v470_v31 = vld [vmem:[#allocation2 + $0x20] sm:$0xff]  ;;  %391 = vst.msk [vmem:[#allocation6 + $0x8] sm:$0xff] %vm376_vm15, %v3385_v0  ;;  %392 = vst.msk [vmem:[#allocation6 + $0x10] sm:$0xff] %vm376_vm15, %v3385_v0 }
  0x60   : > { %1164 = vrot.lane.b32.xlu1 %v781_v38, %s3392_s29  ;;  %v643_v38 = vld [vmem:[#allocation2 + $0x73] sm:$0xff]  ;;  %393 = vst.msk [vmem:[#allocation6 + $0x18] sm:$0xff] %vm376_vm15, %v3385_v0 }
  0x61   : > { %1162 = vrot.lane.b32.xlu0 %v780_v39, %s3392_s29  ;;  %v644_v39 = vld [vmem:[#allocation2 + $0x7b] sm:$0xff]  ;;  %397 = vst.msk [vmem:[#allocation7] sm:$0xff] %vm396_vm1, %v3385_v0  ;;  %398 = vst.msk [vmem:[#allocation7 + $0x8] sm:$0xff] %vm396_vm1, %v3385_v0 }
  0x62   : > { %v673_v41 = vpack.c.bf16 %v644_v39, %v643_v38  ;;  %v704_v38 = vld [vmem:[#allocation2 + $0xac] sm:$0xff]  ;;  %399 = vst.msk [vmem:[#allocation7 + $0x10] sm:$0xff] %vm396_vm1, %v3385_v0 }
  0x64   : > { %876 = vrot.lane.b32.xlu1 %v560_v44, %s3387_s19  ;;  %v431_v44 = vld [vmem:[%s3578_s17 + $0xe8] sm:$0xff] }
  0x65   : > { %1216 = vrot.lane.b32.xlu0 %v834_v47, %s3393_s8  ;;  %463 = vst.msk [vmem:[#allocation2 + $0x117] sm:$0xff] %vm278_vm0, %v431_v44  ;;  %v701_v47 = vld [vmem:[#allocation2 + $0x94] sm:$0xff] }
  0x66   : > { %v3722_v50 = vpack.c.bf16 %v702_v48, %v701_v47  ;;  %v705_v47 = vld [vmem:[#allocation2 + $0xb4] sm:$0xff]  ;;  %v706_v48 = vld [vmem:[#allocation2 + $0xbc] sm:$0xff] }
  0x68   : > { %878 = vrot.lane.b32.xlu1 %v561_v52, %s3387_s19  ;;  %v756_v52 = vld [vmem:[#allocation2 + $0x95] sm:$0xff] }
  0x69   : > { %1218 = vrot.lane.b32.xlu0 %v835_v53, %s3393_s8  ;;  %v757_v53 = vld [vmem:[#allocation2 + $0x9d] sm:$0xff] }
  0x6a   : > { %v785_v56 = vpack.c.bf16 %v757_v53, %v756_v52 }
  0x6c   : > { %932 = vrot.lane.b32.xlu1 %v615_v57, %s3386_s18 }
  0x6d   : > { %930 = vrot.lane.b32.xlu0 %v3641_v11, %s3386_s18  ;;  %v753_v11 = vld [vmem:[#allocation2 + $0x7d] sm:$0xff] }
  0x6e   : > { %v783_v14 = vpack.c.bf16 %v753_v11, %v752_v10  ;;  %v592_v11 = vld [vmem:[#allocation2 + $0x92] sm:$0xff] }
  0x6f   : > { %v619_v18 = vpack.c.bf16 %v593_v12, %v592_v11  ;;  %v813_v11 = vld [vmem:[#allocation2 + $0xae] sm:$0xff] }
  0x70   : > { %969 = vrot.lane.b32.xlu1 %v616_v60, %s3388_s20 }
  0x71   : > { %967 = vrot.lane.b32.xlu0 %v615_v57, %s3388_s20  ;;  %v784_v57 = vpack.c.bf16 %v755_v55, %v754_v54 }
  0x74   : > { %1023 = vrot.lane.b32.xlu1 %v672_v1, %s3389_s21  ;;  %v564_v1 = vpack.c.bf16 %v537_v59, %v536_v58  ;;  %v3769_v58 = vpack.c.bf16 %v706_v48, %v705_v47 }
  0x75   : > { %1021 = vrot.lane.b32.xlu0 %v671_v2, %s3389_s21  ;;  %v838_v2 = vpack.c.bf16 %v809_v62, %v808_v61  ;;  %v761_v61 = vld [vmem:[#allocation2 + $0xbd] sm:$0xff] }
  0x78   : > { %1077 = vrot.lane.b32.xlu1 %v726_v6, %s3390_s22 }
  0x79   : > { %1075 = vrot.lane.b32.xlu0 %v725_v33, %s3390_s22  ;;  %v590_v33 = vld [vmem:[#allocation2 + $0x82] sm:$0xff] }
  0x7a   : > { %v3707_v35 = vpack.c.bf16 %v591_v34, %v590_v33  ;;  %v503_v33 = vpack.c.bf16 %v469_v25, %v468_v24  ;;  %v597_v24 = vld [vmem:[#allocation2 + $0xba] sm:$0xff] }
  0x7c   : > { %1114 = vrot.lane.b32.xlu1 %v727_v9, %s3391_s23 }
  0x7d   : > { %1112 = vrot.lane.b32.xlu0 %v726_v6, %s3391_s23  ;;  %v810_v6 = vld [vmem:[#allocation2 + $0x96] sm:$0xff] }
  0x7e   : > { %v839_v10 = vpack.c.bf16 %v811_v7, %v810_v6  ;;  %v540_v7 = vld [vmem:[#allocation2 + $0xa1] sm:$0xff] }
  0x80   : > { %1168 = vrot.lane.b32.xlu1 %v783_v14, %s3392_s29 }
  0x81   : > { %1166 = vrot.lane.b32.xlu0 %v782_v15, %s3392_s29  ;;  %v433_v15 = vld [vmem:[%s3578_s17 + $0xf8] sm:$0xff] }
  0x82   : > { %465 = vst.msk [vmem:[#allocation2 + $0x129] sm:$0xff] %vm278_vm0, %v433_v15  ;;  %v542_v15 = vld [vmem:[#allocation2 + $0xb1] sm:$0xff] }
  0x84   : > { %880 = vrot.lane.b32.xlu1 %v562_v21, %s3387_s19 }
  0x85   : > { %1220 = vrot.lane.b32.xlu0 %v836_v22, %s3393_s8  ;;  %v502_v22 = vpack.c.bf16 %v467_v16, %v466_v17  ;;  %v543_v16 = vld [vmem:[#allocation2 + $0xb9] sm:$0xff] }
  0x88   : > { %882 = vrot.lane.b32.xlu1 %v563_v27, %s3387_s19  ;;  %v649_v27 = vld [vmem:[#allocation2 + $0xa3] sm:$0xff] }
  0x89   : > { %1222 = vrot.lane.b32.xlu0 %v837_v28, %s3393_s8  ;;  %v650_v28 = vld [vmem:[#allocation2 + $0xab] sm:$0xff] }
  0x8a   : > { %v676_v36 = vpack.c.bf16 %v650_v28, %v649_v27 }
  0x8b   : > { %v3720_v49 = vpop.permute.xlu1 %922 }
  0x8c   : > { %936 = vrot.lane.b32.xlu1 %v617_v32, %s3386_s18  ;;  %v869_v51 = vpop.permute.xlu0 %868 }
  0x8d   : > { %934 = vrot.lane.b32.xlu0 %v616_v60, %s3386_s18 }
  0x90   : > { %973 = vrot.lane.b32.xlu1 %v3707_v35, %s3388_s20 }
  0x91   : > { %971 = vrot.lane.b32.xlu0 %v617_v32, %s3388_s20  ;;  %v1250_v32 = vsel %vm278_vm0, %v502_v22, %v869_v51 }
  0x92   : > { %v1304_v39 = vsel %vm1302_vm3, %v1250_v32, %v3720_v49  ;;  %v471_v32 = vld [vmem:[#allocation2 + $0x28] sm:$0xff] }
  0x94   : > { %1027 = vrot.lane.b32.xlu1 %v674_v40, %s3389_s21 }
  0x95   : > { %1025 = vrot.lane.b32.xlu0 %v673_v41, %s3389_s21 }
  0x98   : > { %1081 = vrot.lane.b32.xlu1 %v728_v46, %s3390_s22 }
  0x99   : > { %1079 = vrot.lane.b32.xlu0 %v727_v9, %s3390_s22  ;;  %v565_v9 = vpack.c.bf16 %v539_v4, %v538_v3 }
  0x9c   : > { %1118 = vrot.lane.b32.xlu1 %v3722_v50, %s3391_s23 }
  0x9d   : > { %1116 = vrot.lane.b32.xlu0 %v728_v46, %s3391_s23 }
  0x9e   : > { %v3728_v60 = vpop.permute.xlu1 %924 }
  0x9f   : > { %v871_v63 = vpop.permute.xlu0 %870 }
  0xa0   : > { %1172 = vrot.lane.b32.xlu1 %v785_v56, %s3392_s29  ;;  %v1253_v41 = vsel %vm278_vm0, %v503_v33, %v871_v63 }
  0xa1   : > { %1170 = vrot.lane.b32.xlu0 %v784_v57, %s3392_s29  ;;  %v1306_v49 = vsel %vm1302_vm3, %v1253_v41, %v3728_v60  ;;  %v760_v60 = vld [vmem:[#allocation2 + $0xb5] sm:$0xff] }
  0xa2   : > { %v3732_v5 = vpop.permute.xlu1 %961  ;;  %v787_v6 = vpack.c.bf16 %v761_v61, %v760_v60  ;;  %v709_v60 = vld [vmem:[#allocation2 + $0xd4] sm:$0xff]  ;;  %v710_v61 = vld [vmem:[#allocation2 + $0xdc] sm:$0xff] }
  0xa3   : > { %v960_v8 = vpop.permute.xlu0 %959  ;;  %v1343_v53 = vsel %vm1339_vm4, %v1306_v49, %v3732_v5  ;;  %v707_v49 = vld [vmem:[#allocation2 + $0xc4] sm:$0xff] }
  0xa4   : > { %884 = vrot.lane.b32.xlu1 %v564_v1, %s3387_s19  ;;  %v1341_v42 = vsel %vm1339_vm4, %v1304_v39, %v960_v8  ;;  %v758_v1 = vld [vmem:[#allocation2 + $0xa5] sm:$0xff] }
  0xa5   : > { %1224 = vrot.lane.b32.xlu0 %v838_v2, %s3393_s8  ;;  %v759_v2 = vld [vmem:[#allocation2 + $0xad] sm:$0xff] }
  0xa6   : > { %v1016_v13 = vpop.permute.xlu1 %1015  ;;  %v541_v8 = vld [vmem:[#allocation2 + $0xa9] sm:$0xff] }
  0xa7   : > { %v1014_v14 = vpop.permute.xlu0 %1013  ;;  %v1380_v56 = vsel %vm1376_vm5, %v1343_v53, %v1016_v13  ;;  %v566_v13 = vpack.c.bf16 %v541_v8, %v540_v7  ;;  %v654_v39 = vld [vmem:[#allocation2 + $0xcb] sm:$0xff]  ;;  %v764_v8 = vld [vmem:[#allocation2 + $0xd5] sm:$0xff] }
  0xa8   : > { %886 = vrot.lane.b32.xlu1 %v565_v9, %s3387_s19  ;;  %v1378_v44 = vsel %vm1376_vm5, %v1341_v42, %v1014_v14  ;;  %v651_v42 = vld [vmem:[#allocation2 + $0xb3] sm:$0xff] }
  0xa9   : > { %1226 = vrot.lane.b32.xlu0 %v839_v10, %s3393_s8  ;;  %v812_v10 = vld [vmem:[#allocation2 + $0xa6] sm:$0xff] }
  0xaa   : > { %v1070_v21 = vpop.permute.xlu1 %1069  ;;  %v840_v14 = vpack.c.bf16 %v813_v11, %v812_v10 }
  0xab   : > { %v1068_v23 = vpop.permute.xlu0 %1067  ;;  %v1417_v59 = vsel %vm1413_vm6, %v1380_v56, %v1070_v21  ;;  %v567_v21 = vpack.c.bf16 %v543_v16, %v542_v15 }
  0xac   : > { %940 = vrot.lane.b32.xlu1 %v619_v18, %s3386_s18  ;;  %v1415_v46 = vsel %vm1413_vm6, %v1378_v44, %v1068_v23  ;;  %v596_v23 = vld [vmem:[#allocation2 + $0xb2] sm:$0xff] }
  0xad   : > { %938 = vrot.lane.b32.xlu0 %v3707_v35, %s3386_s18  ;;  %v703_v35 = vld [vmem:[#allocation2 + $0xa4] sm:$0xff]  ;;  %v621_v28 = vpack.c.bf16 %v597_v24, %v596_v23 }
  0xae   : > { %v1107_v29 = vpop.permute.xlu1 %1106  ;;  %v730_v45 = vpack.c.bf16 %v704_v38, %v703_v35  ;;  %v472_v35 = vld [vmem:[#allocation2 + $0x30] sm:$0xff]  ;;  %v653_v38 = vld [vmem:[#allocation2 + $0xc3] sm:$0xff] }
  0xaf   : > { %v1105_v34 = vpop.permute.xlu0 %1104  ;;  %v1454_v62 = vsel %vm1450_vm8, %v1417_v59, %v1107_v29  ;;  %v598_v29 = vld [vmem:[#allocation2 + $0xc2] sm:$0xff] }
  0xb0   : > { %977 = vrot.lane.b32.xlu1 %v3741_v26, %s3388_s20  ;;  %v1452_v51 = vsel %vm1450_vm8, %v1415_v46, %v1105_v34 }
  0xb1   : > { %975 = vrot.lane.b32.xlu0 %v619_v18, %s3388_s20  ;;  %v814_v18 = vld [vmem:[#allocation2 + $0xb6] sm:$0xff] }
  0xb2   : > { %v1161_v40 = vpop.permute.xlu1 %1160  ;;  %v841_v22 = vpack.c.bf16 %v815_v19, %v814_v18  ;;  %v544_v18 = vld [vmem:[#allocation2 + $0xc1] sm:$0xff]  ;;  %v545_v19 = vld [vmem:[#allocation2 + $0xc9] sm:$0xff] }
  0xb3   : > { %v1159_v43 = vpop.permute.xlu0 %1158  ;;  %v1491_v3 = vsel %vm1487_vm9, %v1454_v62, %v1161_v40  ;;  %v473_v40 = vld [vmem:[#allocation2 + $0x38] sm:$0xff]  ;;  %v568_v24 = vpack.c.bf16 %v545_v19, %v544_v18 }
  0xb4   : > { %1031 = vrot.lane.b32.xlu1 %v676_v36, %s3389_s21  ;;  %v1489_v54 = vsel %vm1487_vm9, %v1452_v51, %v1159_v43  ;;  %v3793_v36 = vpack.c.bf16 %v599_v30, %v598_v29  ;;  %v652_v43 = vld [vmem:[#allocation2 + $0xbb] sm:$0xff]  ;;  %v505_v47 = vpack.c.bf16 %v473_v40, %v472_v35 }
  0xb5   : > { %1029 = vrot.lane.b32.xlu0 %v675_v37, %s3389_s21  ;;  %v504_v37 = vpack.c.bf16 %v471_v32, %v470_v31  ;;  %v677_v48 = vpack.c.bf16 %v652_v43, %v651_v42  ;;  %v818_v30 = vld [vmem:[#allocation2 + $0xd6] sm:$0xff]  ;;  %v819_v31 = vld [vmem:[#allocation2 + $0xde] sm:$0xff]  ;;  %v603_v42 = vld [vmem:[#allocation2 + $0xea] sm:$0xff] }
  0xb6   : > { %v3761_v52 = vpop.permute.xlu1 %872  ;;  %v601_v35 = vld [vmem:[#allocation2 + $0xda] sm:$0xff] }
  0xb7   : > { %v1213_v55 = vpop.permute.xlu0 %1212  ;;  %v1256_v46 = vsel %vm278_vm0, %v504_v37, %v3761_v52  ;;  %v600_v37 = vld [vmem:[#allocation2 + $0xd2] sm:$0xff]  ;;  %v474_v43 = vld [vmem:[#allocation2 + $0x40] sm:$0xff] }
  0xb8   : > { %1085 = vrot.lane.b32.xlu1 %v730_v45, %s3390_s22  ;;  %v1526_v57 = vsel %vm1524_vm10, %v1489_v54, %v1213_v55  ;;  %v623_v40 = vpack.c.bf16 %v601_v35, %v600_v37  ;;  %v768_v19 = vld [vmem:[#allocation2 + $0xf5] sm:$0xff] }
  0xb9   : > { %1083 = vrot.lane.b32.xlu0 %v3722_v50, %s3390_s22  ;;  %3190 = vmatprep.mubr.msk.bf16.mxu0 %vm1583_vm11, %v1526_v57  ;;  %v786_v50 = vpack.c.bf16 %v759_v2, %v758_v1 }
  0xba   : > { %v3776_v63 = vpop.permute.xlu1 %874 }
  0xbb   : > { %v1215_v4 = vpop.permute.xlu0 %1214  ;;  %v1259_v52 = vsel %vm278_vm0, %v505_v47, %v3776_v63 }
  0xbc   : > { %v1528_v5 = vsel %vm1524_vm10, %v1491_v3, %v1215_v4  ;;  %1122 = vrot.lane.b32.xlu1 %v3769_v58, %s3391_s23 }
  0xbd   : > { %1120 = vrot.lane.b32.xlu0 %v730_v45, %s3391_s23  ;;  %3191 = vmatmul.mubr.msk.bf16.vlgmr.msra.gmra.mrb[0].mxu0 %vm1583_vm11, %v1528_v5  ;;  %v678_v45 = vpack.c.bf16 %v654_v39, %v653_v38 }
  0xbe   : > { %v3784_v9 = vpop.permute.xlu1 %928 }
  0xbf   : > { %v927_v12 = vpop.permute.xlu0 %926  ;;  %v1310_v62 = vsel %vm1302_vm3, %v1259_v52, %v3784_v9  ;;  %v765_v9 = vld [vmem:[#allocation2 + $0xdd] sm:$0xff] }
  0xc0   : > { %1176 = vrot.lane.b32.xlu1 %v787_v6, %s3392_s29  ;;  %v1308_v51 = vsel %vm1302_vm3, %v1256_v46, %v927_v12  ;;  %v762_v12 = vld [vmem:[#allocation2 + $0xc5] sm:$0xff] }
  0xc1   : > { %1174 = vrot.lane.b32.xlu0 %v786_v50, %s3392_s29  ;;  %v3820_v50 = vpack.c.bf16 %v710_v61, %v709_v60 }
  0xc2   : > { %v966_v17 = vpop.permute.xlu1 %965 }
  0xc3   : > { %v964_v20 = vpop.permute.xlu0 %963  ;;  %v1347_v3 = vsel %vm1339_vm4, %v1310_v62, %v966_v17  ;;  %v789_v17 = vpack.c.bf16 %v765_v9, %v764_v8  ;;  %v711_v62 = vld [vmem:[#allocation2 + $0xe4] sm:$0xff]  ;;  %v713_v8 = vld [vmem:[#allocation2 + $0xf4] sm:$0xff]  ;;  %v714_v9 = vld [vmem:[#allocation2 + $0xfc] sm:$0xff] }
  0xc4   : > { %888 = vrot.lane.b32.xlu1 %v566_v13, %s3387_s19  ;;  %v1345_v54 = vsel %vm1339_vm4, %v1308_v51, %v964_v20  ;;  %v763_v13 = vld [vmem:[#allocation2 + $0xcd] sm:$0xff] }
  0xc5   : > { %1228 = vrot.lane.b32.xlu0 %v840_v14, %s3393_s8  ;;  %v658_v51 = vld [vmem:[#allocation2 + $0xeb] sm:$0xff] }
  0xc6   : > { %v1020_v25 = vpop.permute.xlu1 %1019 }
  0xc7   : > { %v1018_v27 = vpop.permute.xlu0 %1017  ;;  %v1384_v63 = vsel %vm1376_vm5, %v1347_v3, %v1020_v25 }
  0xc8   : > { %890 = vrot.lane.b32.xlu1 %v567_v21, %s3387_s19  ;;  %v1382_v56 = vsel %vm1376_vm5, %v1345_v54, %v1018_v27  ;;  %v816_v21 = vld [vmem:[#allocation2 + $0xc6] sm:$0xff]  ;;  %v546_v27 = vld [vmem:[#allocation2 + $0xd1] sm:$0xff] }
  0xc9   : > { %1230 = vrot.lane.b32.xlu0 %v841_v22, %s3393_s8  ;;  %v817_v22 = vld [vmem:[#allocation2 + $0xce] sm:$0xff] }
  0xca   : > { %v1074_v33 = vpop.permute.xlu1 %1073  ;;  %v842_v25 = vpack.c.bf16 %v817_v22, %v816_v21 }
  0xcb   : > { %v1072_v34 = vpop.permute.xlu0 %1071  ;;  %v1421_v7 = vsel %vm1413_vm6, %v1384_v63, %v1074_v33 }
  0xcc   : > { %944 = vrot.lane.b32.xlu1 %v621_v28, %s3386_s18  ;;  %v1419_v59 = vsel %vm1413_vm6, %v1382_v56, %v1072_v34  ;;  %v843_v34 = vpack.c.bf16 %v819_v31, %v818_v30  ;;  %v656_v56 = vld [vmem:[#allocation2 + $0xdb] sm:$0xff]  ;;  %v549_v31 = vld [vmem:[#allocation2 + $0xe9] sm:$0xff] }
  0xcd   : > { %942 = vrot.lane.b32.xlu0 %v3741_v26, %s3386_s18  ;;  %v708_v26 = vld [vmem:[#allocation2 + $0xcc] sm:$0xff]  ;;  %v548_v30 = vld [vmem:[#allocation2 + $0xe1] sm:$0xff] }
  0xce   : > { %v1111_v41 = vpop.permute.xlu1 %1110  ;;  %v732_v57 = vpack.c.bf16 %v708_v26, %v707_v49  ;;  %v476_v49 = vld [vmem:[#allocation2 + $0x50] sm:$0xff]  ;;  %v657_v26 = vld [vmem:[#allocation2 + $0xe3] sm:$0xff]  ;;  %v570_v35 = vpack.c.bf16 %v549_v31, %v548_v30 }
  0xcf   : > { %v1109_v44 = vpop.permute.xlu0 %1108  ;;  %v1458_v10 = vsel %vm1450_vm8, %v1421_v7, %v1111_v41  ;;  %v602_v41 = vld [vmem:[#allocation2 + $0xe2] sm:$0xff]  ;;  %v680_v52 = vpack.c.bf16 %v658_v51, %v657_v26  ;;  %v772_v31 = vld [vmem:[#allocation2 + $0x115] sm:$0xff] }
  0xd0   : > { %981 = vrot.lane.b32.xlu1 %v3793_v36, %s3388_s20  ;;  %v1456_v1 = vsel %vm1450_vm8, %v1419_v59, %v1109_v44  ;;  %v475_v44 = vld [vmem:[#allocation2 + $0x48] sm:$0xff]  ;;  %v3844_v47 = vpack.c.bf16 %v603_v42, %v602_v41  ;;  %v822_v42 = vld [vmem:[#allocation2 + $0xf6] sm:$0xff] }
  0xd1   : > { %979 = vrot.lane.b32.xlu0 %v621_v28, %s3388_s20  ;;  %v547_v28 = vld [vmem:[#allocation2 + $0xd9] sm:$0xff] }
  0xd2   : > { %v1165_v53 = vpop.permute.xlu1 %1164  ;;  %v569_v33 = vpack.c.bf16 %v547_v28, %v546_v27 }
  0xd3   : > { %v1163_v55 = vpop.permute.xlu0 %1162  ;;  %v1495_v14 = vsel %vm1487_vm9, %v1458_v10, %v1165_v53  ;;  %v477_v53 = vld [vmem:[#allocation2 + $0x58] sm:$0xff] }
  0xd4   : > { %1035 = vrot.lane.b32.xlu1 %v678_v45, %s3389_s21  ;;  %v1493_v4 = vsel %vm1487_vm9, %v1456_v1, %v1163_v55  ;;  %v655_v55 = vld [vmem:[#allocation2 + $0xd3] sm:$0xff]  ;;  %v507_v60 = vpack.c.bf16 %v477_v53, %v476_v49 }
  0xd5   : > { %1033 = vrot.lane.b32.xlu0 %v677_v48, %s3389_s21  ;;  %v506_v48 = vpack.c.bf16 %v475_v44, %v474_v43  ;;  %v679_v61 = vpack.c.bf16 %v656_v56, %v655_v55  ;;  %v823_v43 = vld [vmem:[#allocation2 + $0xfe] sm:$0xff]  ;;  %v607_v55 = vld [vmem:[#allocation2 + $0x10a] sm:$0xff] }
  0xd6   : > { %v3813_v2 = vpop.permute.xlu1 %876  ;;  %v605_v49 = vld [vmem:[#allocation2 + $0xfa] sm:$0xff] }
  0xd7   : > { %v1217_v5 = vpop.permute.xlu0 %1216  ;;  %v1262_v59 = vsel %vm278_vm0, %v506_v48, %v3813_v2  ;;  %v604_v48 = vld [vmem:[#allocation2 + $0xf2] sm:$0xff]  ;;  %v478_v56 = vld [vmem:[#allocation2 + $0x60] sm:$0xff] }
  0xd8   : > { %v1530_v6 = vsel %vm1524_vm10, %v1493_v4, %v1217_v5  ;;  %1089 = vrot.lane.b32.xlu1 %v732_v57, %s3390_s22  ;;  %v625_v53 = vpack.c.bf16 %v605_v49, %v604_v48 }
  0xd9   : > { %1087 = vrot.lane.b32.xlu0 %v3769_v58, %s3390_s22  ;;  %3194 = vmatprep.mubr.msk.bf16.mxu0 %vm1583_vm11, %v1530_v6  ;;  %v788_v58 = vpack.c.bf16 %v763_v13, %v762_v12 }
  0xda   : > { %v3827_v11 = vpop.permute.xlu1 %878 }
  0xdb   : > { %v1219_v15 = vpop.permute.xlu0 %1218  ;;  %v1265_v2 = vsel %vm278_vm0, %v507_v60, %v3827_v11 }
  0xdc   : > { %v1532_v16 = vsel %vm1524_vm10, %v1495_v14, %v1219_v15  ;;  %1126 = vrot.lane.b32.xlu1 %v3820_v50, %s3391_s23 }
  0xdd   : > { %1124 = vrot.lane.b32.xlu0 %v732_v57, %s3391_s23  ;;  %3195 = vmatmul.mubr.msk.bf16.gmra.mrb[4].mxu0 %vm1583_vm11, %v1532_v16 }
  0xde   : > { %v3835_v20 = vpop.permute.xlu1 %932 }
  0xdf   : > { %v931_v23 = vpop.permute.xlu0 %930  ;;  %v1314_v10 = vsel %vm1302_vm3, %v1265_v2, %v3835_v20  ;;  %v769_v20 = vld [vmem:[#allocation2 + $0xfd] sm:$0xff] }
  0xe0   : > { %1180 = vrot.lane.b32.xlu1 %v789_v17, %s3392_s29  ;;  %v1312_v1 = vsel %vm1302_vm3, %v1262_v59, %v931_v23  ;;  %v766_v23 = vld [vmem:[#allocation2 + $0xe5] sm:$0xff] }
  0xe1   : > { %1178 = vrot.lane.b32.xlu0 %v788_v58, %s3392_s29  ;;  %v3871_v58 = vpack.c.bf16 %v714_v9, %v713_v8  ;;  %v715_v9 = vld [vmem:[#allocation2 + $0x104] sm:$0xff] }
  0xe2   : > { %v970_v29 = vpop.permute.xlu1 %969 }
  0xe3   : > { %v968_v32 = vpop.permute.xlu0 %967  ;;  %v1351_v14 = vsel %vm1339_vm4, %v1314_v10, %v970_v29  ;;  %v791_v29 = vpack.c.bf16 %v769_v20, %v768_v19  ;;  %v716_v10 = vld [vmem:[#allocation2 + $0x10c] sm:$0xff]  ;;  %v717_v19 = vld [vmem:[#allocation2 + $0x114] sm:$0xff]  ;;  %v718_v20 = vld [vmem:[#allocation2 + $0x11c] sm:$0xff] }
  0xe4   : > { %892 = vrot.lane.b32.xlu1 %v568_v24, %s3387_s19  ;;  %v1349_v4 = vsel %vm1339_vm4, %v1312_v1, %v968_v32  ;;  %v767_v24 = vld [vmem:[#allocation2 + $0xed] sm:$0xff] }
  0xe5   : > { %1232 = vrot.lane.b32.xlu0 %v842_v25, %s3393_s8  ;;  %v3917_v1 = vld [vmem:[#allocation2 + $0x10b] sm:$0xff] }
  0xe6   : > { %v1024_v38 = vpop.permute.xlu1 %1023 }
  0xe7   : > { %v1022_v39 = vpop.permute.xlu0 %1021  ;;  %v1388_v11 = vsel %vm1376_vm5, %v1351_v14, %v1024_v38 }
  0xe8   : > { %894 = vrot.lane.b32.xlu1 %v569_v33, %s3387_s19  ;;  %v1386_v63 = vsel %vm1376_vm5, %v1349_v4, %v1022_v39  ;;  %v820_v33 = vld [vmem:[#allocation2 + $0xe6] sm:$0xff]  ;;  %v550_v39 = vld [vmem:[#allocation2 + $0xf1] sm:$0xff] }
  0xe9   : > { %1234 = vrot.lane.b32.xlu0 %v843_v34, %s3393_s8  ;;  %v821_v34 = vld [vmem:[#allocation2 + $0xee] sm:$0xff] }
  0xea   : > { %v1078_v45 = vpop.permute.xlu1 %1077  ;;  %v844_v38 = vpack.c.bf16 %v821_v34, %v820_v33 }
  0xeb   : > { %v1076_v46 = vpop.permute.xlu0 %1075  ;;  %v1425_v18 = vsel %vm1413_vm6, %v1388_v11, %v1078_v45  ;;  %v736_v11 = vpack.c.bf16 %v716_v10, %v715_v9  ;;  %v484_v9 = vld [vmem:[#allocation2 + $0x90] sm:$0xff]  ;;  %v665_v10 = vld [vmem:[#allocation2 + $0x123] sm:$0xff] }
  0xec   : > { %948 = vrot.lane.b32.xlu1 %v623_v40, %s3386_s18  ;;  %v1423_v7 = vsel %vm1413_vm6, %v1386_v63, %v1076_v46  ;;  %v845_v46 = vpack.c.bf16 %v823_v43, %v822_v42  ;;  %v3925_v63 = vld [vmem:[#allocation2 + $0xfb] sm:$0xff]  ;;  %v553_v43 = vld [vmem:[#allocation2 + $0x109] sm:$0xff] }
  0xed   : > { %946 = vrot.lane.b32.xlu0 %v3793_v36, %s3386_s18  ;;  %v712_v36 = vld [vmem:[#allocation2 + $0xec] sm:$0xff]  ;;  %v552_v42 = vld [vmem:[#allocation2 + $0x101] sm:$0xff] }
  0xee   : > { %v1115_v54 = vpop.permute.xlu1 %1114  ;;  %v734_v6 = vpack.c.bf16 %v712_v36, %v711_v62  ;;  %v3911_v62 = vld [vmem:[#allocation2 + $0x70] sm:$0xff]  ;;  %v3915_v36 = vld [vmem:[#allocation2 + $0x103] sm:$0xff]  ;;  %v572_v49 = vpack.c.bf16 %v553_v43, %v552_v42 }
  0xef   : > { %v1113_v57 = vpop.permute.xlu0 %1112  ;;  %v1462_v21 = vsel %vm1450_vm8, %v1425_v18, %v1115_v54  ;;  %v606_v54 = vld [vmem:[#allocation2 + $0x102] sm:$0xff]  ;;  %v776_v43 = vld [vmem:[#allocation2 + $0x135] sm:$0xff] }
  0xf0   : > { %985 = vrot.lane.b32.xlu1 %v3844_v47, %s3388_s20  ;;  %v1460_v12 = vsel %vm1450_vm8, %v1423_v7, %v1113_v57  ;;  %v479_v57 = vld [vmem:[#allocation2 + $0x68] sm:$0xff]  ;;  %v3909_v60 = vpack.c.bf16 %v607_v55, %v606_v54  ;;  %v826_v55 = vld [vmem:[#allocation2 + $0x116] sm:$0xff] }
  0xf1   : > { %983 = vrot.lane.b32.xlu0 %v623_v40, %s3388_s20  ;;  %v551_v40 = vld [vmem:[#allocation2 + $0xf9] sm:$0xff] }
  0xf2   : > { %v1169_v3 = vpop.permute.xlu1 %1168  ;;  %v571_v45 = vpack.c.bf16 %v551_v40, %v550_v39 }
  0xf3   : > { %v1167_v5 = vpop.permute.xlu0 %1166  ;;  %v1499_v25 = vsel %vm1487_vm9, %v1462_v21, %v1169_v3  ;;  %v3919_v3 = vld [vmem:[#allocation2 + $0x78] sm:$0xff] }
  0xf4   : > { %1039 = vrot.lane.b32.xlu1 %v680_v52, %s3389_s21  ;;  %v1497_v15 = vsel %vm1487_vm9, %v1460_v12, %v1167_v5  ;;  %v3923_v5 = vld [vmem:[#allocation2 + $0xf3] sm:$0xff]  ;;  %v509_v7 = vpack.c.bf16 %v3919_v3, %v3911_v62 }
  0xf5   : > { %1037 = vrot.lane.b32.xlu0 %v679_v61, %s3389_s21  ;;  %v508_v61 = vpack.c.bf16 %v479_v57, %v478_v56  ;;  %v681_v8 = vpack.c.bf16 %v3925_v63, %v3923_v5  ;;  %v827_v56 = vld [vmem:[#allocation2 + $0x11e] sm:$0xff]  ;;  %v629_v5 = vld [vmem:[#allocation2 + $0x12a] sm:$0xff] }
  0xf6   : > { %v3864_v13 = vpop.permute.xlu1 %880  ;;  %v609_v62 = vld [vmem:[#allocation2 + $0x11a] sm:$0xff] }
  0xf7   : > { %v1221_v16 = vpop.permute.xlu0 %1220  ;;  %v1268_v2 = vsel %vm278_vm0, %v508_v61, %v3864_v13  ;;  %v608_v61 = vld [vmem:[#allocation2 + $0x112] sm:$0xff]  ;;  %v482_v63 = vld [vmem:[#allocation2 + $0x80] sm:$0xff] }
  0xf8   : > { %v1534_v17 = vsel %vm1524_vm10, %v1497_v15, %v1221_v16  ;;  %1093 = vrot.lane.b32.xlu1 %v734_v6, %s3390_s22  ;;  %v627_v3 = vpack.c.bf16 %v609_v62, %v608_v61 }
  0xf9   : > { %1091 = vrot.lane.b32.xlu0 %v3820_v50, %s3390_s22  ;;  %3198 = vmatprep.mubr.msk.bf16.mxu0 %vm1583_vm11, %v1534_v17  ;;  %v790_v50 = vpack.c.bf16 %v767_v24, %v766_v23 }
  0xfa   : > { %v3878_v22 = vpop.permute.xlu1 %882 }
  0xfb   : > { %v1223_v27 = vpop.permute.xlu0 %1222  ;;  %v1271_v17 = vsel %vm278_vm0, %v509_v7, %v3878_v22 }
  0xfc   : > { %v1536_v28 = vsel %vm1524_vm10, %v1499_v25, %v1223_v27  ;;  %1130 = vrot.lane.b32.xlu1 %v3871_v58, %s3391_s23 }
  0xfd   : > { %1128 = vrot.lane.b32.xlu0 %v734_v6, %s3391_s23  ;;  %3199 = vmatmul.mubr.msk.bf16.gmra.mrb[8].mxu0 %vm1583_vm11, %v1536_v28 }
  0xfe   : > { %v3886_v32 = vpop.permute.xlu1 %936 }
  0xff   : > { %v3888_v37 = vpop.permute.xlu0 %934  ;;  %v1318_v21 = vsel %vm1302_vm3, %v1271_v17, %v3886_v32  ;;  %v773_v32 = vld [vmem:[#allocation2 + $0x11d] sm:$0xff] }
 0x100   : > { %1184 = vrot.lane.b32.xlu1 %v791_v29, %s3392_s29  ;;  %v1316_v12 = vsel %vm1302_vm3, %v1268_v2, %v3888_v37  ;;  %v770_v37 = vld [vmem:[#allocation2 + $0x105] sm:$0xff] }
 0x101   : > { %1182 = vrot.lane.b32.xlu0 %v790_v50, %s3392_s29  ;;  %v4066_v50 = vpack.c.bf16 %v718_v20, %v717_v19 }
 0x102   : > { %v3892_v41 = vpop.permute.xlu1 %973 }
 0x103   : > { %v3894_v44 = vpop.permute.xlu0 %971  ;;  %v1355_v25 = vsel %vm1339_vm4, %v1318_v21, %v3892_v41  ;;  %v719_v21 = vld [vmem:[#allocation2 + $0x124] sm:$0xff] }
 0x104   : > { %896 = vrot.lane.b32.xlu1 %v570_v35, %s3387_s19  ;;  %v1353_v14 = vsel %vm1339_vm4, %v1316_v12, %v3894_v44  ;;  %v771_v35 = vld [vmem:[#allocation2 + $0x10d] sm:$0xff] }
 0x105   : > { %1236 = vrot.lane.b32.xlu0 %v844_v38, %s3393_s8  ;;  %v792_v41 = vpack.c.bf16 %v771_v35, %v770_v37  ;;  %v666_v12 = vld [vmem:[#allocation2 + $0x12b] sm:$0xff] }
 0x106   : > { %v3898_v26 = vpop.permute.xlu1 %1027  ;;  %v684_v17 = vpack.c.bf16 %v666_v12, %v665_v10 }
 0x107   : > { %v3900_v51 = vpop.permute.xlu0 %1025  ;;  %v1392_v28 = vsel %vm1376_vm5, %v1355_v25, %v3898_v26 }
 0x108   : > { %898 = vrot.lane.b32.xlu1 %v571_v45, %s3387_s19  ;;  %v1390_v16 = vsel %vm1376_vm5, %v1353_v14, %v3900_v51  ;;  %v824_v45 = vld [vmem:[#allocation2 + $0x106] sm:$0xff]  ;;  %v554_v51 = vld [vmem:[#allocation2 + $0x111] sm:$0xff] }
 0x109   : > { %1238 = vrot.lane.b32.xlu0 %v845_v46, %s3393_s8  ;;  %v825_v46 = vld [vmem:[#allocation2 + $0x10e] sm:$0xff] }
 0x10a   : > { %v3904_v52 = vpop.permute.xlu1 %1081  ;;  %v846_v26 = vpack.c.bf16 %v825_v46, %v824_v45 }
 0x10b   : > { %v3906_v59 = vpop.permute.xlu0 %1079  ;;  %v1429_v30 = vsel %vm1413_vm6, %v1392_v28, %v3904_v52 }
 0x10c   : > { %952 = vrot.lane.b32.xlu1 %v625_v53, %s3386_s18  ;;  %v1427_v18 = vsel %vm1413_vm6, %v1390_v16, %v3906_v59  ;;  %v847_v59 = vpack.c.bf16 %v827_v56, %v826_v55  ;;  %v664_v16 = vld [vmem:[#allocation2 + $0x11b] sm:$0xff] }
 0x10d   : > { %950 = vrot.lane.b32.xlu0 %v3844_v47, %s3386_s18  ;;  %v682_v47 = vpack.c.bf16 %v3917_v1, %v3915_v36  ;;  %v830_v55 = vld [vmem:[#allocation2 + $0x136] sm:$0xff]  ;;  %v831_v56 = vld [vmem:[#allocation2 + $0x13e] sm:$0xff] }
 0x10e   : > { %v3921_v4 = vpop.permute.xlu1 %1118  ;;  %v849_v62 = vpack.c.bf16 %v831_v56, %v830_v55 }
 0x10f   : > { %v3927_v6 = vpop.permute.xlu0 %1116  ;;  %v1466_v33 = vsel %vm1450_vm8, %v1429_v30, %v3921_v4  ;;  %v628_v4 = vld [vmem:[#allocation2 + $0x122] sm:$0xff] }
 0x110   : > { %989 = vrot.lane.b32.xlu1 %v3909_v60, %s3388_s20  ;;  %v1464_v23 = vsel %vm1450_vm8, %v1427_v18, %v3927_v6  ;;  %v483_v6 = vld [vmem:[#allocation2 + $0x88] sm:$0xff]  ;;  %v630_v7 = vpack.c.bf16 %v629_v5, %v628_v4 }
 0x111   : > { %987 = vrot.lane.b32.xlu0 %v625_v53, %s3388_s20  ;;  %v555_v53 = vld [vmem:[#allocation2 + $0x119] sm:$0xff] }
 0x112   : > { %v1173_v13 = vpop.permute.xlu1 %1172  ;;  %v573_v52 = vpack.c.bf16 %v555_v53, %v554_v51 }
 0x113   : > { %v1171_v15 = vpop.permute.xlu0 %1170  ;;  %v1503_v38 = vsel %vm1487_vm9, %v1466_v33, %v1173_v13  ;;  %v485_v13 = vld [vmem:[#allocation2 + $0x98] sm:$0xff] }
 0x114   : > { %1043 = vrot.lane.b32.xlu1 %v682_v47, %s3389_s21  ;;  %v1501_v22 = vsel %vm1487_vm9, %v1464_v23, %v1171_v15  ;;  %v663_v15 = vld [vmem:[#allocation2 + $0x113] sm:$0xff]  ;;  %v511_v19 = vpack.c.bf16 %v485_v13, %v484_v9 }
 0x115   : > { %1041 = vrot.lane.b32.xlu0 %v681_v8, %s3389_s21  ;;  %v510_v8 = vpack.c.bf16 %v483_v6, %v482_v63  ;;  %v683_v20 = vpack.c.bf16 %v664_v16, %v663_v15  ;;  %v720_v23 = vld [vmem:[#allocation2 + $0x12c] sm:$0xff]  ;;  %v486_v63 = vld [vmem:[#allocation2 + $0xa0] sm:$0xff]  ;;  %v489_v9 = vld [vmem:[#allocation2 + $0xb8] sm:$0xff] }
 0x116   : > { %v4057_v24 = vpop.permute.xlu1 %884  ;;  %v487_v6 = vld [vmem:[#allocation2 + $0xa8] sm:$0xff] }
 0x117   : > { %v1225_v27 = vpop.permute.xlu0 %1224  ;;  %v1274_v18 = vsel %vm278_vm0, %v510_v8, %v4057_v24  ;;  %v488_v8 = vld [vmem:[#allocation2 + $0xb0] sm:$0xff] }
 0x118   : > { %v1538_v29 = vsel %vm1524_vm10, %v1501_v22, %v1225_v27  ;;  %1097 = vrot.lane.b32.xlu1 %v736_v11, %s3390_s22 }
 0x119   : > { %1095 = vrot.lane.b32.xlu0 %v3871_v58, %s3390_s22  ;;  %3202 = vmatprep.mubr.msk.bf16.mxu0 %vm1583_vm11, %v1538_v29  ;;  %v793_v58 = vpack.c.bf16 %v773_v32, %v772_v31  ;;  %v738_v29 = vpack.c.bf16 %v720_v23, %v719_v21  ;;  %v739_v31 = vld [vmem:[#allocation2 + $0x134] sm:$0xff]  ;;  %v740_v32 = vld [vmem:[#allocation2 + $0x13c] sm:$0xff] }
 0x11a   : > { %v4075_v34 = vpop.permute.xlu1 %886 }
 0x11b   : > { %v1227_v39 = vpop.permute.xlu0 %1226  ;;  %v1277_v24 = vsel %vm278_vm0, %v511_v19, %v4075_v34 }
 0x11c   : > { %v1540_v40 = vsel %vm1524_vm10, %v1503_v38, %v1227_v39  ;;  %1134 = vrot.lane.b32.xlu1 %v4066_v50, %s3391_s23 }
 0x11d   : > { %1132 = vrot.lane.b32.xlu0 %v736_v11, %s3391_s23  ;;  %3203 = vmatmul.mubr.msk.bf16.gmra.mrb[12].mxu0 %vm1583_vm11, %v1540_v40 }
 0x11e   : > { %v4083_v44 = vpop.permute.xlu1 %940 }
 0x11f   : > { %v939_v48 = vpop.permute.xlu0 %938  ;;  %v1322_v33 = vsel %vm1302_vm3, %v1277_v24, %v4083_v44  ;;  %v777_v44 = vld [vmem:[#allocation2 + $0x13d] sm:$0xff] }
 0x120   : > { %1188 = vrot.lane.b32.xlu1 %v793_v58, %s3392_s29 }
 0x121   : > { %1186 = vrot.lane.b32.xlu0 %v792_v41, %s3392_s29  ;;  %v741_v41 = vpack.c.bf16 %v740_v32, %v739_v31 }
 0x122   : > { %v978_v54 = vpop.permute.xlu1 %977 }
 0x123   : > { %v976_v57 = vpop.permute.xlu0 %975  ;;  %v1359_v38 = vsel %vm1339_vm4, %v1322_v33, %v978_v54  ;;  %v795_v54 = vpack.c.bf16 %v777_v44, %v776_v43 }
 0x124   : > { %900 = vrot.lane.b32.xlu1 %v572_v49, %s3387_s19  ;;  %v775_v49 = vld [vmem:[#allocation2 + $0x12d] sm:$0xff] }
 0x125   : > { %1240 = vrot.lane.b32.xlu0 %v846_v26, %s3393_s8 }
 0x126   : > { %v1032_v36 = vpop.permute.xlu1 %1031 }
 0x127   : > { %v1030_v1 = vpop.permute.xlu0 %1029  ;;  %v1396_v58 = vsel %vm1376_vm5, %v1359_v38, %v1032_v36 }
 0x128   : > { %902 = vrot.lane.b32.xlu1 %v573_v52, %s3387_s19  ;;  %v828_v52 = vld [vmem:[#allocation2 + $0x126] sm:$0xff]  ;;  %s3396_s19 = smov 16  }
 0x129   : > { %1242 = vrot.lane.b32.xlu0 %v847_v59, %s3393_s8  ;;  %v829_v59 = vld [vmem:[#allocation2 + $0x12e] sm:$0xff] }
 0x12a   : > { %v1086_v47 = vpop.permute.xlu1 %1085  ;;  %v848_v36 = vpack.c.bf16 %v829_v59, %v828_v52 }
 0x12b   : > { %v1084_v2 = vpop.permute.xlu0 %1083  ;;  %v1433_v42 = vsel %vm1413_vm6, %v1396_v58, %v1086_v47 }
 0x12c   : > { %956 = vrot.lane.b32.xlu1 %v627_v3, %s3386_s18 }
 0x12d   : > { %954 = vrot.lane.b32.xlu0 %v3909_v60, %s3386_s18  ;;  %v1320_v60 = vsel %vm1302_vm3, %v1274_v18, %v939_v48  ;;  %v774_v48 = vld [vmem:[#allocation2 + $0x125] sm:$0xff]  ;;  %s3395_s18 = smov 32  }
 0x12e   : > { %v1123_v14 = vpop.permute.xlu1 %1122  ;;  %v1357_v22 = vsel %vm1339_vm4, %v1320_v60, %v976_v57 }
 0x12f   : > { %v1121_v11 = vpop.permute.xlu0 %1120  ;;  %v1394_v28 = vsel %vm1376_vm5, %v1357_v22, %v1030_v1  ;;  %v1470_v45 = vsel %vm1450_vm8, %v1433_v42, %v1123_v14  ;;  %v513_v14 = vpack.c.bf16 %v489_v9, %v488_v8  ;;  %v491_v42 = vld [vmem:[#allocation2 + $0xc8] sm:$0xff] }
 0x130   : > { %993 = vrot.lane.b32.xlu1 %v630_v7, %s3388_s20  ;;  %v1431_v30 = vsel %vm1413_vm6, %v1394_v28, %v1084_v2  ;;  %v512_v7 = vpack.c.bf16 %v487_v6, %v486_v63 }
 0x131   : > { %991 = vrot.lane.b32.xlu0 %v627_v3, %s3388_s20  ;;  %v1468_v37 = vsel %vm1450_vm8, %v1431_v30, %v1121_v11  ;;  %s3401_s20 = smov 96  }
 0x132   : > { %v1177_v25 = vpop.permute.xlu1 %1176 }
 0x133   : > { %v1175_v27 = vpop.permute.xlu0 %1174  ;;  %v1507_v26 = vsel %vm1487_vm9, %v1470_v45, %v1177_v25 }
 0x134   : > { %1047 = vrot.lane.b32.xlu1 %v684_v17, %s3389_s21  ;;  %v1505_v39 = vsel %vm1487_vm9, %v1468_v37, %v1175_v27 }
 0x135   : > { %1045 = vrot.lane.b32.xlu0 %v683_v20, %s3389_s21  ;;  %s3402_s21 = smov 112  }
 0x136   : > { %v889_v35 = vpop.permute.xlu1 %888 }
 0x137   : > { %v1229_v40 = vpop.permute.xlu0 %1228  ;;  %v1280_v13 = vsel %vm278_vm0, %v512_v7, %v889_v35 }
 0x138   : > { %v1542_v34 = vsel %vm1524_vm10, %v1505_v39, %v1229_v40  ;;  %1101 = vrot.lane.b32.xlu1 %v738_v29, %s3390_s22 }
 0x139   : > { %1099 = vrot.lane.b32.xlu0 %v4066_v50, %s3390_s22  ;;  %3206 = vmatprep.mubr.msk.bf16.mxu0 %vm1583_vm11, %v1542_v34  ;;  %v794_v50 = vpack.c.bf16 %v775_v49, %v774_v48  ;;  %v493_v48 = vld [vmem:[#allocation2 + $0xd8] sm:$0xff]  ;;  %s3403_s22 = smov [#allocation8]  }
 0x13a   : > { %v891_v46 = vpop.permute.xlu1 %890 }
 0x13b   : > { %v1231_v51 = vpop.permute.xlu0 %1230  ;;  %v1283_v19 = vsel %vm278_vm0, %v513_v14, %v891_v46  ;;  %v492_v46 = vld [vmem:[#allocation2 + $0xd0] sm:$0xff] }
 0x13c   : > { %v1544_v53 = vsel %vm1524_vm10, %v1507_v26, %v1231_v51  ;;  %1138 = vrot.lane.b32.xlu1 %v741_v41, %s3391_s23  ;;  %v490_v41 = vld [vmem:[#allocation2 + $0xc0] sm:$0xff] }
 0x13d   : > { %1136 = vrot.lane.b32.xlu0 %v738_v29, %s3391_s23  ;;  %3207 = vmatmul.mubr.msk.bf16.gmra.mrb[16].mxu0 %vm1583_vm11, %v1544_v53  ;;  %v514_v45 = vpack.c.bf16 %v491_v42, %v490_v41  ;;  %v515_v53 = vpack.c.bf16 %v493_v48, %v492_v46  ;;  %s3325_s23 = sshll.u32 %s3403_s22, 4  ;;  %s3326_s23 = int_to_ptr.vmem [resolvable:$false] %s3325_s23 }
 0x13e   : > { %v945_v57 = vpop.permute.xlu1 %944 }
 0x13f   : > { %v943_v61 = vpop.permute.xlu0 %942  ;;  %v1326_v21 = vsel %vm1302_vm3, %v1283_v19, %v945_v57 }
 0x140   : > { %1192 = vrot.lane.b32.xlu1 %v795_v54, %s3392_s29  ;;  %v1324_v15 = vsel %vm1302_vm3, %v1280_v13, %v943_v61 }
 0x141   : > { %1190 = vrot.lane.b32.xlu0 %v794_v50, %s3392_s29  ;;  %s269_s29 = sand.u32 1, %s3375_s25  }
 0x142   : > { %v982_v1 = vpop.permute.xlu1 %981  ;;  %s4599_s28 = scalar_lea.sflag [#allocation9], %s269_s29 }
 0x143   : > { %v980_v3 = vpop.permute.xlu0 %979  ;;  %v1363_v25 = vsel %vm1339_vm4, %v1326_v21, %v982_v1  ;;  %v496_v21 = vld [vmem:[#allocation2 + $0xf0] sm:$0xff] }
 0x144   : > { %1246 = vrot.lane.b32.xlu1 %v849_v62, %s3393_s8  ;;  %v1361_v11 = vsel %vm1339_vm4, %v1324_v15, %v980_v3 }
 0x145   : > { %1244 = vrot.lane.b32.xlu0 %v848_v36, %s3393_s8  ;;  %s3066_s8 = sshll.u32 %s269_s29, 2 }
 0x146   : > { %v1036_v4 = vpop.permute.xlu1 %1035  ;;  %s271_s13 = scalar_lea.vmem [#allocation8], %s3066_s8 }
 0x147   : > { %v1034_v5 = vpop.permute.xlu0 %1033  ;;  %v1400_v28 = vsel %vm1376_vm5, %v1363_v25, %v1036_v4  ;;  %v4167_v25 = vld [vmem:[%s4644_s2] ss:$0 sm:$0xff]  ;;  %s3000_s17 = sshll.u32 %s271_s13, 4  ;;  %s4597_s17 = int_to_ptr.vmem [resolvable:$true] %s3000_s17 }
 0x148   : > { %v1398_v18 = vsel %vm1376_vm5, %v1361_v11, %v1034_v5  ;;  %v494_v11 = vld [vmem:[#allocation2 + $0xe0] sm:$0xff]  ;;  %p3328_p0 = scmp.lt.s32.totalorder %s4597_s17, %s3326_s23 }
 0x14a   : > { %v1090_v47 = vpop.permute.xlu1 %1089 }
 0x14b   : > { %v1088_v2 = vpop.permute.xlu0 %1087  ;;  %v1437_v24 = vsel %vm1413_vm6, %v1400_v28, %v1090_v47 }
 0x14c   : > { %v1435_v20 = vsel %vm1413_vm6, %v1398_v18, %v1088_v2 }
 0x14e   : > { %v1127_v10 = vpop.permute.xlu1 %1126 }
 0x14f   : > { %v1125_v12 = vpop.permute.xlu0 %1124  ;;  %v1474_v30 = vsel %vm1450_vm8, %v1437_v24, %v1127_v10 }
 0x150   : > { %v1472_v23 = vsel %vm1450_vm8, %v1435_v20, %v1125_v12 }
 0x152   : > { %v1181_v16 = vpop.permute.xlu1 %1180 }
 0x153   : > { %v1179_v17 = vpop.permute.xlu0 %1178  ;;  %v1511_v32 = vsel %vm1487_vm9, %v1474_v30, %v1181_v16 }
 0x154   : > { %v1509_v22 = vsel %vm1487_vm9, %v1472_v23, %v1179_v17  ;;  %v495_v17 = vld [vmem:[#allocation2 + $0xe8] sm:$0xff]  ;;  %v497_v23 = vld [vmem:[#allocation2 + $0xf8] sm:$0xff] }
 0x155   : > { %v516_v20 = vpack.c.bf16 %v495_v17, %v494_v11 }
 0x156   : > { %v893_v60 = vpop.permute.xlu1 %892 }
 0x157   : > { %v1233_v27 = vpop.permute.xlu0 %1232  ;;  %v1286_v51 = vsel %vm278_vm0, %v514_v45, %v893_v60 }
 0x158   : > { %v1546_v29 = vsel %vm1524_vm10, %v1509_v22, %v1233_v27 }
 0x159   : > { %3210 = vmatprep.mubr.msk.bf16.mxu0 %vm1583_vm11, %v1546_v29  ;;  %v517_v29 = vpack.c.bf16 %v497_v23, %v496_v21 }
 0x15a   : > { %v895_v31 = vpop.permute.xlu1 %894 }
 0x15b   : > { %v1235_v33 = vpop.permute.xlu0 %1234  ;;  %v1289_v52 = vsel %vm278_vm0, %v515_v53, %v895_v31 }
 0x15c   : > { %v1548_v37 = vsel %vm1524_vm10, %v1511_v32, %v1235_v33 }
 0x15d   : > { %3211 = vmatmul.mubr.msk.bf16.gmra.mrb[20].mxu0 %vm1583_vm11, %v1548_v37 }
 0x15e   : > { %v949_v35 = vpop.permute.xlu1 %948 }
 0x15f   : > { %v947_v38 = vpop.permute.xlu0 %946  ;;  %v1330_v61 = vsel %vm1302_vm3, %v1289_v52, %v949_v35 }
 0x160   : > { %v1328_v54 = vsel %vm1302_vm3, %v1286_v51, %v947_v38 }
 0x162   : > { %v986_v39 = vpop.permute.xlu1 %985 }
 0x163   : > { %v984_v40 = vpop.permute.xlu0 %983  ;;  %v1367_v1 = vsel %vm1339_vm4, %v1330_v61, %v986_v39 }
 0x164   : > { %v1365_v55 = vsel %vm1339_vm4, %v1328_v54, %v984_v40 }
 0x166   : > { %v1040_v58 = vpop.permute.xlu1 %1039 }
 0x167   : > { %v1038_v34 = vpop.permute.xlu0 %1037  ;;  %v1404_v5 = vsel %vm1376_vm5, %v1367_v1, %v1040_v58 }
 0x168   : > { %v1402_v57 = vsel %vm1376_vm5, %v1365_v55, %v1038_v34 }
 0x16a   : > { %v1094_v43 = vpop.permute.xlu1 %1093 }
 0x16b   : > { %v1092_v44 = vpop.permute.xlu0 %1091  ;;  %v1441_v6 = vsel %vm1413_vm6, %v1404_v5, %v1094_v43 }
 0x16c   : > { %v1439_v59 = vsel %vm1413_vm6, %v1402_v57, %v1092_v44 }
 0x16e   : > { %v1131_v49 = vpop.permute.xlu1 %1130 }
 0x16f   : > { %v1129_v26 = vpop.permute.xlu0 %1128  ;;  %v1478_v47 = vsel %vm1450_vm8, %v1441_v6, %v1131_v49  ;;  %v500_v6 = vld [vmem:[#allocation2 + $0x110] sm:$0xff] }
 0x170   : > { %v1476_v62 = vsel %vm1450_vm8, %v1439_v59, %v1129_v26 }
 0x172   : > { %v1185_v50 = vpop.permute.xlu1 %1184 }
 0x173   : > { %v1183_v56 = vpop.permute.xlu0 %1182  ;;  %v1515_v7 = vsel %vm1487_vm9, %v1478_v47, %v1185_v50  ;;  %v501_v47 = vld [vmem:[#allocation2 + $0x118] sm:$0xff] }
 0x174   : > { %v1513_v3 = vsel %vm1487_vm9, %v1476_v62, %v1183_v56 }
 0x176   : > { %v897_v36 = vpop.permute.xlu1 %896 }
 0x177   : > { %v1237_v4 = vpop.permute.xlu0 %1236  ;;  %v1292_v28 = vsel %vm278_vm0, %v516_v20, %v897_v36 }
 0x178   : > { %v1550_v63 = vsel %vm1524_vm10, %v1513_v3, %v1237_v4 }
 0x179   : > { %3214 = vmatprep.mubr.msk.bf16.mxu0 %vm1583_vm11, %v1550_v63 }
 0x17a   : > { %v899_v2 = vpop.permute.xlu1 %898 }
 0x17b   : > { %v1239_v8 = vpop.permute.xlu0 %1238  ;;  %v1295_v43 = vsel %vm278_vm0, %v517_v29, %v899_v2  ;;  %v498_v2 = vld [vmem:[#allocation2 + $0x100] sm:$0xff] }
 0x17c   : > { %v1552_v9 = vsel %vm1524_vm10, %v1515_v7, %v1239_v8  ;;  %v499_v7 = vld [vmem:[#allocation2 + $0x108] sm:$0xff] }
 0x17d   : > { %3215 = vmatmul.mubr.msk.bf16.gmra.mrb[24].mxu0 %vm1583_vm11, %v1552_v9 }
 0x17e   : > { %v953_v10 = vpop.permute.xlu1 %952 }
 0x17f   : > { %v951_v12 = vpop.permute.xlu0 %950  ;;  %v1334_v46 = vsel %vm1302_vm3, %v1295_v43, %v953_v10  ;;  %v519_v10 = vpack.c.bf16 %v501_v47, %v500_v6 }
 0x180   : > { %v1332_v31 = vsel %vm1302_vm3, %v1292_v28, %v951_v12  ;;  %v518_v12 = vpack.c.bf16 %v499_v7, %v498_v2 }
 0x182   : > { %v990_v13 = vpop.permute.xlu1 %989 }
 0x183   : > { %v988_v14 = vpop.permute.xlu0 %987  ;;  %v1371_v51 = vsel %vm1339_vm4, %v1334_v46, %v990_v13 }
 0x184   : > { %v1369_v35 = vsel %vm1339_vm4, %v1332_v31, %v988_v14 }
 0x186   : > { %v1044_v15 = vpop.permute.xlu1 %1043 }
 0x187   : > { %v1042_v16 = vpop.permute.xlu0 %1041  ;;  %v1408_v50 = vsel %vm1376_vm5, %v1371_v51, %v1044_v15 }
 0x188   : > { %v1406_v34 = vsel %vm1376_vm5, %v1369_v35, %v1042_v16 }
 0x18a   : > { %v1098_v18 = vpop.permute.xlu1 %1097 }
 0x18b   : > { %v1096_v19 = vpop.permute.xlu0 %1095  ;;  %v1445_v56 = vsel %vm1413_vm6, %v1408_v50, %v1098_v18 }
 0x18c   : > { %v1443_v44 = vsel %vm1413_vm6, %v1406_v34, %v1096_v19 }
 0x18e   : > { %v1135_v60 = vpop.permute.xlu1 %1134 }
 0x18f   : > { %v1133_v22 = vpop.permute.xlu0 %1132  ;;  %v1482_v57 = vsel %vm1450_vm8, %v1445_v56, %v1135_v60  ;;  %v2062_v56 = vld [vmem:[#allocation4 + $0x1] sm:$0xff] }
 0x190   : > { %v3192_v27 = vpop.f32.mrb[0].mxu0  ;;  %v1480_v48 = vsel %vm1450_vm8, %v1443_v44, %v1133_v22 }
 0x191   : > { %v1670_v24 = vadd.f32 %v3192_v27, %v4167_v25  ;;  %v1661_v30 = vpop.f32.mrb[1].mxu0 }
 0x192   : > { %v1662_v32 = vadd.f32 %v4167_v25, %v1661_v30  ;;  %v3193_v33 = vpop.f32.mrb[2].mxu0  ;;  %v1189_v37 = vpop.permute.xlu1 %1188 }
 0x193   : > { %v1806_v38 = vmax.f32 %v1670_v24, 0.0  ;;  %v1673_v39 = vadd.f32 %v3193_v33, %v4167_v25  ;;  %v1187_v40 = vpop.permute.xlu0 %1186  ;;  %v1664_v58 = vpop.f32.mrb[3].mxu0  ;;  %v1519_v59 = vsel %vm1487_vm9, %v1482_v57, %v1189_v37 }
 0x194   : > { %v1804_v41 = vmax.f32 %v1662_v32, 0.0  ;;  %v1665_v42 = vadd.f32 %v4167_v25, %v1664_v58  ;;  %v1517_v53 = vsel %vm1487_vm9, %v1480_v48, %v1187_v40 }
 0x195   : > { %1842 = vst.msk [vmem:[#allocation3 + $0x10] sm:$0xff] %vm321_vm12, %v1806_v38  ;;  %v1807_v45 = vmax.f32 %v1673_v39, 0.0 }
 0x196   : > { %1840 = vst.msk [vmem:[#allocation3] sm:$0xff] %vm321_vm12, %v1804_v41  ;;  %v1805_v49 = vmax.f32 %v1665_v42, 0.0  ;;  %v901_v26 = vpop.permute.xlu1 %900 }
 0x197   : > { %1843 = vst.msk [vmem:[#allocation3 + $0x18] sm:$0xff] %vm321_vm12, %v1807_v45  ;;  %v1241_v54 = vpop.permute.xlu0 %1240  ;;  %v1298_v11 = vsel %vm278_vm0, %v518_v12, %v901_v26 }
 0x198   : > { %1841 = vst.msk [vmem:[#allocation3 + $0x8] sm:$0xff] %vm321_vm12, %v1805_v49  ;;  %v1554_v55 = vsel %vm1524_vm10, %v1517_v53, %v1241_v54 }
 0x199   : > { %3218 = vmatprep.mubr.msk.bf16.mxu0 %vm1583_vm11, %v1554_v55  ;;  %v2077_v55 = vld [vmem:[#allocation4 + $0x2] sm:$0xff] }
 0x19a   : > { %v903_v52 = vpop.permute.xlu1 %902 }
 0x19b   : > { %v1243_v61 = vpop.permute.xlu0 %1242  ;;  %v1301_v15 = vsel %vm278_vm0, %v519_v10, %v903_v52  ;;  %vm2030_vm0 = vcmask 130050  }
 0x19c   : > { %v1556_v62 = vsel %vm1524_vm10, %v1519_v59, %v1243_v61 }
 0x19d   : > { %3219 = vmatmul.mubr.msk.bf16.gmra.mrb[28].mxu0 %vm1583_vm11, %v1556_v62 }
 0x19e   : > { %v957_v36 = vpop.permute.xlu1 %956 }
 0x19f   : > { %v955_v1 = vpop.permute.xlu0 %954  ;;  %v1338_v17 = vsel %vm1302_vm3, %v1301_v15, %v957_v36  ;;  %v1876_v48 = vld [vmem:[#allocation3] ss:$2 sm:$0xff]  ;;  %v1904_v49 = vld [vmem:[#allocation3 + $0x1] ss:$2 sm:$0xff] }
 0x1a0   : > { %v1336_v20 = vsel %vm1302_vm3, %v1298_v11, %v955_v1  ;;  %v1987_v26 = vmax.f32 %v1876_v48, %v1904_v49  ;;  %vm2035_vm3 = vcmask 125952  }
 0x1a2   : > { %v994_v3 = vpop.permute.xlu1 %993 }
 0x1a3   : > { %v992_v4 = vpop.permute.xlu0 %991  ;;  %v1375_v21 = vsel %vm1339_vm4, %v1338_v17, %v994_v3 }
 0x1a4   : > { %v1373_v27 = vsel %vm1339_vm4, %v1336_v20, %v992_v4  ;;  %vm2037_vm4 = vcmask 130054  }
 0x1a6   : > { %v1048_v5 = vpop.permute.xlu1 %1047 }
 0x1a7   : > { %v1046_v63 = vpop.permute.xlu0 %1045  ;;  %v1412_v28 = vsel %vm1376_vm5, %v1375_v21, %v1048_v5 }
 0x1a8   : > { %v1410_v32 = vsel %vm1376_vm5, %v1373_v27, %v1046_v63  ;;  %v3295_v27 = vld [vmem:[%s4645_s3 + $0x8] sm:$0xff]   ;;  %vm2294_vm5 = vcmask 392192  }
 0x1aa   : > { %v1102_v8 = vpop.permute.xlu1 %1101 }
 0x1ab   : > { %v1100_v9 = vpop.permute.xlu0 %1099  ;;  %v1449_v33 = vsel %vm1413_vm6, %v1412_v28, %v1102_v8  ;;  %v3296_v28 = vld [vmem:[%s4645_s3 + $0x10] sm:$0xff]  }
 0x1ac   : > { %v1447_v38 = vsel %vm1413_vm6, %v1410_v32, %v1100_v9  ;;  %vm2315_vm6 = vcmask 654336  }
 0x1ae   : > { %v1139_v13 = vpop.permute.xlu1 %1138 }
 0x1af   : > { %v1137_v14 = vpop.permute.xlu0 %1136  ;;  %v1486_v39 = vsel %vm1450_vm8, %v1449_v33, %v1139_v13 }
 0x1b0   : > { %v3196_v16 = vpop.f32.mrb[4].mxu0  ;;  %v1484_v58 = vsel %vm1450_vm8, %v1447_v38, %v1137_v14  ;;  %vm2337_vm8 = vcmask 916480  }
 0x1b1   : > { %v1686_v18 = vadd.f32 %v3196_v16, %v4167_v25  ;;  %v1677_v19 = vpop.f32.mrb[5].mxu0 }
 0x1b2   : > { %v1678_v23 = vadd.f32 %v4167_v25, %v1677_v19  ;;  %v3197_v60 = vpop.f32.mrb[6].mxu0  ;;  %v1193_v22 = vpop.permute.xlu1 %1192 }
 0x1b3   : > { %v1810_v29 = vmax.f32 %v1686_v18, 0.0  ;;  %v1689_v24 = vadd.f32 %v3197_v60, %v4167_v25  ;;  %v1191_v30 = vpop.permute.xlu0 %1190  ;;  %v1680_v31 = vpop.f32.mrb[7].mxu0  ;;  %v1523_v34 = vsel %vm1487_vm9, %v1486_v39, %v1193_v22  ;;  %v3397_v22 = vmov 0  }
 0x1b4   : > { %v1808_v37 = vmax.f32 %v1678_v23, 0.0  ;;  %v1681_v35 = vadd.f32 %v4167_v25, %v1680_v31  ;;  %v1521_v43 = vsel %vm1487_vm9, %v1484_v58, %v1191_v30  ;;  %v3294_v23 = vld [vmem:[%s4645_s3] sm:$0xff]   ;;  %2447 = vmatprep.subr.bf16.mxu1 %v3397_v22  ;;  %vm388_vm9 = vcmask 254976  }
 0x1b5   : > { %1846 = vst.msk [vmem:[#allocation3 + $0x30] sm:$0xff] %vm321_vm12, %v1810_v29  ;;  %v1811_v40 = vmax.f32 %v1689_v24, 0.0  ;;  %2448 = vmatpush1.bf16.msra.mxu1 %v3294_v23 }
 0x1b6   : > { %1844 = vst.msk [vmem:[#allocation3 + $0x20] sm:$0xff] %vm321_vm12, %v1808_v37  ;;  %v1809_v41 = vmax.f32 %v1681_v35, 0.0  ;;  %v1247_v42 = vpop.permute.xlu1 %1246  ;;  %2449 = vmatprep.subr.bf16.mxu1 %v3397_v22  ;;  %v3297_v37 = vld [vmem:[%s4645_s3 + $0x18] sm:$0xff]  }
 0x1b7   : > { %1847 = vst.msk [vmem:[#allocation3 + $0x38] sm:$0xff] %vm321_vm12, %v1811_v40  ;;  %v1560_v44 = vsel %vm1524_vm10, %v1523_v34, %v1247_v42  ;;  %v1245_v45 = vpop.permute.xlu0 %1244  ;;  %v3298_v34 = vld [vmem:[%s4645_s3 + $0x20] sm:$0xff]  }
 0x1b8   : > { %1845 = vst.msk [vmem:[#allocation3 + $0x28] sm:$0xff] %vm321_vm12, %v1809_v41  ;;  %v1558_v46 = vsel %vm1524_vm10, %v1521_v43, %v1245_v45  ;;  %vm394_vm10 = vcmask 259072  }
 0x1b9   : > { %3222 = vmatprep.mubr.msk.bf16.mxu0 %vm1583_vm11, %v1558_v46  ;;  %2450 = vmatpush1.bf16.msra.mxu1 %v3295_v27  ;;  %389 = vst.msk [vmem:[#allocation5 + $0x58] sm:$0x3] %vm388_vm9, %v3385_v0 }
 0x1ba   : > { %3223 = vmatmul.mubr.msk.bf16.gmra.mrb[32].mxu0 %vm1583_vm11, %v1560_v44  ;;  %2451 = vmatprep.subr.bf16.mxu1 %v3397_v22  ;;  %395 = vst.msk [vmem:[#allocation6 + $0x20] sm:$0x3f] %vm394_vm10, %v3385_v0  ;;  %vm2594_vm11 = vcmask 257024   ;;  %v3303_v0 = vld [vmem:[%s4647_s5 + $0x80] sm:$0xff]  }
 0x1bb   : > { %3226 = vmatprep.subr.bf16.mxu0 %v3303_v0 }
 0x1bc   : > { %3227 = vmatpush3.bf16.msra.mxu0 %v3303_v0 }
 0x1bd   : > { %v1932_v51 = vld [vmem:[#allocation3 + $0x12] ss:$2 sm:$0xff]  ;;  %v1960_v54 = vld [vmem:[#allocation3 + $0x13] ss:$2 sm:$0xff]  ;;  %2452 = vmatpush1.bf16.msra.mxu1 %v3296_v28 }
 0x1be   : > { %v2001_v53 = vmax.f32 %v1987_v26, %v1932_v51  ;;  %v1880_v12 = vld [vmem:[#allocation3 + $0x30] ss:$2 sm:$0xff]  ;;  %v1908_v13 = vld [vmem:[#allocation3 + $0x31] ss:$2 sm:$0xff]  ;;  %2453 = vmatprep.subr.bf16.mxu1 %v3397_v22  ;;  %v3299_v26 = vld [vmem:[%s4645_s3 + $0x28] sm:$0xff]  }
 0x1bf   : > { %v1878_v9 = vld [vmem:[#allocation3 + $0x20] ss:$2 sm:$0xff]  ;;  %v1906_v10 = vld [vmem:[#allocation3 + $0x21] ss:$2 sm:$0xff]  ;;  %v1989_v16 = vmax.f32 %v1880_v12, %v1908_v13 }
 0x1c0   : > { %v2015_v50 = vmax.f32 %v2001_v53, %v1960_v54  ;;  %v1988_v14 = vmax.f32 %v1878_v9, %v1906_v10 }
 0x1c1   : > { %2454 = vmatpush1.bf16.msra.mxu1 %v3297_v37 }
 0x1c2   : > { %2029 = vst.msk [vmem:[#allocation4 + $0xb] sm:$0xff] %vm321_vm12, %v2015_v50  ;;  %2455 = vmatprep.subr.bf16.mxu1 %v3397_v22  ;;  %v3300_v50 = vld [vmem:[%s4645_s3 + $0x30] sm:$0xff]  }
 0x1c5   : > { %2456 = vmatpush1.bf16.msra.mxu1 %v3298_v34 }
 0x1c6   : > { %2457 = vmatprep.subr.bf16.mxu1 %v3397_v22 }
 0x1c9   : > { %v4254_v57 = vld [vmem:[#allocation4 + $0xa] sm:$0xff]  ;;  %2458 = vmatpush1.bf16.msra.mxu1 %v3299_v26 }
 0x1ca   : > { %v2063_v52 = vld [vmem:[#allocation4 + $0x9] sm:$0xff]  ;;  %v2087_v59 = vpack.c.bf16 %v4254_v57, %v2077_v55  ;;  %2459 = vmatprep.subr.bf16.mxu1 %v3397_v22 }
 0x1cb   : > { %v2072_v61 = vpack.c.bf16 %v2063_v52, %v2062_v56  ;;  %v2098_v29 = vld [vmem:[#allocation4 + $0xb] sm:$0xff] }
 0x1cc   : > { %2184 = vrot.lane.b32.xlu1 %v2087_v59, %s3395_s18  ;;  %v2113_v35 = vld [vmem:[#allocation4 + $0xc] sm:$0xff]  ;;  %v3301_v59 = vld [vmem:[%s4645_s3 + $0x38] sm:$0xff]  }
 0x1cd   : > { %2169 = vrot.lane.b32.xlu0 %v2072_v61, %s3396_s19  ;;  %2460 = vmatpush1.bf16.msra.mxu1 %v3300_v50 }
 0x1ce   : > { %2461 = vmatprep.subr.bf16.mxu1 %v3397_v22 }
 0x1d0   : > { %v3200_v62 = vpop.f32.mrb[8].mxu0 }
 0x1d1   : > { %v1702_v36 = vadd.f32 %v3200_v62, %v4167_v25  ;;  %v1693_v1 = vpop.f32.mrb[9].mxu0  ;;  %2462 = vmatpush1.bf16.msra.mxu1 %v3301_v59 }
 0x1d2   : > { %v1694_v3 = vadd.f32 %v4167_v25, %v1693_v1  ;;  %v3201_v4 = vpop.f32.mrb[10].mxu0  ;;  %2463 = vmatprep.subr.bf16.mxu1 %v3397_v22 }
 0x1d3   : > { %v1814_v5 = vmax.f32 %v1702_v36, 0.0  ;;  %v1705_v63 = vadd.f32 %v3201_v4, %v4167_v25  ;;  %v1696_v6 = vpop.f32.mrb[11].mxu0 }
 0x1d4   : > { %v1812_v47 = vmax.f32 %v1694_v3, 0.0  ;;  %v1697_v2 = vadd.f32 %v4167_v25, %v1696_v6 }
 0x1d5   : > { %1850 = vst.msk [vmem:[#allocation3 + $0x50] sm:$0xff] %vm321_vm12, %v1814_v5  ;;  %v1815_v7 = vmax.f32 %v1705_v63, 0.0  ;;  %v3302_v63 = vld [vmem:[%s4645_s3 + $0x40] sm:$0xff]  }
 0x1d6   : > { %1848 = vst.msk [vmem:[#allocation3 + $0x40] sm:$0xff] %vm321_vm12, %v1812_v47  ;;  %v1813_v8 = vmax.f32 %v1697_v2, 0.0  ;;  %2464 = vmatpush1.bf16.msra.mxu1 %v3302_v63 }
 0x1d7   : > { %1851 = vst.msk [vmem:[#allocation3 + $0x58] sm:$0xff] %vm321_vm12, %v1815_v7 }
 0x1d8   : > { %1849 = vst.msk [vmem:[#allocation3 + $0x48] sm:$0xff] %vm321_vm12, %v1813_v8 }
 0x1dd   : > { %v1934_v15 = vld [vmem:[#allocation3 + $0x32] ss:$2 sm:$0xff]  ;;  %v1962_v17 = vld [vmem:[#allocation3 + $0x33] ss:$2 sm:$0xff] }
 0x1de   : > { %v2002_v11 = vmax.f32 %v1988_v14, %v1934_v15  ;;  %v1884_v55 = vld [vmem:[#allocation3 + $0x50] ss:$2 sm:$0xff]  ;;  %v1912_v56 = vld [vmem:[#allocation3 + $0x51] ss:$2 sm:$0xff] }
 0x1df   : > { %v1936_v18 = vld [vmem:[#allocation3 + $0x42] ss:$2 sm:$0xff]  ;;  %v1964_v21 = vld [vmem:[#allocation3 + $0x43] ss:$2 sm:$0xff]  ;;  %v1991_v61 = vmax.f32 %v1884_v55, %v1912_v56 }
 0x1e0   : > { %v2016_v19 = vmax.f32 %v2002_v11, %v1962_v17  ;;  %v2003_v20 = vmax.f32 %v1989_v16, %v1936_v18  ;;  %v1882_v53 = vld [vmem:[#allocation3 + $0x40] ss:$2 sm:$0xff]  ;;  %v1910_v54 = vld [vmem:[#allocation3 + $0x41] ss:$2 sm:$0xff] }
 0x1e2   : > { %v2017_v60 = vmax.f32 %v2003_v20, %v1964_v21  ;;  %2031 = vst.msk [vmem:[#allocation4 + $0x13] sm:$0xfc] %vm2030_vm0, %v2016_v19 }
 0x1e4   : > { %2032 = vst.msk [vmem:[#allocation4 + $0x1b] sm:$0x3] %vm360_vm13, %v2017_v60 }
 0x1e9   : > { %v2099_v24 = vld [vmem:[#allocation4 + $0x13] sm:$0xff] }
 0x1ea   : > { %v4287_v30 = vld [vmem:[#allocation4 + $0x12] sm:$0xff]  ;;  %v2108_v31 = vpack.c.bf16 %v2099_v24, %v2098_v29 }
 0x1eb   : > { %v2093_v32 = vpack.c.bf16 %v4287_v30, %v4254_v57  ;;  %v4291_v33 = vld [vmem:[#allocation4 + $0x14] sm:$0xff]  ;;  %v1990_v57 = vmax.f32 %v1882_v53, %v1910_v54 }
 0x1ec   : > { %2214 = vrot.lane.b32.xlu1 %v2108_v31, %s3398_s14  ;;  %v2123_v38 = vpack.c.bf16 %v4291_v33, %v2113_v35  ;;  %v2064_v47 = vld [vmem:[#allocation4 + $0x11] sm:$0xff] }
 0x1ed   : > { %2199 = vrot.lane.b32.xlu0 %v2093_v32, %s3399_s15  ;;  %v2149_v10 = vld [vmem:[#allocation4 + $0x16] sm:$0xff] }
 0x1ee   : > { %v2134_v16 = vld [vmem:[#allocation4 + $0x15] sm:$0xff] }
 0x1f0   : > { %v3204_v39 = vpop.f32.mrb[12].mxu0 }
 0x1f1   : > { %2229 = vrot.lane.b32.xlu0 %v2123_v38, %s3400_s16  ;;  %v1718_v40 = vadd.f32 %v3204_v39, %v4167_v25  ;;  %v1709_v58 = vpop.f32.mrb[13].mxu0 }
 0x1f2   : > { %v1710_v41 = vadd.f32 %v4167_v25, %v1709_v58  ;;  %v3205_v42 = vpop.f32.mrb[14].mxu0 }
 0x1f3   : > { %v1818_v43 = vmax.f32 %v1718_v40, 0.0  ;;  %v1721_v44 = vadd.f32 %v3205_v42, %v4167_v25  ;;  %v1712_v45 = vpop.f32.mrb[15].mxu0 }
 0x1f4   : > { %v1816_v46 = vmax.f32 %v1710_v41, 0.0  ;;  %v1713_v48 = vadd.f32 %v4167_v25, %v1712_v45 }
 0x1f5   : > { %1854 = vst.msk [vmem:[#allocation3 + $0x70] sm:$0xff] %vm321_vm12, %v1818_v43  ;;  %v1819_v49 = vmax.f32 %v1721_v44, 0.0 }
 0x1f6   : > { %1852 = vst.msk [vmem:[#allocation3 + $0x60] sm:$0xff] %vm321_vm12, %v1816_v46  ;;  %v1817_v51 = vmax.f32 %v1713_v48, 0.0 }
 0x1f7   : > { %1855 = vst.msk [vmem:[#allocation3 + $0x78] sm:$0xff] %vm321_vm12, %v1819_v49 }
 0x1f8   : > { %1853 = vst.msk [vmem:[#allocation3 + $0x68] sm:$0xff] %vm321_vm12, %v1817_v51 }
 0x1fd   : > { %v1938_v52 = vld [vmem:[#allocation3 + $0x52] ss:$2 sm:$0xff]  ;;  %v1966_v36 = vld [vmem:[#allocation3 + $0x53] ss:$2 sm:$0xff] }
 0x1fe   : > { %v2004_v62 = vmax.f32 %v1990_v57, %v1938_v52  ;;  %v1916_v37 = vld [vmem:[#allocation3 + $0x71] ss:$2 sm:$0xff] }
 0x1ff   : > { %v1940_v1 = vld [vmem:[#allocation3 + $0x62] ss:$2 sm:$0xff]  ;;  %v1968_v5 = vld [vmem:[#allocation3 + $0x63] ss:$2 sm:$0xff] }
 0x200   : > { %v2018_v3 = vmax.f32 %v2004_v62, %v1966_v36  ;;  %v2005_v4 = vmax.f32 %v1991_v61, %v1940_v1  ;;  %v1886_v31 = vld [vmem:[#allocation3 + $0x60] ss:$2 sm:$0xff]  ;;  %v1914_v32 = vld [vmem:[#allocation3 + $0x61] ss:$2 sm:$0xff] }
 0x201   : > { %v1992_v35 = vmax.f32 %v1886_v31, %v1914_v32 }
 0x202   : > { %v2019_v6 = vmax.f32 %v2005_v4, %v1968_v5  ;;  %2034 = vst.msk [vmem:[#allocation4 + $0x1b] sm:$0xf0] %vm2033_vm2, %v2018_v3 }
 0x204   : > { %2036 = vst.msk [vmem:[#allocation4 + $0x23] sm:$0xf] %vm2035_vm3, %v2019_v6 }
 0x209   : > { %v2065_v2 = vld [vmem:[#allocation4 + $0x19] sm:$0xff] }
 0x20a   : > { %v2080_v7 = vld [vmem:[#allocation4 + $0x1a] sm:$0xff]  ;;  %v2073_v8 = vpack.c.bf16 %v2065_v2, %v2064_v47 }
 0x20b   : > { %v2088_v9 = vpack.c.bf16 %v2080_v7, %v4287_v30  ;;  %v2150_v12 = vld [vmem:[#allocation4 + $0x1e] sm:$0xff] }
 0x20c   : > { %v2115_v13 = vld [vmem:[#allocation4 + $0x1c] sm:$0xff]  ;;  %2171 = vrot.lane.b32.xlu1 %v2073_v8, %s3396_s19  ;;  %v2159_v15 = vpack.c.bf16 %v2150_v12, %v2149_v10 }
 0x20d   : > { %v2135_v14 = vld [vmem:[#allocation4 + $0x1d] sm:$0xff]  ;;  %2186 = vrot.lane.b32.xlu0 %v2088_v9, %s3395_s18  ;;  %v2129_v11 = vpack.c.bf16 %v2115_v13, %v4291_v33 }
 0x20e   : > { %3100 = vmatprep.mubr.msk.bf16.mxu1 %vm321_vm12, %v2159_v15  ;;  %v2144_v17 = vpack.c.bf16 %v2135_v14, %v2134_v16  ;;  %v1888_v33 = vld [vmem:[#allocation3 + $0x70] ss:$2 sm:$0xff] }
 0x20f   : > { %v1993_v39 = vmax.f32 %v1888_v33, %v1916_v37  ;;  %v2100_v46 = vld [vmem:[#allocation4 + $0x1b] sm:$0xff] }
 0x210   : > { %v3208_v18 = vpop.f32.mrb[16].mxu0  ;;  %2244 = vrot.lane.b32.xlu1 %v2129_v11, %s3401_s20  ;;  %v2066_v54 = vld [vmem:[#allocation4 + $0x21] sm:$0xff] }
 0x211   : > { %2259 = vrot.lane.b32.xlu0 %v2144_v17, %s3402_s21  ;;  %v1734_v19 = vadd.f32 %v3208_v18, %v4167_v25  ;;  %v1725_v20 = vpop.f32.mrb[17].mxu0 }
 0x212   : > { %v1726_v21 = vadd.f32 %v4167_v25, %v1725_v20  ;;  %v3209_v23 = vpop.f32.mrb[18].mxu0 }
 0x213   : > { %v1822_v60 = vmax.f32 %v1734_v19, 0.0  ;;  %v1737_v22 = vadd.f32 %v3209_v23, %v4167_v25  ;;  %v1728_v27 = vpop.f32.mrb[19].mxu0 }
 0x214   : > { %v1820_v28 = vmax.f32 %v1726_v21, 0.0  ;;  %v1729_v29 = vadd.f32 %v4167_v25, %v1728_v27 }
 0x215   : > { %1858 = vst.msk [vmem:[#allocation3 + $0x90] sm:$0xff] %vm321_vm12, %v1822_v60  ;;  %v1823_v24 = vmax.f32 %v1737_v22, 0.0 }
 0x216   : > { %1856 = vst.msk [vmem:[#allocation3 + $0x80] sm:$0xff] %vm321_vm12, %v1820_v28  ;;  %v1821_v30 = vmax.f32 %v1729_v29, 0.0 }
 0x217   : > { %1859 = vst.msk [vmem:[#allocation3 + $0x98] sm:$0xff] %vm321_vm12, %v1823_v24 }
 0x218   : > { %1857 = vst.msk [vmem:[#allocation3 + $0x88] sm:$0xff] %vm321_vm12, %v1821_v30 }
 0x21d   : > { %v1942_v38 = vld [vmem:[#allocation3 + $0x72] ss:$2 sm:$0xff]  ;;  %v1970_v58 = vld [vmem:[#allocation3 + $0x73] ss:$2 sm:$0xff] }
 0x21e   : > { %v2006_v40 = vmax.f32 %v1992_v35, %v1942_v38  ;;  %v1890_v2 = vld [vmem:[#allocation3 + $0x90] ss:$2 sm:$0xff] }
 0x21f   : > { %v1944_v34 = vld [vmem:[#allocation3 + $0x82] ss:$2 sm:$0xff]  ;;  %v1972_v43 = vld [vmem:[#allocation3 + $0x83] ss:$2 sm:$0xff] }
 0x220   : > { %v2020_v41 = vmax.f32 %v2006_v40, %v1970_v58  ;;  %v2007_v42 = vmax.f32 %v1993_v39, %v1944_v34 }
 0x222   : > { %v2021_v44 = vmax.f32 %v2007_v42, %v1972_v43  ;;  %2038 = vst.msk [vmem:[#allocation4 + $0x23] sm:$0xc0] %vm2037_vm4, %v2020_v41 }
 0x224   : > { %2039 = vst.msk [vmem:[#allocation4 + $0x2b] sm:$0x3f] %vm374_vm14, %v2021_v44 }
 0x229   : > { %v2081_v45 = vld [vmem:[#allocation4 + $0x22] sm:$0xff] }
 0x22a   : > { %v2101_v48 = vld [vmem:[#allocation4 + $0x23] sm:$0xff]  ;;  %v2094_v49 = vpack.c.bf16 %v2081_v45, %v2080_v7 }
 0x22b   : > { %v2109_v26 = vpack.c.bf16 %v2101_v48, %v2100_v46  ;;  %v2116_v51 = vld [vmem:[#allocation4 + $0x24] sm:$0xff] }
 0x22c   : > { %v2067_v53 = vld [vmem:[#allocation4 + $0x29] sm:$0xff]  ;;  %2201 = vrot.lane.b32.xlu1 %v2094_v49, %s3399_s15  ;;  %v2124_v50 = vpack.c.bf16 %v2116_v51, %v2115_v13  ;;  %v1918_v7 = vld [vmem:[#allocation3 + $0x91] ss:$2 sm:$0xff] }
 0x22d   : > { %2216 = vrot.lane.b32.xlu0 %v2109_v26, %s3398_s14  ;;  %v2074_v55 = vpack.c.bf16 %v2067_v53, %v2066_v54  ;;  %v2082_v56 = vld [vmem:[#allocation4 + $0x2a] sm:$0xff]  ;;  %v1994_v8 = vmax.f32 %v1890_v2, %v1918_v7 }
 0x22e   : > { %v2089_v36 = vpack.c.bf16 %v2082_v56, %v2081_v45  ;;  %v2136_v14 = vld [vmem:[#allocation4 + $0x25] sm:$0xff] }
 0x22f   : > { %v2102_v20 = vld [vmem:[#allocation4 + $0x2b] sm:$0xff] }
 0x230   : > { %v3212_v57 = vpop.f32.mrb[20].mxu0  ;;  %2231 = vrot.lane.b32.xlu1 %v2124_v50, %s3400_s16 }
 0x231   : > { %2173 = vrot.lane.b32.xlu0 %v2074_v55, %s3396_s19  ;;  %v1750_v52 = vadd.f32 %v3212_v57, %v4167_v25  ;;  %v1741_v59 = vpop.f32.mrb[21].mxu0 }
 0x232   : > { %v1742_v61 = vadd.f32 %v4167_v25, %v1741_v59  ;;  %v3213_v62 = vpop.f32.mrb[22].mxu0 }
 0x233   : > { %v1826_v1 = vmax.f32 %v1750_v52, 0.0  ;;  %v1753_v3 = vadd.f32 %v3213_v62, %v4167_v25  ;;  %v1744_v4 = vpop.f32.mrb[23].mxu0 }
 0x234   : > { %v1824_v5 = vmax.f32 %v1742_v61, 0.0  ;;  %v1745_v63 = vadd.f32 %v4167_v25, %v1744_v4  ;;  %2188 = vrot.lane.b32.xlu1 %v2089_v36, %s3395_s18 }
 0x235   : > { %1862 = vst.msk [vmem:[#allocation3 + $0xb0] sm:$0xff] %vm321_vm12, %v1826_v1  ;;  %v1827_v6 = vmax.f32 %v1753_v3, 0.0  ;;  %v2047_v1 = vld [vmem:[#allocation4] sm:$0xff]  ;;  %v2048_v3 = vld [vmem:[#allocation4 + $0x8] sm:$0xff] }
 0x236   : > { %1860 = vst.msk [vmem:[#allocation3 + $0xa0] sm:$0xff] %vm321_vm12, %v1824_v5  ;;  %v1825_v47 = vmax.f32 %v1745_v63, 0.0 }
 0x237   : > { %1863 = vst.msk [vmem:[#allocation3 + $0xb8] sm:$0xff] %vm321_vm12, %v1827_v6  ;;  %v2057_v6 = vpack.c.bf16 %v2048_v3, %v2047_v1 }
 0x238   : > { %1861 = vst.msk [vmem:[#allocation3 + $0xa8] sm:$0xff] %vm321_vm12, %v1825_v47 }
 0x23e   : > { %v1892_v40 = vld [vmem:[#allocation3 + $0xb0] ss:$2 sm:$0xff]  ;;  %v1920_v58 = vld [vmem:[#allocation3 + $0xb1] ss:$2 sm:$0xff]  ;;  %v2185_v5 = vpop.permute.xlu1 %2184 }
 0x23f   : > { %v1946_v9 = vld [vmem:[#allocation3 + $0xa2] ss:$2 sm:$0xff]  ;;  %v1974_v12 = vld [vmem:[#allocation3 + $0xa3] ss:$2 sm:$0xff]  ;;  %v1995_v34 = vmax.f32 %v1892_v40, %v1920_v58 }
 0x240   : > { %v2008_v10 = vmax.f32 %v1994_v8, %v1946_v9 }
 0x242   : > { %v2022_v13 = vmax.f32 %v2008_v10, %v1974_v12 }
 0x244   : > { %2040 = vst.msk [vmem:[#allocation4 + $0x33] sm:$0xff] %vm321_vm12, %v2022_v13 }
 0x24b   : > { %v2137_v15 = vld [vmem:[#allocation4 + $0x2d] sm:$0xff]  ;;  %v2138_v40 = vld [vmem:[#allocation4 + $0x35] sm:$0xff] }
 0x24c   : > { %v2117_v16 = vld [vmem:[#allocation4 + $0x2c] sm:$0xff]  ;;  %v2145_v11 = vpack.c.bf16 %v2137_v15, %v2136_v14  ;;  %v4365_v28 = vld [vmem:[#allocation4 + $0x34] sm:$0xff] }
 0x24d   : > { %v2130_v17 = vpack.c.bf16 %v2117_v16, %v2116_v51  ;;  %v2103_v18 = vld [vmem:[#allocation4 + $0x33] sm:$0xff]  ;;  %v2125_v35 = vpack.c.bf16 %v4365_v28, %v2117_v16  ;;  %v2170_v51 = vpop.permute.xlu0 %2169 }
 0x24e   : > { %v2083_v19 = vld [vmem:[#allocation4 + $0x32] sm:$0xff]  ;;  %2261 = vrot.lane.b32.xlu1 %v2145_v11, %s3402_s21  ;;  %v2110_v23 = vpack.c.bf16 %v2103_v18, %v2102_v20  ;;  %v2271_v7 = vsel %vm321_vm12, %v2057_v6, %v2170_v51 }
 0x24f   : > { %2246 = vrot.lane.b32.xlu0 %v2130_v17, %s3401_s20  ;;  %v2095_v60 = vpack.c.bf16 %v2083_v19, %v2082_v56  ;;  %v2068_v45 = vld [vmem:[#allocation4 + $0x31] sm:$0xff]  ;;  %v2285_v14 = vsel %vm376_vm15, %v2271_v7, %v2185_v5 }
 0x250   : > { %v3216_v21 = vpop.f32.mrb[24].mxu0 }
 0x251   : > { %v1766_v22 = vadd.f32 %v3216_v21, %v4167_v25  ;;  %v1757_v27 = vpop.f32.mrb[25].mxu0 }
 0x252   : > { %v1758_v29 = vadd.f32 %v4167_v25, %v1757_v27  ;;  %v3217_v24 = vpop.f32.mrb[26].mxu0  ;;  %2218 = vrot.lane.b32.xlu1 %v2110_v23, %s3398_s14 }
 0x253   : > { %2203 = vrot.lane.b32.xlu0 %v2095_v60, %s3399_s15  ;;  %v1830_v30 = vmax.f32 %v1766_v22, 0.0  ;;  %v1769_v31 = vadd.f32 %v3217_v24, %v4167_v25  ;;  %v1760_v32 = vpop.f32.mrb[27].mxu0 }
 0x254   : > { %v1828_v33 = vmax.f32 %v1758_v29, 0.0  ;;  %v1761_v37 = vadd.f32 %v4167_v25, %v1760_v32  ;;  %v2152_v29 = vld [vmem:[#allocation4 + $0x2e] sm:$0xff] }
 0x255   : > { %1866 = vst.msk [vmem:[#allocation3 + $0xd0] sm:$0xff] %vm321_vm12, %v1830_v30  ;;  %v1831_v38 = vmax.f32 %v1769_v31, 0.0 }
 0x256   : > { %1864 = vst.msk [vmem:[#allocation3 + $0xc0] sm:$0xff] %vm321_vm12, %v1828_v33  ;;  %v1829_v39 = vmax.f32 %v1761_v37, 0.0  ;;  %v2151_v37 = vld [vmem:[#allocation4 + $0x26] sm:$0xff] }
 0x257   : > { %2233 = vrot.lane.b32.xlu0 %v2125_v35, %s3400_s16  ;;  %1867 = vst.msk [vmem:[#allocation3 + $0xd8] sm:$0xff] %vm321_vm12, %v1831_v38  ;;  %v2160_v38 = vpack.c.bf16 %v2152_v29, %v2151_v37 }
 0x258   : > { %1865 = vst.msk [vmem:[#allocation3 + $0xc8] sm:$0xff] %vm321_vm12, %v1829_v39 }
 0x25e   : > { %v2215_v8 = vpop.permute.xlu1 %2214  ;;  %v1896_v10 = vld [vmem:[#allocation3 + $0xd0] ss:$2 sm:$0xff]  ;;  %v1924_v12 = vld [vmem:[#allocation3 + $0xd1] ss:$2 sm:$0xff] }
 0x25f   : > { %v1948_v41 = vld [vmem:[#allocation3 + $0xc2] ss:$2 sm:$0xff]  ;;  %v1976_v43 = vld [vmem:[#allocation3 + $0xc3] ss:$2 sm:$0xff]  ;;  %v2200_v61 = vpop.permute.xlu0 %2199  ;;  %v1997_v16 = vmax.f32 %v1896_v10, %v1924_v12 }
 0x260   : > { %v2009_v42 = vmax.f32 %v1995_v34, %v1948_v41  ;;  %v1894_v47 = vld [vmem:[#allocation3 + $0xc0] ss:$2 sm:$0xff]  ;;  %v1922_v2 = vld [vmem:[#allocation3 + $0xc1] ss:$2 sm:$0xff]  ;;  %v2296_v11 = vsel %vm2294_vm5, %v2285_v14, %v2200_v61 }
 0x261   : > { %v1996_v13 = vmax.f32 %v1894_v47, %v1922_v2  ;;  %v2306_v22 = vsel %vm396_vm1, %v2296_v11, %v2215_v8 }
 0x262   : > { %v2023_v44 = vmax.f32 %v2009_v42, %v1976_v43 }
 0x263   : > { %v2230_v9 = vpop.permute.xlu0 %2229 }
 0x264   : > { %2041 = vst.msk [vmem:[#allocation4 + $0x3b] sm:$0xfc] %vm2030_vm0, %v2023_v44  ;;  %v2317_v24 = vsel %vm2315_vm6, %v2306_v22, %v2230_v9  ;;  %vm2984_vm0 = vcmask 523270  }
 0x26b   : > { %v2069_v46 = vld [vmem:[#allocation4 + $0x39] sm:$0xff] }
 0x26c   : > { %v4379_v48 = vld [vmem:[#allocation4 + $0x3a] sm:$0xff]  ;;  %v2075_v49 = vpack.c.bf16 %v2069_v46, %v2068_v45 }
 0x26d   : > { %v2090_v26 = vpack.c.bf16 %v4379_v48, %v2083_v19  ;;  %v2104_v45 = vld [vmem:[#allocation4 + $0x3b] sm:$0xff] }
 0x26e   : > { %2175 = vrot.lane.b32.xlu1 %v2075_v49, %s3396_s19 }
 0x26f   : > { %2190 = vrot.lane.b32.xlu0 %v2090_v26, %s3395_s18 }
 0x270   : > { %v3220_v53 = vpop.f32.mrb[28].mxu0 }
 0x271   : > { %v1782_v54 = vadd.f32 %v3220_v53, %v4167_v25  ;;  %v1773_v50 = vpop.f32.mrb[29].mxu0 }
 0x272   : > { %v1774_v55 = vadd.f32 %v4167_v25, %v1773_v50  ;;  %v3221_v56 = vpop.f32.mrb[30].mxu0 }
 0x273   : > { %v1834_v57 = vmax.f32 %v1782_v54, 0.0  ;;  %v1785_v52 = vadd.f32 %v3221_v56, %v4167_v25  ;;  %v1776_v59 = vpop.f32.mrb[31].mxu0 }
 0x274   : > { %v1832_v62 = vmax.f32 %v1774_v55, 0.0  ;;  %v1777_v36 = vadd.f32 %v4167_v25, %v1776_v59 }
 0x275   : > { %1870 = vst.msk [vmem:[#allocation3 + $0xf0] sm:$0xff] %vm321_vm12, %v1834_v57  ;;  %v1835_v4 = vmax.f32 %v1785_v52, 0.0 }
 0x276   : > { %1868 = vst.msk [vmem:[#allocation3 + $0xe0] sm:$0xff] %vm321_vm12, %v1832_v62  ;;  %v1833_v63 = vmax.f32 %v1777_v36, 0.0 }
 0x277   : > { %1871 = vst.msk [vmem:[#allocation3 + $0xf8] sm:$0xff] %vm321_vm12, %v1835_v4 }
 0x278   : > { %1869 = vst.msk [vmem:[#allocation3 + $0xe8] sm:$0xff] %vm321_vm12, %v1833_v63 }
 0x27d   : > { %v1950_v15 = vld [vmem:[#allocation3 + $0xd2] ss:$2 sm:$0xff]  ;;  %v1978_v20 = vld [vmem:[#allocation3 + $0xd3] ss:$2 sm:$0xff] }
 0x27e   : > { %v2010_v17 = vmax.f32 %v1996_v13, %v1950_v15  ;;  %v4395_v18 = vpop.permute.xlu1 %2171  ;;  %v1900_v62 = vld [vmem:[#allocation3 + $0xf0] ss:$2 sm:$0xff]  ;;  %v1928_v36 = vld [vmem:[#allocation3 + $0xf1] ss:$2 sm:$0xff] }
 0x27f   : > { %v4397_v19 = vpop.permute.xlu0 %2186  ;;  %v1952_v21 = vld [vmem:[#allocation3 + $0xe2] ss:$2 sm:$0xff]  ;;  %v1980_v27 = vld [vmem:[#allocation3 + $0xe3] ss:$2 sm:$0xff]  ;;  %v1999_v4 = vmax.f32 %v1900_v62, %v1928_v36 }
 0x280   : > { %v2024_v23 = vmax.f32 %v2010_v17, %v1978_v20  ;;  %v2011_v60 = vmax.f32 %v1997_v16, %v1952_v21  ;;  %v1898_v59 = vld [vmem:[#allocation3 + $0xe0] ss:$2 sm:$0xff]  ;;  %v1926_v61 = vld [vmem:[#allocation3 + $0xe1] ss:$2 sm:$0xff] }
 0x281   : > { %v1998_v1 = vmax.f32 %v1898_v59, %v1926_v61  ;;  %v2153_v59 = vld [vmem:[#allocation4 + $0x36] sm:$0xff]  ;;  %v2052_v36 = vld [vmem:[#allocation4 + $0x28] sm:$0xff] }
 0x282   : > { %2042 = vst.msk [vmem:[#allocation4 + $0x43] sm:$0x3] %vm360_vm13, %v2024_v23  ;;  %v2025_v30 = vmax.f32 %v2011_v60, %v1980_v27  ;;  %v2245_v31 = vpop.permute.xlu1 %2244  ;;  %vm2598_vm13 = vcmask 261124  }
 0x283   : > { %v2260_v32 = vpop.permute.xlu0 %2259  ;;  %v2328_v33 = vsel %vm2326_vm7, %v2317_v24, %v2245_v31 }
 0x284   : > { %2043 = vst.msk [vmem:[#allocation4 + $0x43] sm:$0xf0] %vm2033_vm2, %v2025_v30  ;;  %v2339_v35 = vsel %vm2337_vm8, %v2328_v33, %v2260_v32 }
 0x285   : > { %2480 = vmatmul.mubr.bf16.vlgmr.msra.gmra.mrb[0].mxu1 %v2339_v35 }
 0x286   : > { %3101 = vmatprep.mubr.msk.bf16.mxu1 %vm321_vm12, %v2160_v38 }
 0x289   : > { %v2119_v39 = vld [vmem:[#allocation4 + $0x3c] sm:$0xff] }
 0x28a   : > { %v2139_v58 = vld [vmem:[#allocation4 + $0x3d] sm:$0xff]  ;;  %v2131_v34 = vpack.c.bf16 %v2119_v39, %v4365_v28 }
 0x28b   : > { %v2146_v41 = vpack.c.bf16 %v2139_v58, %v2138_v40  ;;  %v2085_v42 = vld [vmem:[#allocation4 + $0x42] sm:$0xff] }
 0x28c   : > { %v2105_v43 = vld [vmem:[#allocation4 + $0x43] sm:$0xff]  ;;  %2248 = vrot.lane.b32.xlu1 %v2131_v34, %s3401_s20  ;;  %v2096_v26 = vpack.c.bf16 %v2085_v42, %v4379_v48 }
 0x28d   : > { %2263 = vrot.lane.b32.xlu0 %v2146_v41, %s3402_s21  ;;  %v3224_v44 = vpop.f32.mrb[32].mxu0  ;;  %v2111_v51 = vpack.c.bf16 %v2105_v43, %v2104_v45  ;;  %v2070_v11 = vld [vmem:[#allocation4 + $0x41] sm:$0xff]  ;;  %v2049_v43 = vld [vmem:[#allocation4 + $0x10] sm:$0xff] }
 0x28e   : > { %v1798_v46 = vadd.f32 %v3224_v44, %v4167_v25  ;;  %v1789_v49 = vpop.f32.mrb[33].mxu0  ;;  %v2128_v34 = vld [vmem:[#allocation4 + $0x5c] sm:$0xff] }
 0x28f   : > { %v1790_v53 = vadd.f32 %v4167_v25, %v1789_v49  ;;  %v3225_v54 = vpop.f32.mrb[34].mxu0 }
 0x290   : > { %v1838_v50 = vmax.f32 %v1798_v46, 0.0  ;;  %v1801_v28 = vadd.f32 %v3225_v54, %v4167_v25  ;;  %v1792_v55 = vpop.f32.mrb[35].mxu0  ;;  %2205 = vrot.lane.b32.xlu1 %v2096_v26, %s3399_s15 }
 0x291   : > { %2220 = vrot.lane.b32.xlu0 %v2111_v51, %s3398_s14  ;;  %v1836_v56 = vmax.f32 %v1790_v53, 0.0  ;;  %v1793_v57 = vadd.f32 %v4167_v25, %v1792_v55 }
 0x292   : > { %1874 = vst.msk [vmem:[#allocation3 + $0x110] sm:$0xff] %vm321_vm12, %v1838_v50  ;;  %v1839_v52 = vmax.f32 %v1801_v28, 0.0 }
 0x293   : > { %1872 = vst.msk [vmem:[#allocation3 + $0x100] sm:$0xff] %vm321_vm12, %v1836_v56  ;;  %v1837_v48 = vmax.f32 %v1793_v57, 0.0  ;;  %v2154_v56 = vld [vmem:[#allocation4 + $0x3e] sm:$0xff] }
 0x294   : > { %1875 = vst.msk [vmem:[#allocation3 + $0x118] sm:$0xff] %vm321_vm12, %v1839_v52  ;;  %v2161_v62 = vpack.c.bf16 %v2154_v56, %v2153_v59  ;;  %v4469_v56 = vld [vmem:[%s4646_s4] ss:$0 sm:$0xff] }
 0x295   : > { %1873 = vst.msk [vmem:[#allocation3 + $0x108] sm:$0xff] %vm321_vm12, %v1837_v48 }
 0x29a   : > { %v1954_v3 = vld [vmem:[#allocation3 + $0xf2] ss:$2 sm:$0xff]  ;;  %v1982_v5 = vld [vmem:[#allocation3 + $0xf3] ss:$2 sm:$0xff] }
 0x29b   : > { %v2012_v63 = vmax.f32 %v1998_v1, %v1954_v3  ;;  %v1958_v9 = vld [vmem:[#allocation3 + $0x112] ss:$2 sm:$0xff]  ;;  %v1986_v14 = vld [vmem:[#allocation3 + $0x113] ss:$2 sm:$0xff] }
 0x29c   : > { %v1902_v25 = vld [vmem:[#allocation3 + $0x100] ss:$2 sm:$0xff]  ;;  %v1930_v6 = vld [vmem:[#allocation3 + $0x101] ss:$2 sm:$0xff]  ;;  %v2051_v1 = vld [vmem:[#allocation4 + $0x20] sm:$0xff] }
 0x29d   : > { %v1956_v47 = vld [vmem:[#allocation3 + $0x102] ss:$2 sm:$0xff]  ;;  %v2026_v2 = vmax.f32 %v2012_v63, %v1982_v5  ;;  %v2000_v7 = vmax.f32 %v1902_v25, %v1930_v6  ;;  %v1984_v10 = vld [vmem:[#allocation3 + $0x103] ss:$2 sm:$0xff]  ;;  %v2059_v3 = vpack.c.bf16 %v2052_v36, %v2051_v1 }
 0x29e   : > { %v2013_v8 = vmax.f32 %v1999_v4, %v1956_v47  ;;  %v2202_v33 = vpop.permute.xlu1 %2201 }
 0x29f   : > { %2044 = vst.msk [vmem:[#allocation4 + $0x4b] sm:$0xf] %vm2035_vm3, %v2026_v2  ;;  %v2014_v12 = vmax.f32 %v2000_v7, %v1958_v9  ;;  %v2217_v45 = vpop.permute.xlu0 %2216 }
 0x2a0   : > { %v2027_v13 = vmax.f32 %v2013_v8, %v1984_v10 }
 0x2a1   : > { %v2028_v15 = vmax.f32 %v2014_v12, %v1986_v14 }
 0x2a2   : > { %2045 = vst.msk [vmem:[#allocation4 + $0x4b] sm:$0xc0] %vm2037_vm4, %v2027_v13  ;;  %v2232_v46 = vpop.permute.xlu1 %2231 }
 0x2a3   : > { %2046 = vst.msk [vmem:[#allocation4 + $0x53] sm:$0x3f] %vm374_vm14, %v2028_v15  ;;  %v2174_v50 = vpop.permute.xlu0 %2173  ;;  %vm2600_vm14 = vcmask 261126  }
 0x2a4   : > { %v2277_v63 = vsel %vm321_vm12, %v2059_v3, %v2174_v50 }
 0x2a6   : > { %v2120_v16 = vld [vmem:[#allocation4 + $0x44] sm:$0xff]  ;;  %v2189_v28 = vpop.permute.xlu1 %2188 }
 0x2a7   : > { %v2071_v17 = vld [vmem:[#allocation4 + $0x49] sm:$0xff]  ;;  %v2126_v20 = vpack.c.bf16 %v2120_v16, %v2119_v39  ;;  %v2050_v39 = vld [vmem:[#allocation4 + $0x18] sm:$0xff]  ;;  %v2289_v25 = vsel %vm376_vm15, %v2277_v63, %v2189_v28 }
 0x2a8   : > { %v2076_v21 = vpack.c.bf16 %v2071_v17, %v2070_v11  ;;  %v2140_v30 = vld [vmem:[#allocation4 + $0x45] sm:$0xff]  ;;  %v2058_v44 = vpack.c.bf16 %v2050_v39, %v2049_v43  ;;  %v2054_v11 = vld [vmem:[#allocation4 + $0x38] sm:$0xff]  ;;  %v2053_v17 = vld [vmem:[#allocation4 + $0x30] sm:$0xff] }
 0x2a9   : > { %v2086_v23 = vld [vmem:[#allocation4 + $0x4a] sm:$0xff]  ;;  %2235 = vrot.lane.b32.xlu1 %v2126_v20, %s3400_s16  ;;  %v2055_v39 = vld [vmem:[#allocation4 + $0x40] sm:$0xff] }
 0x2aa   : > { %2177 = vrot.lane.b32.xlu0 %v2076_v21, %s3396_s19  ;;  %v2121_v60 = vld [vmem:[#allocation4 + $0x4c] sm:$0xff]  ;;  %v2091_v22 = vpack.c.bf16 %v2086_v23, %v2085_v42  ;;  %v2122_v35 = vld [vmem:[#allocation4 + $0x54] sm:$0xff]  ;;  %v2143_v42 = vld [vmem:[#allocation4 + $0x5d] sm:$0xff]  ;;  %v2274_v51 = vsel %vm321_vm12, %v2058_v44, %v4395_v18 }
 0x2ab   : > { %v2132_v27 = vpack.c.bf16 %v2121_v60, %v2120_v16  ;;  %v2141_v29 = vld [vmem:[#allocation4 + $0x4d] sm:$0xff]  ;;  %v2127_v58 = vpack.c.bf16 %v2122_v35, %v2121_v60  ;;  %v2142_v41 = vld [vmem:[#allocation4 + $0x55] sm:$0xff]  ;;  %v2133_v49 = vpack.c.bf16 %v2128_v34, %v2122_v35  ;;  %v2287_v53 = vsel %vm376_vm15, %v2274_v51, %v4397_v19  ;;  %v2158_v35 = vld [vmem:[#allocation4 + $0x5e] sm:$0xff] }
 0x2ac   : > { %v2092_v24 = vld [vmem:[#allocation4 + $0x52] sm:$0xff]  ;;  %v2147_v31 = vpack.c.bf16 %v2141_v29, %v2140_v30  ;;  %v2148_v26 = vpack.c.bf16 %v2143_v42, %v2142_v41  ;;  %v2298_v54 = vsel %vm2294_vm5, %v2287_v53, %v2202_v33  ;;  %v2155_v14 = vld [vmem:[#allocation4 + $0x46] sm:$0xff] }
 0x2ad   : > { %2192 = vrot.lane.b32.xlu1 %v2091_v22, %s3395_s18  ;;  %v2097_v32 = vpack.c.bf16 %v2092_v24, %v2086_v23  ;;  %v2107_v37 = vld [vmem:[#allocation4 + $0x53] sm:$0xff]  ;;  %v2106_v38 = vld [vmem:[#allocation4 + $0x4b] sm:$0xff]  ;;  %v2308_v55 = vsel %vm396_vm1, %v2298_v54, %v2217_v45  ;;  %v2060_v23 = vpack.c.bf16 %v2054_v11, %v2053_v17 }
 0x2ae   : > { %2250 = vrot.lane.b32.xlu0 %v2132_v27, %s3401_s20  ;;  %v2112_v40 = vpack.c.bf16 %v2107_v37, %v2106_v38  ;;  %v2319_v57 = vsel %vm2315_vm6, %v2308_v55, %v2232_v46  ;;  %v2156_v8 = vld [vmem:[#allocation4 + $0x4e] sm:$0xff]  ;;  %v2157_v37 = vld [vmem:[#allocation4 + $0x56] sm:$0xff] }
 0x2af   : > { %v2162_v16 = vpack.c.bf16 %v2156_v8, %v2155_v14  ;;  %v2163_v43 = vpack.c.bf16 %v2158_v35, %v2157_v37  ;;  %v3310_v37 = vld [vmem:[%s4647_s5 + $0x88] sm:$0xff]  }
 0x2b0   : > { %v3307_v35 = vld [vmem:[%s4647_s5 + $0x8] sm:$0xff]   ;;  %3228 = vmatprep.subr.bf16.mxu0 %v3310_v37 }
 0x2b1   : > { %2265 = vrot.lane.b32.xlu1 %v2147_v31, %s3402_s21  ;;  %3229 = vmatpush3.bf16.msra.mxu0 %v3310_v37  ;;  %v3320_v37 = vld [vmem:[%s4647_s5 + $0x38] sm:$0xff]  }
 0x2b2   : > { %2207 = vrot.lane.b32.xlu0 %v2097_v32, %s3399_s15  ;;  %v2056_v32 = vld [vmem:[#allocation4 + $0x48] sm:$0xff]  ;;  %s4595_s15 = scalar_lea.hbm %s4649_s7, %s3133_s9 }
 0x2b5   : > { %2222 = vrot.lane.b32.xlu1 %v2112_v40, %s3398_s14  ;;  %v2061_v40 = vpack.c.bf16 %v2056_v32, %v2055_v39  ;;  %v3305_v32 = vld [vmem:[%s4647_s5] sm:$0xff]  }
 0x2b6   : > { %2237 = vrot.lane.b32.xlu0 %v2127_v58, %s3400_s16  ;;  %s3321_s16 = scalar_lea.vmem %s4597_s17, 64 }
 0x2b7   : > { %p3322_p11 = scmp.ne.s32.totalorder %s4597_s17, %s3321_s16 }
 0x2b9   : > { %2252 = vrot.lane.b32.xlu1 %v2133_v49, %s3401_s20  ;;  %p3323_p12 = pnand %p3322_p11, %p3483_p5 }
 0x2ba   : > { %2267 = vrot.lane.b32.xlu0 %v2148_v26, %s3402_s21 }
 0x2bb   : > { %p3324_p13 = pneg %p3323_p12 }
 0x2c0   : > { %v2262_v52 = vpop.permute.xlu1 %2261 }
 0x2c1   : > { %v2247_v48 = vpop.permute.xlu0 %2246 }
 0x2c2   : > { %v2330_v18 = vsel %vm2326_vm7, %v2319_v57, %v2247_v48 }
 0x2c3   : > { %v2342_v61 = vsel %vm2337_vm8, %v2330_v18, %v2262_v52 }
 0x2c4   : > { %2488 = vmatmul.mubr.bf16.gmra.mrb[4].mxu1 %v2342_v61  ;;  %v2219_v4 = vpop.permute.xlu1 %2218 }
 0x2c5   : > { %3102 = vmatprep.mubr.msk.bf16.mxu1 %vm321_vm12, %v2161_v62  ;;  %v2204_v19 = vpop.permute.xlu0 %2203 }
 0x2c6   : > { %v2300_v6 = vsel %vm2294_vm5, %v2289_v25, %v2204_v19 }
 0x2c7   : > { %v2310_v7 = vsel %vm396_vm1, %v2300_v6, %v2219_v4 }
 0x2c9   : > { %v2234_v5 = vpop.permute.xlu0 %2233 }
 0x2ca   : > { %v2321_v9 = vsel %vm2315_vm6, %v2310_v7, %v2234_v5 }
 0x2e0   : > { %v2176_v47 = vpop.permute.xlu1 %2175 }
 0x2e1   : > { %v2191_v2 = vpop.permute.xlu0 %2190  ;;  %v2280_v60 = vsel %vm321_vm12, %v2060_v23, %v2176_v47 }
 0x2e2   : > { %v2291_v29 = vsel %vm376_vm15, %v2280_v60, %v2191_v2 }
 0x2fe   : > { %v2249_v10 = vpop.permute.xlu1 %2248 }
 0x2ff   : > { %v2264_v12 = vpop.permute.xlu0 %2263  ;;  %v2332_v13 = vsel %vm2326_vm7, %v2321_v9, %v2249_v10 }
 0x300   : > { %v2345_v15 = vsel %vm2337_vm8, %v2332_v13, %v2264_v12 }
 0x301   : > { %2496 = vmatmul.mubr.bf16.gmra.mrb[8].mxu1 %v2345_v15 }
 0x302   : > { %3103 = vmatprep.mubr.msk.bf16.mxu1 %vm321_vm12, %v2162_v16  ;;  %v2206_v20 = vpop.permute.xlu1 %2205 }
 0x303   : > { %v2221_v21 = vpop.permute.xlu0 %2220  ;;  %v2302_v24 = vsel %vm2294_vm5, %v2291_v29, %v2206_v20 }
 0x304   : > { %v2312_v33 = vsel %vm396_vm1, %v2302_v24, %v2221_v21 }
 0x31b   : > { %v2236_v22 = vpop.permute.xlu1 %2235 }
 0x31c   : > { %v2178_v27 = vpop.permute.xlu0 %2177  ;;  %v2323_v38 = vsel %vm2315_vm6, %v2312_v33, %v2236_v22  ;;  %v3306_v33 = vld [vmem:[%s4647_s5 + $0x48] sm:$0xff]  }
 0x31d   : > { %v2283_v44 = vsel %vm321_vm12, %v2061_v40, %v2178_v27 }
 0x31f   : > { %v2193_v30 = vpop.permute.xlu1 %2192 }
 0x320   : > { %v2251_v31 = vpop.permute.xlu0 %2250  ;;  %v2293_v45 = vsel %vm376_vm15, %v2283_v44, %v2193_v30 }
 0x321   : > { %v2334_v58 = vsel %vm2326_vm7, %v2323_v38, %v2251_v31  ;;  %v3304_v31 = vld [vmem:[%s4647_s5 + $0x40] sm:$0xff]   ;;  %v3308_v38 = vld [vmem:[%s4647_s5 + $0x50] sm:$0xff]  }
 0x322   : > { %3154 = vmatprep.subr.bf16.mxu1 %v3304_v31 }
 0x323   : > { %v2266_v34 = vpop.permute.xlu1 %2265  ;;  %3155 = vmatpush3.bf16.msra.mxu1 %v3305_v32  ;;  %v3319_v32 = vld [vmem:[%s4647_s5 + $0x78] sm:$0xff]  }
 0x324   : > { %v2208_v41 = vpop.permute.xlu0 %2207  ;;  %v2348_v42 = vsel %vm2337_vm8, %v2334_v58, %v2266_v34  ;;  %3156 = vmatprep.subr.bf16.mxu1 %v3306_v33  ;;  %v3309_v34 = vld [vmem:[%s4647_s5 + $0x10] sm:$0xff]  }
 0x325   : > { %2504 = vmatmul.mubr.bf16.gmra.mrb[12].mxu1 %v2348_v42  ;;  %v2304_v46 = vsel %vm2294_vm5, %v2293_v45, %v2208_v41  ;;  %v3311_v42 = vld [vmem:[%s4647_s5 + $0x58] sm:$0xff]  }
 0x326   : > { %3104 = vmatprep.mubr.msk.bf16.mxu1 %vm321_vm12, %v2163_v43  ;;  %vm2596_vm12 = vcmask 259074   ;;  %v3312_v45 = vld [vmem:[%s4647_s5 + $0x18] sm:$0xff]  }
 0x327   : > { %v2223_v49 = vpop.permute.xlu1 %2222  ;;  %3157 = vmatpush3.bf16.msra.mxu1 %v3307_v35 }
 0x328   : > { %v2238_v26 = vpop.permute.xlu0 %2237  ;;  %v2314_v51 = vsel %vm396_vm1, %v2304_v46, %v2223_v49  ;;  %3158 = vmatprep.subr.bf16.mxu1 %v3308_v38  ;;  %v2641_v38 = vld [vmem:[#allocation6 + $0x1e] sm:$0xff] }
 0x329   : > { %v2325_v53 = vsel %vm2315_vm6, %v2314_v51, %v2238_v26 }
 0x32b   : > { %v2253_v54 = vpop.permute.xlu1 %2252  ;;  %3159 = vmatpush3.bf16.msra.mxu1 %v3309_v34 }
 0x32c   : > { %v2268_v50 = vpop.permute.xlu0 %2267  ;;  %v2336_v28 = vsel %vm2326_vm7, %v2325_v53, %v2253_v54  ;;  %3160 = vmatprep.subr.bf16.mxu1 %v3311_v42 }
 0x32d   : > { %v2351_v55 = vsel %vm2337_vm8, %v2336_v28, %v2268_v50 }
 0x32e   : > { %2512 = vmatmul.mubr.bf16.gmra.mrb[16].mxu1 %v2351_v55 }
 0x32f   : > { %3161 = vmatpush3.bf16.msra.mxu1 %v3312_v45 }
 0x358   : > { %v2481_v57 = vpop.f32.mrb[0].mxu1 }
 0x359   : > { %v2482_v52 = vadd.f32 %v4469_v56, %v2481_v57  ;;  %v2483_v48 = vpop.f32.mrb[1].mxu1 }
 0x35a   : > { %v2484_v18 = vpop.f32.mrb[2].mxu1 }
 0x35b   : > { %v2520_v59 = vmax.f32 %v2482_v52, 0.0  ;;  %v2485_v61 = vadd.f32 %v4469_v56, %v2484_v18  ;;  %v2486_v62 = vpop.f32.mrb[3].mxu1 }
 0x35d   : > { %2530 = vst.msk [vmem:[#allocation5] sm:$0xff] %vm376_vm15, %v2520_v59  ;;  %v2521_v19 = vmax.f32 %v2485_v61, 0.0 }
 0x35f   : > { %2531 = vst.msk [vmem:[#allocation5 + $0x8] sm:$0xff] %vm376_vm15, %v2521_v19 }
 0x366   : > { %v2540_v47 = vld [vmem:[#allocation5] ss:$2 sm:$0xff]  ;;  %v2550_v2 = vld [vmem:[#allocation5 + $0x1] ss:$2 sm:$0xff] }
 0x367   : > { %v2579_v7 = vmax.f32 %v2540_v47, %v2550_v2  ;;  %v3315_v2 = vld [vmem:[%s4647_s5 + $0x68] sm:$0xff]  }
 0x397   : > { %v2489_v36 = vpop.f32.mrb[4].mxu1 }
 0x398   : > { %v2490_v1 = vadd.f32 %v4469_v56, %v2489_v36  ;;  %v2491_v3 = vpop.f32.mrb[5].mxu1 }
 0x399   : > { %v2492_v4 = vpop.f32.mrb[6].mxu1 }
 0x39a   : > { %v2522_v5 = vmax.f32 %v2490_v1, 0.0  ;;  %v2493_v63 = vadd.f32 %v4469_v56, %v2492_v4  ;;  %v2494_v25 = vpop.f32.mrb[7].mxu1 }
 0x39b   : > { %v3314_v25 = vld [vmem:[%s4647_s5 + $0x20] sm:$0xff]  }
 0x39c   : > { %2532 = vst.msk [vmem:[#allocation5 + $0x10] sm:$0xff] %vm376_vm15, %v2522_v5  ;;  %v2523_v6 = vmax.f32 %v2493_v63, 0.0  ;;  %v3313_v63 = vld [vmem:[%s4647_s5 + $0x60] sm:$0xff]  }
 0x39d   : > { %3162 = vmatprep.subr.bf16.mxu1 %v3313_v63 }
 0x39e   : > { %2533 = vst.msk [vmem:[#allocation5 + $0x18] sm:$0xff] %vm376_vm15, %v2523_v6  ;;  %3163 = vmatpush3.bf16.msra.mxu1 %v3314_v25 }
 0x39f   : > { %3164 = vmatprep.subr.bf16.mxu1 %v3315_v2 }
 0x3a5   : > { %v2560_v8 = vld [vmem:[#allocation5 + $0xa] ss:$2 sm:$0xff]  ;;  %v2570_v10 = vld [vmem:[#allocation5 + $0xb] ss:$2 sm:$0xff] }
 0x3a6   : > { %v2584_v9 = vmax.f32 %v2579_v7, %v2560_v8  ;;  %v2542_v23 = vld [vmem:[#allocation5 + $0x10] ss:$2 sm:$0xff]  ;;  %v2552_v60 = vld [vmem:[#allocation5 + $0x11] ss:$2 sm:$0xff]  ;;  %v3316_v7 = vld [vmem:[%s4647_s5 + $0x28] sm:$0xff]  }
 0x3a7   : > { %v2580_v22 = vmax.f32 %v2542_v23, %v2552_v60  ;;  %3165 = vmatpush3.bf16.msra.mxu1 %v3316_v7 }
 0x3a8   : > { %v2589_v12 = vmax.f32 %v2584_v9, %v2570_v10 }
 0x3aa   : > { %2595 = vst.msk [vmem:[#allocation6 + $0x7] sm:$0xf] %vm2594_vm11, %v2589_v12 }
 0x3b1   : > { %v2608_v39 = vld [vmem:[#allocation6 + $0x1] sm:$0xff] }
 0x3b2   : > { %v2613_v43 = vld [vmem:[#allocation6 + $0x2] sm:$0xff] }
 0x3d4   : > { %v2497_v13 = vpop.f32.mrb[8].mxu1 }
 0x3d5   : > { %v2498_v14 = vadd.f32 %v4469_v56, %v2497_v13  ;;  %v2499_v15 = vpop.f32.mrb[9].mxu1 }
 0x3d6   : > { %v2500_v16 = vpop.f32.mrb[10].mxu1 }
 0x3d7   : > { %v2524_v11 = vmax.f32 %v2498_v14, 0.0  ;;  %v2501_v17 = vadd.f32 %v4469_v56, %v2500_v16  ;;  %v2502_v20 = vpop.f32.mrb[11].mxu1 }
 0x3d9   : > { %2534 = vst.msk [vmem:[#allocation5 + $0x20] sm:$0xff] %vm376_vm15, %v2524_v11  ;;  %v2525_v21 = vmax.f32 %v2501_v17, 0.0 }
 0x3db   : > { %2535 = vst.msk [vmem:[#allocation5 + $0x28] sm:$0xff] %vm376_vm15, %v2525_v21 }
 0x3e2   : > { %v2562_v27 = vld [vmem:[#allocation5 + $0x1a] ss:$2 sm:$0xff]  ;;  %v2572_v24 = vld [vmem:[#allocation5 + $0x1b] ss:$2 sm:$0xff] }
 0x3e3   : > { %v2585_v29 = vmax.f32 %v2580_v22, %v2562_v27  ;;  %v2544_v57 = vld [vmem:[#allocation5 + $0x20] ss:$2 sm:$0xff]  ;;  %v2554_v52 = vld [vmem:[#allocation5 + $0x21] ss:$2 sm:$0xff] }
 0x3e4   : > { %v2581_v36 = vmax.f32 %v2544_v57, %v2554_v52 }
 0x3e5   : > { %v2590_v30 = vmax.f32 %v2585_v29, %v2572_v24  ;;  %v3317_v24 = vld [vmem:[%s4647_s5 + $0x70] sm:$0xff]  }
 0x3e6   : > { %3166 = vmatprep.subr.bf16.mxu1 %v3317_v24 }
 0x3e7   : > { %2597 = vst.msk [vmem:[#allocation6 + $0xb] sm:$0x3c] %vm2596_vm12, %v2590_v30  ;;  %v3318_v30 = vld [vmem:[%s4647_s5 + $0x30] sm:$0xff]  }
 0x3e8   : > { %3167 = vmatpush3.bf16.msra.mxu1 %v3318_v30 }
 0x3e9   : > { %3168 = vmatprep.subr.bf16.mxu1 %v3319_v32 }
 0x3ec   : > { %3169 = vmatpush3.bf16.msra.mxu1 %v3320_v37 }
 0x3ee   : > { %v2609_v40 = vld [vmem:[#allocation6 + $0x9] sm:$0xff] }
 0x3ef   : > { %v2611_v58 = vpack.c.bf16 %v2609_v40, %v2608_v39  ;;  %v2614_v41 = vld [vmem:[#allocation6 + $0xa] sm:$0xff] }
 0x3f0   : > { %v2616_v44 = vpack.c.bf16 %v2614_v41, %v2613_v43  ;;  %v2618_v15 = vld [vmem:[#allocation6 + $0x6] sm:$0xff]  ;;  %v2643_v41 = vpack.c.bf16 %v2641_v38, %v2641_v38 }
 0x3f1   : > { %2646 = vrot.lane.b32.xlu0 %v2611_v58, %s3395_s18  ;;  %v4538_v16 = vld [vmem:[#allocation6 + $0x8] sm:$0xff] }
 0x3f5   : > { %2652 = vrot.lane.b32.xlu0 %v2616_v44, %s3398_s14 }
 0x3f8   : > { %v2505_v46 = vpop.f32.mrb[12].mxu1 }
 0x3f9   : > { %v2506_v49 = vadd.f32 %v4469_v56, %v2505_v46  ;;  %v2507_v26 = vpop.f32.mrb[13].mxu1 }
 0x3fa   : > { %v2508_v51 = vpop.f32.mrb[14].mxu1 }
 0x3fb   : > { %v2526_v53 = vmax.f32 %v2506_v49, 0.0  ;;  %v2509_v54 = vadd.f32 %v4469_v56, %v2508_v51  ;;  %v2510_v50 = vpop.f32.mrb[15].mxu1 }
 0x3fd   : > { %2536 = vst.msk [vmem:[#allocation5 + $0x30] sm:$0xff] %vm376_vm15, %v2526_v53  ;;  %v2527_v28 = vmax.f32 %v2509_v54, 0.0  ;;  %v2638_v54 = vld [vmem:[#allocation6 + $0x1d] sm:$0xff] }
 0x3ff   : > { %2537 = vst.msk [vmem:[#allocation5 + $0x38] sm:$0xff] %vm376_vm15, %v2527_v28  ;;  %v2640_v28 = vpack.c.bf16 %v2638_v54, %v2638_v54 }
 0x401   : > { %v2513_v55 = vpop.f32.mrb[16].mxu1 }
 0x402   : > { %v2514_v48 = vadd.f32 %v4469_v56, %v2513_v55  ;;  %v2515_v18 = vpop.f32.mrb[17].mxu1 }
 0x403   : > { %v2516_v59 = vpop.f32.mrb[18].mxu1 }
 0x404   : > { %v2528_v61 = vmax.f32 %v2514_v48, 0.0  ;;  %v2517_v62 = vadd.f32 %v4469_v56, %v2516_v59  ;;  %v2518_v19 = vpop.f32.mrb[19].mxu1  ;;  %v2623_v59 = vld [vmem:[#allocation6 + $0x7] sm:$0xff] }
 0x406   : > { %v2564_v1 = vld [vmem:[#allocation5 + $0x2a] ss:$2 sm:$0xff]  ;;  %2538 = vst.msk [vmem:[#allocation5 + $0x40] sm:$0xff] %vm376_vm15, %v2528_v61  ;;  %v2529_v4 = vmax.f32 %v2517_v62, 0.0  ;;  %v2574_v5 = vld [vmem:[#allocation5 + $0x2b] ss:$2 sm:$0xff] }
 0x407   : > { %v2586_v3 = vmax.f32 %v2581_v36, %v2564_v1  ;;  %v2546_v56 = vld [vmem:[#allocation5 + $0x30] ss:$2 sm:$0xff]  ;;  %v2556_v47 = vld [vmem:[#allocation5 + $0x31] ss:$2 sm:$0xff]  ;;  %v2603_v62 = vld [vmem:[#allocation6] sm:$0xff] }
 0x408   : > { %2539 = vst.msk [vmem:[#allocation5 + $0x48] sm:$0xff] %vm376_vm15, %v2529_v4  ;;  %v2582_v8 = vmax.f32 %v2546_v56, %v2556_v47  ;;  %v2606_v36 = vpack.c.bf16 %v4538_v16, %v2603_v62 }
 0x409   : > { %v2591_v6 = vmax.f32 %v2586_v3, %v2574_v5 }
 0x40b   : > { %2599 = vst.msk [vmem:[#allocation6 + $0xf] sm:$0xf0] %vm2598_vm13, %v2591_v6 }
 0x40f   : > { %v2548_v9 = vld [vmem:[#allocation5 + $0x40] ss:$2 sm:$0xff]  ;;  %v2558_v10 = vld [vmem:[#allocation5 + $0x41] ss:$2 sm:$0xff] }
 0x410   : > { %v2566_v12 = vld [vmem:[#allocation5 + $0x3a] ss:$2 sm:$0xff]  ;;  %v2568_v0 = vld [vmem:[#allocation5 + $0x4a] ss:$2 sm:$0xff]  ;;  %v2583_v13 = vmax.f32 %v2548_v9, %v2558_v10  ;;  %v2576_v11 = vld [vmem:[#allocation5 + $0x3b] ss:$2 sm:$0xff] }
 0x411   : > { %v2587_v14 = vmax.f32 %v2582_v8, %v2566_v12  ;;  %v2578_v21 = vld [vmem:[#allocation5 + $0x4b] ss:$2 sm:$0xff] }
 0x412   : > { %v2619_v17 = vld [vmem:[#allocation6 + $0xe] sm:$0xff]  ;;  %v2588_v23 = vmax.f32 %v2583_v13, %v2568_v0 }
 0x413   : > { %v4540_v20 = vld [vmem:[#allocation6 + $0x10] sm:$0xff]  ;;  %v2592_v60 = vmax.f32 %v2587_v14, %v2576_v11  ;;  %v2621_v22 = vpack.c.bf16 %v2619_v17, %v2618_v15 }
 0x414   : > { %v2629_v27 = vpack.c.bf16 %v4540_v20, %v4538_v16  ;;  %v2610_v29 = vld [vmem:[#allocation6 + $0x11] sm:$0xff]  ;;  %v2593_v31 = vmax.f32 %v2588_v23, %v2578_v21  ;;  %v2607_v10 = vpack.c.bf16 %v4540_v20, %v4540_v20 }
 0x415   : > { %2658 = vrot.lane.b32.xlu0 %v2621_v22, %s3401_s20  ;;  %2601 = vst.msk [vmem:[#allocation6 + $0x13] sm:$0xc0] %vm2600_vm14, %v2592_v60  ;;  %v2612_v33 = vpack.c.bf16 %v2610_v29, %v2610_v29  ;;  %v2631_v58 = vld [vmem:[#allocation6 + $0xc] sm:$0xff]  ;;  %v3105_v29 = vld [vmem:[%s4648_s6] ss:$0 sm:$0xff] }
 0x416   : > { %2664 = vrot.lane.b32.xlu1 %v2629_v27, %s3395_s18  ;;  %2602 = vst.msk [vmem:[#allocation6 + $0x1b] sm:$0x3] %vm388_vm9, %v2593_v31  ;;  %v2636_v46 = vld [vmem:[#allocation6 + $0xd] sm:$0xff] }
 0x417   : > { %v2624_v18 = vld [vmem:[#allocation6 + $0xf] sm:$0xff] }
 0x418   : > { %v2626_v19 = vpack.c.bf16 %v2624_v18, %v2623_v59 }
 0x419   : > { %2648 = vrot.lane.b32.xlu0 %v2612_v33, %s3395_s18 }
 0x41c   : > { %v2615_v35 = vld [vmem:[#allocation6 + $0x12] sm:$0xff] }
 0x41d   : > { %v2617_v39 = vpack.c.bf16 %v2615_v35, %v2615_v35  ;;  %v2620_v40 = vld [vmem:[#allocation6 + $0x16] sm:$0xff] }
 0x41e   : > { %v2632_v34 = vld [vmem:[#allocation6 + $0x14] sm:$0xff]  ;;  %v2642_v42 = vpack.c.bf16 %v2620_v40, %v2619_v17  ;;  %v2622_v45 = vpack.c.bf16 %v2620_v40, %v2620_v40  ;;  %v2633_v53 = vld [vmem:[#allocation6 + $0x1c] sm:$0xff] }
 0x41f   : > { %2654 = vrot.lane.b32.xlu0 %v2617_v39, %s3398_s14  ;;  %v2634_v43 = vpack.c.bf16 %v2632_v34, %v2631_v58  ;;  %v2637_v44 = vld [vmem:[#allocation6 + $0x15] sm:$0xff]  ;;  %v2635_v50 = vpack.c.bf16 %v2633_v53, %v2633_v53 }
 0x420   : > { %3230 = vmatprep.mubr.msk.bf16.mxu0 %vm376_vm15, %v2642_v42  ;;  %v2639_v49 = vpack.c.bf16 %v2637_v44, %v2636_v46  ;;  %v2628_v26 = vld [vmem:[#allocation6 + $0x18] sm:$0xff] }
 0x421   : > { %2670 = vrot.lane.b32.xlu1 %v2634_v43, %s3398_s14  ;;  %3231 = vmatmul.mubr.msk.bf16.vlgmr.msra.gmra.mrb[36].mxu0 %vm376_vm15, %v2643_v41  ;;  %v2630_v51 = vpack.c.bf16 %v2628_v26, %v2628_v26  ;;  %v2625_v7 = vld [vmem:[#allocation6 + $0x17] sm:$0xff] }
 0x422   : > { %v2627_v9 = vpack.c.bf16 %v2625_v7, %v2625_v7 }
 0x423   : > { %2660 = vrot.lane.b32.xlu0 %v2622_v45, %s3401_s20 }
 0x425   : > { %2676 = vrot.lane.b32.xlu1 %v2639_v49, %s3401_s20 }
 0x429   : > { %2666 = vrot.lane.b32.xlu1 %v2630_v51, %s3395_s18 }
 0x42d   : > { %2672 = vrot.lane.b32.xlu1 %v2635_v50, %s3398_s14  ;;  %s3327_s14 = scalar_lea.vmem %s3326_s23, 128 }
 0x42e   : > { %p3329_p1 = scmp.lt.s32.totalorder %s3327_s14, %s3321_s16 }
 0x430   : > { %p3330_p2 = por %p3329_p1, %p3328_p0 }
 0x431   : > { %2678 = vrot.lane.b32.xlu1 %v2640_v28, %s3401_s20 }
 0x432   : > { %p3331_p3 = pnand %p3330_p2, %p3324_p13 }
 0x463   : > { %v2647_v55 = vpop.permute.xlu0 %2646 }
 0x464   : > { %v2682_v4 = vsel %vm376_vm15, %v2606_v36, %v2647_v55 }
 0x467   : > { %v2653_v57 = vpop.permute.xlu0 %2652 }
 0x468   : > { %v2687_v25 = vsel %vm396_vm1, %v2682_v4, %v2653_v57 }
 0x487   : > { %v2659_v48 = vpop.permute.xlu0 %2658 }
 0x488   : > { %v2665_v52 = vpop.permute.xlu1 %2664  ;;  %v2691_v56 = vsel %vm2326_vm7, %v2687_v25, %v2659_v48 }
 0x489   : > { %v2698_v1 = vsel %vm376_vm15, %v2626_v19, %v2665_v52 }
 0x48b   : > { %v2649_v3 = vpop.permute.xlu0 %2648 }
 0x48c   : > { %v2685_v13 = vsel %vm376_vm15, %v2607_v10, %v2649_v3 }
 0x491   : > { %v2655_v2 = vpop.permute.xlu0 %2654 }
 0x492   : > { %v2689_v16 = vsel %vm396_vm1, %v2685_v13, %v2655_v2 }
 0x493   : > { %v2671_v61 = vpop.permute.xlu1 %2670 }
 0x494   : > { %v2703_v5 = vsel %vm396_vm1, %v2698_v1, %v2671_v61 }
 0x495   : > { %v2661_v12 = vpop.permute.xlu0 %2660 }
 0x496   : > { %v2694_v17 = vsel %vm2326_vm7, %v2689_v16, %v2661_v12 }
 0x497   : > { %v2677_v63 = vpop.permute.xlu1 %2676 }
 0x498   : > { %v2707_v6 = vsel %vm2326_vm7, %v2703_v5, %v2677_v63 }
 0x499   : > { %2901 = vmatprep.mubr.bf16.mxu1 %v2707_v6 }
 0x49a   : > { %2902 = vmatmul.mubr.bf16.vlgmr.msra.gmra.mrb[20].mxu1 %v2691_v56 }
 0x49b   : > { %v2667_v47 = vpop.permute.xlu1 %2666 }
 0x49c   : > { %v2701_v0 = vsel %vm376_vm15, %v2627_v9, %v2667_v47  ;;  %vm2981_vm15 = vcmask 517120  }
 0x49f   : > { %v2673_v8 = vpop.permute.xlu1 %2672 }
 0x4a0   : > { %v2705_v14 = vsel %vm396_vm1, %v2701_v0, %v2673_v8 }
 0x4a3   : > { %v2679_v15 = vpop.permute.xlu1 %2678 }
 0x4a4   : > { %v2710_v11 = vsel %vm2326_vm7, %v2705_v14, %v2679_v15 }
 0x4a5   : > { %2909 = vmatprep.mubr.bf16.mxu1 %v2710_v11 }
 0x4a6   : > { %2910 = vmatmul.mubr.bf16.gmra.mrb[24].mxu1 %v2694_v17 }
 0x4f4   : > { %v3232_v21 = vpop.f32.mrb[36].mxu0 }
 0x4f5   : > { %v2951_v23 = vpop.f32.mrb[37].mxu0 }
 0x4f6   : > { %v3233_v60 = vpop.f32.mrb[38].mxu0 }
 0x4f7   : > { %v2954_v20 = vpop.f32.mrb[39].mxu0 }
 0x56d   : > { %v3170_v22 = vpop.f32.mrb[20].mxu1 }
 0x56e   : > { %v3171_v27 = vpop.f32.mrb[21].mxu1 }
 0x56f   : > { %v3172_v24 = vadd.f32 %v3171_v27, %v3170_v22  ;;  %v3173_v30 = vpop.f32.mrb[22].mxu1 }
 0x570   : > { %v3174_v31 = vpop.f32.mrb[23].mxu1 }
 0x571   : > { %v3175_v32 = vadd.f32 %v3174_v31, %v3173_v30  ;;  %v2904_v33 = vadd.f32 %v3172_v24, %v3105_v29 }
 0x573   : > { %v2952_v37 = vadd.f32 %v2951_v23, %v2904_v33  ;;  %v2907_v35 = vadd.f32 %v3175_v32, %v3105_v29 }
 0x575   : > { %v2965_v38 = vmax.f32 %v2952_v37, 0.0  ;;  %v2955_v39 = vadd.f32 %v2954_v20, %v2907_v35 }
 0x577   : > { %2968 = vst.msk [vmem:[#allocation7] sm:$0xff] %vm396_vm1, %v2965_v38  ;;  %v2966_v40 = vmax.f32 %v2955_v39, 0.0 }
 0x579   : > { %2969 = vst.msk [vmem:[#allocation7 + $0x8] sm:$0xff] %vm396_vm1, %v2966_v40  ;;  %v3176_v58 = vpop.f32.mrb[24].mxu1 }
 0x57a   : > { %v3177_v34 = vpop.f32.mrb[25].mxu1 }
 0x57b   : > { %v3178_v41 = vadd.f32 %v3177_v34, %v3176_v58  ;;  %v3179_v42 = vpop.f32.mrb[26].mxu1 }
 0x57c   : > { %v3180_v43 = vpop.f32.mrb[27].mxu1 }
 0x57d   : > { %v2912_v44 = vadd.f32 %v3178_v41, %v3105_v29 }
 0x57f   : > { %v2960_v45 = vadd.f32 %v3232_v21, %v2912_v44 }
 0x580   : > { %v2971_v49 = vld [vmem:[#allocation7] ss:$2 sm:$0xff]  ;;  %v2973_v26 = vld [vmem:[#allocation7 + $0x1] ss:$2 sm:$0xff] }
 0x581   : > { %v2967_v46 = vmax.f32 %v2960_v45, 0.0  ;;  %v2978_v51 = vmax.f32 %v2971_v49, %v2973_v26 }
 0x583   : > { %2970 = vst.msk [vmem:[#allocation7 + $0x10] sm:$0xff] %vm396_vm1, %v2967_v46 }
 0x58a   : > { %v2975_v53 = vld [vmem:[#allocation7 + $0x6] ss:$2 sm:$0xff]  ;;  %v2977_v50 = vld [vmem:[#allocation7 + $0x7] ss:$2 sm:$0xff] }
 0x58b   : > { %v2979_v54 = vmax.f32 %v2978_v51, %v2975_v53 }
 0x58d   : > { %v2980_v28 = vmax.f32 %v2979_v54, %v2977_v50 }
 0x58f   : > { %2982 = vst.msk [vmem:[%s271_s13] sm:$0x3] %vm2981_vm15, %v2980_v28 }
 0x590   : > { %3126 = vst.msk [vmem:[%s271_s13 - $0x4] sm:$0xc0] %vm2984_vm0, %v2980_v28 }
 0x591   : > { %3334 = shalt.err (!%p3331_p3)
}
 0x592   : > { %s3335_s20 = scalar_lea.hbm %s4595_s15, 64  ;;  %s3339_s9 = scalar_lea.hbm %s4649_s7, 128 }
 0x593   : > { %p3336_p4 = scmp.ne.s32.totalorder %s4595_s15, %s3335_s20  ;;  %p3340_p9 = scmp.lt.u32.totalorder %s4595_s15, %s4649_s7 }
 0x594   : > { %p3341_p10 = scmp.lt.u32.totalorder %s3339_s9, %s3335_s20  ;;  %p3343_p12 = scmp.lt.u32.totalorder %s3335_s20, %s4595_s15 }
 0x595   : > { %p3337_p7 = pnand %p3336_p4, %p3483_p5 }
 0x596   : > { %p3342_p11 = por %p3341_p10, %p3340_p9 }
 0x597   : > { %p3338_p8 = pneg %p3337_p7 }
 0x598   : > { %p3344_p13 = por %p3343_p12, %p3342_p11 }
 0x59a   : > { %p3345_p0 = pnand %p3344_p13, %p3338_p8 }
 0x59c   : > { %3348 = shalt.err (!%p3345_p0)
}
 0x59d   : > { %s3404_s19 = smov 2  }
 0x59e   : > { %3234 = dma.vmem_to_hbm [thread:$0]  (%p3483_p5), %s4597_s17, 64, %s4595_s15, %s4599_s28, %s3395_s18, %s3395_s18, %s3404_s19  }
 0x59f PF: > { %p3240_p1 = scmp.ge.s32.totalorder %s3383_s27, 2  ;;  %s3015_s16 = sand.u32 1, %s3371_s24  }
 0x5a0   : > { %s3016_s22 = scalar_lea.sflag [#allocation9], %s3015_s16 }
 0x5a1   : > { %p3237_p2 = pnand %p3240_p1, %p3487_p6 }
 0x5a3   : > { %3366 = dma.done.wait (!%p3237_p2), %s3016_s22, 64  }
 0x5a4   : > { %3368 = vsyncadd (!%p3237_p2), %s3016_s22, 4294967232  ;;  %p17_p3 = scmp.ge.s32.totalorder %s3470_s30, 4   ;;  %s4652_s24 = smov %s3375_s25 }
 0x5a5   : > { %s4653_s25 = smov %s3379_s26  ;;  %s4654_s26 = smov %s3481_s10 }
 0x5a6   : > { %s4655_s27 = smov %s3470_s30  ;;  %19 = sbr.rel (!%p17_p3) target bundleno = 3 (0x3), region = 161 }
 0x5ad   :  { %3021 = vsyncpa [#allocation9], 1 }
 0x5ae   :  { %3023 = vsyncpa [#allocation9 + $0x1], 1 }

</bundles_post_ra>
